<compile_context>
chip_gen: v7x
topology: tpu7x:2x2x1
jax: 0.10.0
libtpu: 0.0.40
codegen_flags: <defaults>
</compile_context>

<pallas_src>
import functools

import jax
import jax.numpy as jnp
from jax import lax
from jax.experimental import pallas as pl
from jax.experimental.pallas import tpu as pltpu


def _round_up(x, m):
    return (x + m - 1) // m * m


def _vq_fused_kernel(z_ref, wf_ref, bf_ref, er_ref, out_ref):
    # z_ref:   (TN, C_in)   input tokens (f32 stream, cast to bf16 for the MXU)
    # wf_ref:  (C_in, n_e)  fused score weight  = Wc^T @ E^T   (bf16)
    # bf_ref:  (1, n_e)     fused score bias    = bc @ E^T - 0.5*|e_n|^2 (f32)
    # er_ref:  (n_e, C_in)  rebuilt codebook    = E @ We^T + be
    # out_ref: (TN, C_in)
    n_e = er_ref.shape[0]

    # score_n = zc . e_n - 0.5*|e_n|^2  ->  argmax(score) == argmin(distance)
    # bf16 operands, f32 accumulate (MXU-native on v5e/v6e/v7x).
    score = jnp.dot(z_ref[...].astype(jnp.bfloat16), wf_ref[...],
                    preferred_element_type=jnp.float32) + bf_ref[...]

    # first-occurrence tie-break (matches torch.argmin): one max reduction,
    # one masked min-index reduction (f32, no int32 slab), one compare.
    smax = jnp.max(score, axis=-1, keepdims=True)                       # (TN, 1)
    colf = lax.broadcasted_iota(jnp.int32, score.shape, 1).astype(jnp.float32)
    idx = jnp.min(jnp.where(score == smax, colf, jnp.float32(n_e)),
                  axis=-1, keepdims=True)                               # (TN, 1)
    onehot = (colf == idx).astype(er_ref.dtype)                         # (TN, n_e)

    # embedding gather + expand Linear, fused into one MXU matmul.
    out_ref[...] = jnp.dot(onehot, er_ref[...],
                           preferred_element_type=jnp.float32).astype(out_ref.dtype)


@functools.partial(jax.jit, static_argnames=("tile_n", "out_dtype"))
def vq_linear_rebuild_forward(z, params, tile_n=1024, out_dtype=jnp.float32):
    """Eval-mode forward of VectorQuantizer_LinearRebuild.

    z: (B, S, C_in) float32 (channels-last).  Returns (z_q same shape, loss=0.0).
    out_dtype=bf16 halves output HBM traffic when downstream tolerates it.
    """
    emb = params["emb"]              # (n_e, c_dim)
    wc = params["w_compress"]        # (c_dim, c_in)
    bc = params["b_compress"]        # (c_dim,)
    we = params["w_expand"]          # (c_in, c_dim)
    be = params["b_expand"]          # (c_in,)

    B, S, c_in = z.shape
    n_e, c_dim = emb.shape
    N = B * S

    # ---- wrapper-side fusion (cheap XLA matmuls, free layout plumbing) ------
    w_fused = (wc.T @ emb.T).astype(jnp.bfloat16)                       # (c_in, n_e)
    b_fused = (bc @ emb.T - 0.5 * jnp.sum(emb * emb, axis=-1)).reshape(1, n_e)
    e_rebuilt = (emb @ we.T + be[None, :]).astype(out_dtype)            # (n_e, c_in)

    # ---- tiling: big token tiles, ragged tail, grid >= 2 for v7x megacore ---
    half = _round_up(max(8, -(-N // 2)), 8)
    tn = max(8, min(_round_up(int(tile_n), 8), half))
    grid = (pl.cdiv(N, tn),)
    z_flat = z.reshape(N, c_in)          # no jnp.pad: tail block is clamped DMA

    # ---- VMEM budget + cost estimate ----------------------------------------
    io_bytes = 2 * (tn * c_in * 4) * 2                    # z + out, double-buffered
    wt_bytes = 2 * (c_in * n_e * 2 + n_e * 4 + n_e * c_in * 4)
    tmp_bytes = 4 * tn * n_e * 4                          # score/colf/onehot headroom
    vmem_limit = int(min(max(32 * 1024 * 1024,
                             2 * (io_bytes + wt_bytes + tmp_bytes)),
                         48 * 1024 * 1024))               # stay well inside v7x's 64 MiB
    cost = pl.CostEstimate(
        flops=4 * N * c_in * n_e,                         # two (N,c_in)x(c_in/n_e) matmuls
        transcendentals=0,
        bytes_accessed=4 * (2 * N * c_in + n_e + n_e * c_in) + 2 * c_in * n_e,
    )

    out = pl.pallas_call(
        _vq_fused_kernel,
        out_shape=jax.ShapeDtypeStruct((N, c_in), out_dtype),
        grid_spec=pltpu.PrefetchScalarGridSpec(
            num_scalar_prefetch=0,
            grid=grid,
            in_specs=[
                pl.BlockSpec((tn, c_in), lambda i: (i, 0)),     # z (streamed)
                pl.BlockSpec((c_in, n_e), lambda i: (0, 0)),    # W_fused (bf16, resident)
                pl.BlockSpec((1, n_e), lambda i: (0, 0)),       # b_fused (resident)
                pl.BlockSpec((n_e, c_in), lambda i: (0, 0)),    # E_rebuilt (resident)
            ],
            out_specs=pl.BlockSpec((tn, c_in), lambda i: (i, 0)),
        ),
        compiler_params=pltpu.CompilerParams(
            dimension_semantics=("parallel",),
            vmem_limit_bytes=vmem_limit),
        cost_estimate=cost,
    )(z_flat, w_fused, b_fused, e_rebuilt)

    z_q = out.reshape(B, S, c_in)
    loss = jnp.zeros((), jnp.float32)      # eval path returns a 0.0 tensor
    return z_q, loss


def init_params(key, n_e, channels_in, channels_dim):
    k_emb, k_wc, k_bc, k_we, k_be = jax.random.split(key, 5)
    # trunc_normal_(mean=0, std=1, a=-3, b=3)
    emb = jax.random.truncated_normal(k_emb, -3.0, 3.0,
                                      (n_e, channels_dim), jnp.float32)
    # nn.Linear default init: U(-1/sqrt(fan_in), 1/sqrt(fan_in))
    bc_bound = 1.0 / jnp.sqrt(jnp.float32(channels_in))
    be_bound = 1.0 / jnp.sqrt(jnp.float32(channels_dim))
    w_compress = jax.random.uniform(k_wc, (channels_dim, channels_in),
                                    jnp.float32, -bc_bound, bc_bound)
    b_compress = jax.random.uniform(k_bc, (channels_dim,),
                                    jnp.float32, -bc_bound, bc_bound)
    w_expand = jax.random.uniform(k_we, (channels_in, channels_dim),
                                  jnp.float32, -be_bound, be_bound)
    b_expand = jax.random.uniform(k_be, (channels_in,),
                                  jnp.float32, -be_bound, be_bound)
    return {"emb": emb, "w_compress": w_compress, "b_compress": b_compress,
            "w_expand": w_expand, "b_expand": b_expand}


if __name__ == "__main__":
    # Lane-aligned small demo shapes: C_in = 128 (lane-dense in/out slabs),
    # n_e = 256, c_dim = 64.  N = 1000 tokens, tile is capped at ceil(N/2)=504
    # -> grid = 2 (exercises the ragged tail and keeps both v7x cores busy).
    n_e, channels_in, channels_dim = 256, 128, 64
    B, S = 2, 500

    key = jax.random.PRNGKey(0)
    k_params, k_z = jax.random.split(key)
    params = init_params(k_params, n_e, channels_in, channels_dim)
    z = jax.random.normal(k_z, (B, S, channels_in), jnp.float32)

    z_q, loss = vq_linear_rebuild_forward(z, params)
    z_q = jax.block_until_ready(z_q)
    loss = jax.block_until_ready(loss)

    # ---------------- correctness check vs a plain-JAX f32 reference ---------
    # Validate code selection with an index-match / optimality-gap check
    # (robust to fp near-ties introduced by the algebraic fusion and the bf16
    # scoring matmul), plus a rebuild check on the selected codes.
    emb, wc, bc = params["emb"], params["w_compress"], params["b_compress"]
    we, be = params["w_expand"], params["b_expand"]

    z2 = z.reshape(-1, channels_in)
    zc = z2 @ wc.T + bc
    d = (jnp.sum(zc ** 2, axis=1, keepdims=True)
         + jnp.sum(emb ** 2, axis=1)[None, :]
         - 2.0 * zc @ emb.T)                                   # (N, n_e)
    idx_ref = jnp.argmin(d, axis=1)
    e_rebuilt = emb @ we.T + be[None, :]                       # (n_e, c_in)

    # Recover which code each kernel row selected (rows of z_q are rows of
    # e_rebuilt up to f32 round-off).
    zq_flat = z_q.reshape(-1, channels_in).astype(jnp.float32)
    dq = (jnp.sum(zq_flat ** 2, axis=1, keepdims=True)
          + jnp.sum(e_rebuilt ** 2, axis=1)[None, :]
          - 2.0 * zq_flat @ e_rebuilt.T)
    idx_kernel = jnp.argmin(dq, axis=1)

    # 1) every selected code is (near-)nearest: relative optimality gap small.
    d_min = d.min(axis=1)
    gap = d[jnp.arange(d.shape[0]), idx_kernel] - d_min
    rel_gap = gap / (d_min + 1e-6)
    assert float(jnp.max(rel_gap)) < 2e-2, \
        f"non-optimal code selected (max rel gap {float(jnp.max(rel_gap))})"
    # 2) index-match rate vs strict f32 argmin reference (bf16-scoring tolerant).
    match_rate = float(jnp.mean((idx_kernel == idx_ref).astype(jnp.float32)))
    assert match_rate >= 0.98, f"index match rate too low: {match_rate}"
    # 3) rebuilt output matches emb[idx] @ We^T + be for the selected codes.
    zq_ref = (emb[idx_kernel] @ we.T + be).reshape(z.shape)
    assert z_q.shape == z.shape
    assert jnp.allclose(z_q.astype(jnp.float32), zq_ref, atol=1e-3, rtol=1e-3), \
        "z_q mismatch vs reference rebuild"
    assert float(loss) == 0.0

    print("KERNEL_OK")
</pallas_src>

<mosaic_0001>
module attributes {stable_mosaic.version = 11 : i64} {
  func.func @_vq_fused_kernel(%arg0: i32, %arg1: memref<504x128xf32, #tpu.memory_space<vmem>>, %arg2: memref<128x256xbf16, #tpu.memory_space<vmem>>, %arg3: memref<1x256xf32, #tpu.memory_space<vmem>>, %arg4: memref<256x128xf32, #tpu.memory_space<vmem>>, %arg5: memref<504x128xf32, #tpu.memory_space<vmem>>) attributes {dimension_semantics = [#tpu.dimension_semantics<parallel>], iteration_bounds = array<i64: 2>, scalar_prefetch = 0 : i64, scratch_operands = 0 : i64, tpu.core_type = #tpu.core_type<tc>, window_params = [{transform_indices = @transform_0, window_bounds = array<i64: 504, 128>}, {pipeline_mode = #tpu.pipeline_mode<synchronous>, transform_indices = @transform_1, window_bounds = array<i64: 128, 256>}, {pipeline_mode = #tpu.pipeline_mode<synchronous>, transform_indices = @transform_2, window_bounds = array<i64: 1, 256>}, {pipeline_mode = #tpu.pipeline_mode<synchronous>, transform_indices = @transform_3, window_bounds = array<i64: 256, 128>}, {transform_indices = @transform_4, window_bounds = array<i64: 504, 128>}]} {
    %c0 = arith.constant 0 : index
    %c0_0 = arith.constant 0 : index
    %0 = vector.load %arg1[%c0, %c0_0] : memref<504x128xf32, #tpu.memory_space<vmem>>, vector<504x128xf32>
    %1 = arith.truncf %0 : vector<504x128xf32> to vector<504x128xbf16>
    %c0_1 = arith.constant 0 : index
    %c0_2 = arith.constant 0 : index
    %2 = vector.load %arg2[%c0_1, %c0_2] : memref<128x256xbf16, #tpu.memory_space<vmem>>, vector<128x256xbf16>
    %cst = arith.constant dense<0.000000e+00> : vector<504x256xf32>
    %3 = tpu.matmul %1, %2, %cst {dimension_numbers = #tpu.dot_dimension_numbers<[1], [0], [0], [1], [0, 0, 1, 1], [], []>} : vector<504x128xbf16>, vector<128x256xbf16>, vector<504x256xf32> -> vector<504x256xf32>
    %c0_3 = arith.constant 0 : index
    %c0_4 = arith.constant 0 : index
    %4 = vector.load %arg3[%c0_3, %c0_4] : memref<1x256xf32, #tpu.memory_space<vmem>>, vector<1x256xf32>
    %5 = vector.broadcast %4 : vector<1x256xf32> to vector<504x256xf32>
    %6 = arith.addf %3, %5 : vector<504x256xf32>
    %cst_5 = arith.constant dense<0xFF800000> : vector<504xf32>
    %7 = vector.multi_reduction <maximumf>, %6, %cst_5 [1] : vector<504x256xf32> to vector<504xf32>
    %8 = vector.shape_cast %7 : vector<504xf32> to vector<504x1xf32>
    %9 = tpu.iota {dimensions = array<i32: 1>} : vector<504x256xi32>
    %10 = arith.sitofp %9 : vector<504x256xi32> to vector<504x256xf32>
    %11 = vector.broadcast %8 : vector<504x1xf32> to vector<504x256xf32>
    %12 = arith.cmpf oeq, %6, %11 : vector<504x256xf32>
    %cst_6 = arith.constant 2.560000e+02 : f32
    %13 = vector.broadcast %cst_6 : f32 to vector<504x256xf32>
    %14 = arith.select %12, %10, %13 : vector<504x256xi1>, vector<504x256xf32>
    %cst_7 = arith.constant dense<0x7F800000> : vector<504xf32>
    %15 = vector.multi_reduction <minimumf>, %14, %cst_7 [1] : vector<504x256xf32> to vector<504xf32>
    %16 = vector.shape_cast %15 : vector<504xf32> to vector<504x1xf32>
    %17 = vector.broadcast %16 : vector<504x1xf32> to vector<504x256xf32>
    %18 = arith.cmpf oeq, %10, %17 : vector<504x256xf32>
    %19 = arith.extui %18 : vector<504x256xi1> to vector<504x256xi32>
    %20 = arith.sitofp %19 : vector<504x256xi32> to vector<504x256xf32>
    %c0_8 = arith.constant 0 : index
    %c0_9 = arith.constant 0 : index
    %21 = vector.load %arg4[%c0_8, %c0_9] : memref<256x128xf32, #tpu.memory_space<vmem>>, vector<256x128xf32>
    %cst_10 = arith.constant dense<0.000000e+00> : vector<504x128xf32>
    %22 = tpu.matmul %20, %21, %cst_10 {dimension_numbers = #tpu.dot_dimension_numbers<[1], [0], [0], [1], [0, 0, 1, 1], [], []>} : vector<504x256xf32>, vector<256x128xf32>, vector<504x128xf32> -> vector<504x128xf32>
    %c0_11 = arith.constant 0 : index
    %c0_12 = arith.constant 0 : index
    %23 = vector.load %arg5[%c0_11, %c0_12] : memref<504x128xf32, #tpu.memory_space<vmem>>, vector<504x128xf32>
    tpu.vector_store %arg5[%c0_11, %c0_12], %22 {strides = array<i32>} : memref<504x128xf32, #tpu.memory_space<vmem>>, vector<504x128xf32>,
    return
  }
  func.func @transform_0(%arg0: i32) -> (i32, i32) {
    %c0_i32 = arith.constant 0 : i32
    %c0_i32_0 = arith.constant 0 : i32
    return %arg0, %c0_i32 : i32, i32
  }
  func.func @transform_1(%arg0: i32) -> (i32, i32) {
    %c0_i32 = arith.constant 0 : i32
    %c0_i32_0 = arith.constant 0 : i32
    %c0_i32_1 = arith.constant 0 : i32
    return %c0_i32, %c0_i32_0 : i32, i32
  }
  func.func @transform_2(%arg0: i32) -> (i32, i32) {
    %c0_i32 = arith.constant 0 : i32
    %c0_i32_0 = arith.constant 0 : i32
    %c0_i32_1 = arith.constant 0 : i32
    return %c0_i32, %c0_i32_0 : i32, i32
  }
  func.func @transform_3(%arg0: i32) -> (i32, i32) {
    %c0_i32 = arith.constant 0 : i32
    %c0_i32_0 = arith.constant 0 : i32
    %c0_i32_1 = arith.constant 0 : i32
    return %c0_i32, %c0_i32_0 : i32, i32
  }
  func.func @transform_4(%arg0: i32) -> (i32, i32) {
    %c0_i32 = arith.constant 0 : i32
    %c0_i32_0 = arith.constant 0 : i32
    return %arg0, %c0_i32 : i32, i32
  }
}

</mosaic_0001>

<bundles_post_ra>
// kernel: vq_linear_rebuild_forward.1
= control target key start
LH: loop header
LB: loop body
LE: loop exit
PB: predicated region body
PF: predicated region fallthrough
CT: control target
= control target key end

     0   :  { %s3330_s15 = smov 0   ;;  %s3332_s16 = smov 0   ;;  %s4954_s0 = inlined_call_operand.vmem [shape: f32[1000,128], index: 0, kind: input, shape index: {}]   ;;  %s4955_s1 = inlined_call_operand.vmem [shape: bf16[128,256], index: 1, kind: input, shape index: {}]   ;;  %s4956_s2 = inlined_call_operand.vmem [shape: f32[1,256], index: 2, kind: input, shape index: {}]   ;;  %s4957_s3 = inlined_call_operand.vmem [shape: f32[256,128], index: 3, kind: input, shape index: {}]   ;;  %s4958_s4 = inlined_call_operand.vmem [shape: f32[1000,128], index: 4, kind: output, shape index: {}]  }
   0x1   :  { %s3334_s17 = smov 0  }
   0x2 LB: > { %s3343_s18 = sadd.s32 4294967295, %s3268_s17   ;;  %s3345_s19 = sadd.s32 1, %s3268_s17   ;;  %s3268_s17 = sphi %s3334_s17, %s5076_s17   ;;  %s3264_s16 = sphi %s3332_s16, %s5075_s16   ;;  %s3260_s15 = sphi %s3330_s15, %s5074_s15  }
   0x3   : > { %s107_s20 = ssub.s32 %s3268_s17, %s3345_s19  ;;  %s110_s21 = sadd.s32 1, %s3264_s16 }
   0x4   : > { %p108_p0 = scmp.eq.s32.totalorder %s107_s20, 0  ;;  %p120_p1 = scmp.ne.s32.totalorder %s3264_s16, %s3260_s15 }
   0x5   : > { %p121_p2 = scmp.eq.s32.totalorder %s3343_s18, 1  ;;  %p2730_p3 = scmp.ge.s32.totalorder %s3268_s17, 1 }
   0x6   : > { %s3353_s22 = scalar_select %p108_p0, %s3264_s16, %s110_s21  }
   0x7   : > { %p3355_p4 = por %p121_p2, %p120_p1  ;;  %p171_p5 = scmp.lt.s32.totalorder %s3268_s17, 3 }
   0x9   : > { %p172_p6 = pnand %p2730_p3, %p171_p5 }
   0xb   : > { %175 = sbr.rel (%p172_p6) target bundleno = 1177 (0x499), region = 36 }
  0x12   : > { %v3186_v0 = vld [vmem:[%s4955_s1 + $0x4] ss:$8 sps:$4 sm:$0xff]   ;;  %v3188_v1 = vld [vmem:[%s4955_s1] ss:$8 sps:$4 sm:$0xff]   ;;  %v3302_v2 = vmov 0   ;;  %s3382_s12 = smul.u32 63, %s3343_s18 }
  0x13   : > { %455 = vmatprep.mubr.bf16.mxu0 %v3302_v2  ;;  %423 = vmatprep.subr.bf16.mxu0 %v3186_v0  ;;  %v3189_v3 = vld [vmem:[%s4955_s1 + $0x14] ss:$8 sps:$4 sm:$0xff]   ;;  %v3191_v4 = vld [vmem:[%s4955_s1 + $0x10] ss:$8 sps:$4 sm:$0xff]   ;;  %v3192_v5 = vld [vmem:[%s4955_s1 + $0x24] ss:$8 sps:$4 sm:$0xff]  }
  0x14   : > { %424 = vmatpush1.bf16.msra.mxu0 %v3188_v1  ;;  %v3194_v6 = vld [vmem:[%s4955_s1 + $0x20] ss:$8 sps:$4 sm:$0xff]   ;;  %v3195_v7 = vld [vmem:[%s4955_s1 + $0x34] ss:$8 sps:$4 sm:$0xff]   ;;  %v3197_v8 = vld [vmem:[%s4955_s1 + $0x30] ss:$8 sps:$4 sm:$0xff]  }
  0x15   : > { %425 = vmatprep.subr.bf16.mxu0 %v3189_v3  ;;  %v3198_v9 = vld [vmem:[%s4955_s1 + $0x44] ss:$8 sps:$4 sm:$0xff]   ;;  %p205_p7 = scmp.lt.s32.totalorder %s3382_s12, 124  ;;  %v3200_v10 = vld [vmem:[%s4955_s1 + $0x40] ss:$8 sps:$4 sm:$0xff]   ;;  %s2270_s8 = ssub.s32 (%p3355_p4), 125, %s3382_s12 }
  0x16   : > { %v3201_v11 = vld [vmem:[%s4955_s1 + $0x54] ss:$8 sps:$4 sm:$0xff]   ;;  %v3203_v12 = vld [vmem:[%s4955_s1 + $0x50] ss:$8 sps:$4 sm:$0xff]   ;;  %v3204_v13 = vld [vmem:[%s4955_s1 + $0x64] ss:$8 sps:$4 sm:$0xff]  }
  0x17   : > { %s206_s27 = scalar_select %p205_p7, %s3382_s12, 124  ;;  %v3206_v14 = vld [vmem:[%s4955_s1 + $0x60] ss:$8 sps:$4 sm:$0xff]   ;;  %v3207_v15 = vld [vmem:[%s4955_s1 + $0x74] ss:$8 sps:$4 sm:$0xff]  }
  0x18   : > { %426 = vmatpush1.bf16.msra.mxu0 %v3191_v4  ;;  %v3209_v16 = vld [vmem:[%s4955_s1 + $0x70] ss:$8 sps:$4 sm:$0xff]   ;;  %s3012_s9 = smul.u32 (%p3355_p4), 504, %s3343_s18  ;;  %p2271_p8 = scmp.lt.s32.totalorder (%p3355_p4), %s2270_s8, 63 }
  0x19   : > { %427 = vmatprep.subr.bf16.mxu0 %v3192_v5  ;;  %s2731_s6 = sshll.u32 %s206_s27, 3 }
  0x1a   : > { %s3413_s14 = scalar_lea.vmem %s4954_s0, %s2731_s6  ;;  %s197_s6 = sand.u32 1, %s3260_s15  }
  0x1b   : > { %v220_v17 = vld [vmem:[%s3413_s14] sm:$0xff]  ;;  %v221_v18 = vld [vmem:[%s3413_s14 + $0x8] sm:$0xff]  ;;  %v222_v20 = vld [vmem:[%s3413_s14 + $0x10] sm:$0xff]  ;;  %s3093_s7 = smul.u32 504, %s197_s6  ;;  %s4762_s13 = scalar_lea.vmem (%p3355_p4), %s4958_s4, %s3012_s9  }
  0x1c   : > { %428 = vmatpush1.bf16.msra.mxu0 %v3194_v6  ;;  %v283_v19 = vpack.c.bf16 %v221_v18, %v220_v17  ;;  %v223_v21 = vld [vmem:[%s3413_s14 + $0x18] sm:$0xff]  ;;  %v224_v23 = vld [vmem:[%s3413_s14 + $0x20] sm:$0xff]  ;;  %v225_v24 = vld [vmem:[%s3413_s14 + $0x28] sm:$0xff] }
  0x1d   : > { %429 = vmatprep.subr.bf16.mxu0 %v3195_v7  ;;  %v284_v22 = vpack.c.bf16 %v223_v21, %v222_v20  ;;  %v285_v25 = vpack.c.bf16 %v225_v24, %v224_v23  ;;  %v226_v26 = vld [vmem:[%s3413_s14 + $0x30] sm:$0xff]  ;;  %v227_v27 = vld [vmem:[%s3413_s14 + $0x38] sm:$0xff]  ;;  %v228_v29 = vld [vmem:[%s3413_s14 + $0x40] sm:$0xff]  ;;  %s4648_s15 = scalar_lea.vmem [#allocation2], %s3093_s7  }
  0x1e   : > { %v286_v28 = vpack.c.bf16 %v227_v27, %v226_v26  ;;  %v229_v30 = vld [vmem:[%s3413_s14 + $0x48] sm:$0xff]  ;;  %v230_v32 = vld [vmem:[%s3413_s14 + $0x50] sm:$0xff]  ;;  %v231_v33 = vld [vmem:[%s3413_s14 + $0x58] sm:$0xff] }
  0x1f   : > { %v287_v31 = vpack.c.bf16 %v229_v30, %v228_v29  ;;  %v288_v34 = vpack.c.bf16 %v231_v33, %v230_v32  ;;  %v232_v35 = vld [vmem:[%s3413_s14 + $0x60] sm:$0xff]  ;;  %v233_v36 = vld [vmem:[%s3413_s14 + $0x68] sm:$0xff]  ;;  %v234_v38 = vld [vmem:[%s3413_s14 + $0x70] sm:$0xff] }
  0x20   : > { %430 = vmatpush1.bf16.msra.mxu0 %v3197_v8  ;;  %v289_v37 = vpack.c.bf16 %v233_v36, %v232_v35  ;;  %v235_v39 = vld [vmem:[%s3413_s14 + $0x78] sm:$0xff]  ;;  %v236_v41 = vld [vmem:[%s3413_s14 + $0x80] sm:$0xff]  ;;  %v237_v42 = vld [vmem:[%s3413_s14 + $0x88] sm:$0xff]  ;;  %v4959_v35 = vlaneseq }
  0x21   : > { %431 = vmatprep.subr.bf16.mxu0 %v3198_v9  ;;  %v290_v40 = vpack.c.bf16 %v235_v39, %v234_v38  ;;  %v291_v43 = vpack.c.bf16 %v237_v42, %v236_v41  ;;  %v238_v44 = vld [vmem:[%s3413_s14 + $0x90] sm:$0xff]  ;;  %v239_v45 = vld [vmem:[%s3413_s14 + $0x98] sm:$0xff]  ;;  %v240_v47 = vld [vmem:[%s3413_s14 + $0xa0] sm:$0xff] }
  0x22   : > { %v292_v46 = vpack.c.bf16 %v239_v45, %v238_v44  ;;  %v241_v48 = vld [vmem:[%s3413_s14 + $0xa8] sm:$0xff]  ;;  %v242_v50 = vld [vmem:[%s3413_s14 + $0xb0] sm:$0xff]  ;;  %v243_v51 = vld [vmem:[%s3413_s14 + $0xb8] sm:$0xff]  ;;  %v334_v39 = vshrl.u32 %v4959_v35, 7 }
  0x23   : > { %v293_v49 = vpack.c.bf16 %v241_v48, %v240_v47  ;;  %v294_v52 = vpack.c.bf16 %v243_v51, %v242_v50  ;;  %v244_v53 = vld [vmem:[%s3413_s14 + $0xc0] sm:$0xff]  ;;  %v245_v54 = vld [vmem:[%s3413_s14 + $0xc8] sm:$0xff]  ;;  %v246_v56 = vld [vmem:[%s3413_s14 + $0xd0] sm:$0xff] }
  0x24   : > { %432 = vmatpush1.bf16.msra.mxu0 %v3200_v10  ;;  %v295_v55 = vpack.c.bf16 %v245_v54, %v244_v53  ;;  %v247_v57 = vld [vmem:[%s3413_s14 + $0xd8] sm:$0xff]  ;;  %v248_v59 = vld [vmem:[%s3413_s14 + $0xe0] sm:$0xff]  ;;  %v249_v60 = vld [vmem:[%s3413_s14 + $0xe8] sm:$0xff]  ;;  %v335_v44 = vsub.s32 0, %v334_v39 }
  0x25   : > { %433 = vmatprep.subr.bf16.mxu0 %v3201_v11  ;;  %v296_v58 = vpack.c.bf16 %v247_v57, %v246_v56  ;;  %v297_v61 = vpack.c.bf16 %v249_v60, %v248_v59  ;;  %v250_v62 = vld [vmem:[%s3413_s14 + $0xf0] sm:$0xff]  ;;  %v251_v63 = vld [vmem:[%s3413_s14 + $0xf8] sm:$0xff]  ;;  %v252_v1 = vld [vmem:[%s3413_s14 + $0x100] sm:$0xff] }
  0x26   : > { %v298_v0 = vpack.c.bf16 %v251_v63, %v250_v62  ;;  %v253_v3 = vld [vmem:[%s3413_s14 + $0x108] sm:$0xff]  ;;  %v254_v5 = vld [vmem:[%s3413_s14 + $0x110] sm:$0xff]  ;;  %v255_v6 = vld [vmem:[%s3413_s14 + $0x118] sm:$0xff] }
  0x27   : > { %v299_v4 = vpack.c.bf16 %v253_v3, %v252_v1  ;;  %v300_v7 = vpack.c.bf16 %v255_v6, %v254_v5  ;;  %v256_v8 = vld [vmem:[%s3413_s14 + $0x120] sm:$0xff]  ;;  %v257_v9 = vld [vmem:[%s3413_s14 + $0x128] sm:$0xff]  ;;  %v258_v11 = vld [vmem:[%s3413_s14 + $0x130] sm:$0xff] }
  0x28   : > { %434 = vmatpush1.bf16.msra.mxu0 %v3203_v12  ;;  %v301_v10 = vpack.c.bf16 %v257_v9, %v256_v8  ;;  %v259_v12 = vld [vmem:[%s3413_s14 + $0x138] sm:$0xff]  ;;  %v262_v17 = vld [vmem:[%s3413_s14 + $0x150] sm:$0xff]  ;;  %v264_v20 = vld [vmem:[%s3413_s14 + $0x160] sm:$0xff] }
  0x29   : > { %435 = vmatprep.subr.bf16.mxu0 %v3204_v13  ;;  %v302_v13 = vpack.c.bf16 %v259_v12, %v258_v11  ;;  %v263_v18 = vld [vmem:[%s3413_s14 + $0x158] sm:$0xff]  ;;  %v265_v21 = vld [vmem:[%s3413_s14 + $0x168] sm:$0xff]  ;;  %v266_v23 = vld [vmem:[%s3413_s14 + $0x170] sm:$0xff] }
  0x2a   : > { %v267_v24 = vld [vmem:[%s3413_s14 + $0x178] sm:$0xff]  ;;  %v268_v26 = vld [vmem:[%s3413_s14 + $0x180] sm:$0xff]  ;;  %v269_v27 = vld [vmem:[%s3413_s14 + $0x188] sm:$0xff] }
  0x2b   : > { %v270_v29 = vld [vmem:[%s3413_s14 + $0x190] sm:$0xff]  ;;  %v271_v30 = vld [vmem:[%s3413_s14 + $0x198] sm:$0xff]  ;;  %v272_v32 = vld [vmem:[%s3413_s14 + $0x1a0] sm:$0xff] }
  0x2c   : > { %436 = vmatpush1.bf16.msra.mxu0 %v3206_v14  ;;  %v260_v14 = vld [vmem:[%s3413_s14 + $0x140] sm:$0xff]  ;;  %v273_v33 = vld [vmem:[%s3413_s14 + $0x1a8] sm:$0xff]  ;;  %v274_v36 = vld [vmem:[%s3413_s14 + $0x1b0] sm:$0xff] }
  0x2d   : > { %437 = vmatprep.subr.bf16.mxu0 %v3207_v15  ;;  %v261_v15 = vld [vmem:[%s3413_s14 + $0x148] sm:$0xff]  ;;  %v331_v45 = vld [vmem:[%s4956_s2] sm:$0x3]  ;;  %v278_v59 = vld [vmem:[%s3413_s14 + $0x1d0] sm:$0xff] }
  0x2e   : > { %v276_v47 = vld [vmem:[%s3413_s14 + $0x1c0] sm:$0xff]  ;;  %v277_v48 = vld [vmem:[%s3413_s14 + $0x1c8] sm:$0xff]  ;;  %v3518_v50 = vrot.slane %v331_v45, %v335_v44  ;;  %v279_v60 = vld [vmem:[%s3413_s14 + $0x1d8] sm:$0xff] }
  0x2f   : > { %v280_v9 = vld [vmem:[%s3413_s14 + $0x1e0] sm:$0xff] }
  0x30   : > { %438 = vmatpush1.bf16.msra.mxu0 %v3209_v16  ;;  %v303_v16 = vpack.c.bf16 %v261_v15, %v260_v14 }
  0x33   : > { %456 = vmatmul.mubr.bf16.vlgmr.msra.gmra.mrb[0].mxu0 %v283_v19  ;;  %v304_v19 = vpack.c.bf16 %v263_v18, %v262_v17 }
  0x34   : > { %465 = vmatprep.mubr.bf16.mxu0 %v3302_v2 }
  0x3b   : > { %466 = vmatmul.mubr.bf16.gmra.mrb[4].mxu0 %v284_v22  ;;  %v305_v22 = vpack.c.bf16 %v265_v21, %v264_v20 }
  0x3c   : > { %475 = vmatprep.mubr.bf16.mxu0 %v3302_v2 }
  0x43   : > { %476 = vmatmul.mubr.bf16.gmra.mrb[8].mxu0 %v285_v25  ;;  %v306_v25 = vpack.c.bf16 %v267_v24, %v266_v23 }
  0x44   : > { %485 = vmatprep.mubr.bf16.mxu0 %v3302_v2 }
  0x4b   : > { %486 = vmatmul.mubr.bf16.gmra.mrb[12].mxu0 %v286_v28  ;;  %v307_v28 = vpack.c.bf16 %v269_v27, %v268_v26 }
  0x4c   : > { %495 = vmatprep.mubr.bf16.mxu0 %v3302_v2 }
  0x53   : > { %496 = vmatmul.mubr.bf16.gmra.mrb[16].mxu0 %v287_v31  ;;  %v308_v31 = vpack.c.bf16 %v271_v30, %v270_v29 }
  0x54   : > { %505 = vmatprep.mubr.bf16.mxu0 %v3302_v2 }
  0x5b   : > { %506 = vmatmul.mubr.bf16.gmra.mrb[20].mxu0 %v288_v34  ;;  %v309_v34 = vpack.c.bf16 %v273_v33, %v272_v32 }
  0x5c   : > { %515 = vmatprep.mubr.bf16.mxu0 %v3302_v2 }
  0x63   : > { %516 = vmatmul.mubr.bf16.gmra.mrb[24].mxu0 %v289_v37  ;;  %v275_v37 = vld [vmem:[%s3413_s14 + $0x1b8] sm:$0xff] }
  0x64   : > { %525 = vmatprep.mubr.bf16.mxu0 %v3302_v2  ;;  %v310_v41 = vpack.c.bf16 %v275_v37, %v274_v36 }
  0x6b   : > { %526 = vmatmul.mubr.bf16.gmra.mrb[28].mxu0 %v290_v40 }
  0x6c   : > { %535 = vmatprep.mubr.bf16.mxu0 %v3302_v2 }
  0x73   : > { %536 = vmatmul.mubr.bf16.gmra.mrb[32].mxu0 %v291_v43 }
  0x74   : > { %545 = vmatprep.mubr.bf16.mxu0 %v3302_v2 }
  0x7b   : > { %546 = vmatmul.mubr.bf16.gmra.mrb[36].mxu0 %v292_v46  ;;  %v339_v46 = vsub.s32 1, %v334_v39 }
  0x7c   : > { %555 = vmatprep.mubr.bf16.mxu0 %v3302_v2 }
  0x7d   : > { %v3522_v53 = vrot.slane %v331_v45, %v339_v46 }
  0x83   : > { %556 = vmatmul.mubr.bf16.gmra.mrb[40].mxu0 %v293_v49 }
  0x84   : > { %565 = vmatprep.mubr.bf16.mxu0 %v3302_v2 }
  0x8b   : > { %566 = vmatmul.mubr.bf16.gmra.mrb[44].mxu0 %v294_v52  ;;  %v311_v52 = vpack.c.bf16 %v277_v48, %v276_v47 }
  0x8c   : > { %575 = vmatprep.mubr.bf16.mxu0 %v3302_v2 }
  0x93   : > { %576 = vmatmul.mubr.bf16.gmra.mrb[48].mxu0 %v295_v55 }
  0x94   : > { %585 = vmatprep.mubr.bf16.mxu0 %v3302_v2 }
  0x9b   : > { %586 = vmatmul.mubr.bf16.gmra.mrb[52].mxu0 %v296_v58 }
  0x9c   : > { %595 = vmatprep.mubr.bf16.mxu0 %v3302_v2 }
  0xa3   : > { %596 = vmatmul.mubr.bf16.gmra.mrb[56].mxu0 %v297_v61 }
  0xa4   : > { %605 = vmatprep.mubr.bf16.mxu0 %v3302_v2 }
  0xab   : > { %606 = vmatmul.mubr.bf16.gmra.mrb[60].mxu0 %v298_v0  ;;  %v312_v0 = vpack.c.bf16 %v279_v60, %v278_v59 }
  0xac   : > { %615 = vmatprep.mubr.bf16.mxu0 %v3302_v2 }
  0xb3   : > { %616 = vmatmul.mubr.bf16.gmra.mrb[64].mxu0 %v299_v4 }
  0xb4   : > { %625 = vmatprep.mubr.bf16.mxu0 %v3302_v2 }
  0xbb   : > { %626 = vmatmul.mubr.bf16.gmra.mrb[68].mxu0 %v300_v7 }
  0xbc   : > { %635 = vmatprep.mubr.bf16.mxu0 %v3302_v2 }
  0xc3   : > { %636 = vmatmul.mubr.bf16.gmra.mrb[72].mxu0 %v301_v10  ;;  %v281_v10 = vld [vmem:[%s3413_s14 + $0x1e8] sm:$0xff] }
  0xc4   : > { %645 = vmatprep.mubr.bf16.mxu0 %v3302_v2  ;;  %v313_v14 = vpack.c.bf16 %v281_v10, %v280_v9 }
  0xcb   : > { %646 = vmatmul.mubr.bf16.gmra.mrb[76].mxu0 %v302_v13 }
  0xcc   : > { %655 = vmatprep.mubr.bf16.mxu0 %v3302_v2 }
  0xd3   : > { %656 = vmatmul.mubr.bf16.gmra.mrb[80].mxu0 %v303_v16 }
  0xd4   : > { %665 = vmatprep.mubr.bf16.mxu0 %v3302_v2 }
  0xdb   : > { %666 = vmatmul.mubr.bf16.gmra.mrb[84].mxu0 %v304_v19 }
  0xdc   : > { %675 = vmatprep.mubr.bf16.mxu0 %v3302_v2 }
  0xe3   : > { %676 = vmatmul.mubr.bf16.gmra.mrb[88].mxu0 %v305_v22  ;;  %v282_v22 = vld [vmem:[%s3413_s14 + $0x1f0] sm:$0xff] }
  0xe4   : > { %685 = vmatprep.mubr.bf16.mxu0 %v3302_v2  ;;  %v314_v26 = vpack.c.bf16 %v282_v22, %v282_v22 }
  0xeb   : > { %686 = vmatmul.mubr.bf16.gmra.mrb[92].mxu0 %v306_v25 }
  0xec   : > { %695 = vmatprep.mubr.bf16.mxu0 %v3302_v2 }
  0xf3   : > { %696 = vmatmul.mubr.bf16.gmra.mrb[96].mxu0 %v307_v28 }
  0xf4   : > { %705 = vmatprep.mubr.bf16.mxu0 %v3302_v2 }
  0xfb   : > { %706 = vmatmul.mubr.bf16.gmra.mrb[100].mxu0 %v308_v31 }
  0xfc   : > { %715 = vmatprep.mubr.bf16.mxu0 %v3302_v2 }
 0x103   : > { %716 = vmatmul.mubr.bf16.gmra.mrb[104].mxu0 %v309_v34 }
 0x104   : > { %725 = vmatprep.mubr.bf16.mxu0 %v3302_v2 }
 0x106   : > { %v3501_v38 = vpop.f32.mrb[0].mxu0 }
 0x107   : > { %v3504_v40 = vpop.f32.mrb[1].mxu0 }
 0x108   : > { %v3506_v42 = vpop.f32.mrb[2].mxu0 }
 0x109   : > { %4994 = vst [vmem:[#allocation3_spill] sm:$0xff] %v3506_v42  ;;  %v3508_v43 = vpop.f32.mrb[3].mxu0 }
 0x10a   : > { %4995 = vst [vmem:[#allocation4_spill] sm:$0xff] %v3508_v43 }
 0x10b   : > { %726 = vmatmul.mubr.bf16.gmra.mrb[108].mxu0 %v310_v41 }
 0x10c   : > { %735 = vmatprep.mubr.bf16.mxu0 %v3302_v2 }
 0x10e   : > { %v3516_v49 = vpop.f32.mrb[4].mxu0 }
 0x10f   : > { %4996 = vst [vmem:[#allocation5_spill] sm:$0xff] %v3516_v49  ;;  %v3520_v51 = vpop.f32.mrb[5].mxu0  ;;  %v3303_v49 = vmov 0.0|0.0  }
 0x110   : > { %4997 = vst [vmem:[#allocation6_spill] sm:$0xff] %v3520_v51  ;;  %v471_v54 = vpop.f32.mrb[6].mxu0  ;;  %3061 = vmatprep.subr.bf16.mxu1 %v3303_v49  ;;  %3013 = vmatprep.subr.bf16.mxu0 %v3303_v49 }
 0x111   : > { %v3525_v55 = vadd.f32 %v471_v54, %v3518_v50  ;;  %v473_v56 = vpop.f32.mrb[7].mxu0 }
 0x112   : > { %v3528_v57 = vadd.f32 %v473_v56, %v3522_v53 }
 0x113   : > { %736 = vmatmul.mubr.bf16.gmra.mrb[112].mxu0 %v311_v52 }
 0x114   : > { %v783_v58 = vmax.f32 %v3525_v55, %v3528_v57  ;;  %745 = vmatprep.mubr.bf16.mxu0 %v3302_v2 }
 0x116   : > { %v477_v61 = vpop.f32.mrb[8].mxu0  ;;  %784 = vmax.xlane.f32.xlu0 %v783_v58 }
 0x117   : > { %v3536_v62 = vadd.f32 %v477_v61, %v3518_v50  ;;  %v479_v63 = vpop.f32.mrb[9].mxu0 }
 0x118   : > { %v3539_v1 = vadd.f32 %v479_v63, %v3522_v53  ;;  %v481_v3 = vpop.f32.mrb[10].mxu0 }
 0x119   : > { %v3542_v4 = vadd.f32 %v481_v3, %v3518_v50  ;;  %v483_v5 = vpop.f32.mrb[11].mxu0 }
 0x11a   : > { %v3545_v6 = vadd.f32 %v483_v5, %v3522_v53  ;;  %v786_v7 = vmax.f32 %v3536_v62, %v3539_v1 }
 0x11b   : > { %746 = vmatmul.mubr.bf16.gmra.mrb[116].mxu0 %v312_v0 }
 0x11c   : > { %787 = vmax.xlane.f32.xlu0 %v786_v7  ;;  %v789_v8 = vmax.f32 %v3542_v4, %v3545_v6  ;;  %755 = vmatprep.mubr.bf16.mxu0 %v3302_v2 }
 0x11e   : > { %v487_v11 = vpop.f32.mrb[12].mxu0  ;;  %790 = vmax.xlane.f32.xlu1 %v789_v8 }
 0x11f   : > { %v3555_v12 = vadd.f32 %v487_v11, %v3518_v50  ;;  %v489_v13 = vpop.f32.mrb[13].mxu0 }
 0x120   : > { %v3558_v15 = vadd.f32 %v489_v13, %v3522_v53  ;;  %v491_v16 = vpop.f32.mrb[14].mxu0 }
 0x121   : > { %v3561_v17 = vadd.f32 %v491_v16, %v3518_v50  ;;  %v493_v18 = vpop.f32.mrb[15].mxu0 }
 0x122   : > { %v3564_v19 = vadd.f32 %v493_v18, %v3522_v53  ;;  %v792_v20 = vmax.f32 %v3555_v12, %v3558_v15 }
 0x123   : > { %756 = vmatmul.mubr.bf16.gmra.mrb[120].mxu0 %v313_v14 }
 0x124   : > { %793 = vmax.xlane.f32.xlu1 %v792_v20  ;;  %v795_v21 = vmax.f32 %v3561_v17, %v3564_v19  ;;  %765 = vmatprep.mubr.bf16.mxu0 %v3302_v2 }
 0x126   : > { %v497_v23 = vpop.f32.mrb[16].mxu0  ;;  %796 = vmax.xlane.f32.xlu0 %v795_v21 }
 0x127   : > { %v3573_v24 = vadd.f32 %v497_v23, %v3518_v50  ;;  %v499_v25 = vpop.f32.mrb[17].mxu0 }
 0x128   : > { %v3576_v27 = vadd.f32 %v499_v25, %v3522_v53  ;;  %v501_v28 = vpop.f32.mrb[18].mxu0 }
 0x129   : > { %v3579_v29 = vadd.f32 %v501_v28, %v3518_v50  ;;  %v503_v30 = vpop.f32.mrb[19].mxu0 }
 0x12a   : > { %v3582_v31 = vadd.f32 %v503_v30, %v3522_v53  ;;  %v798_v2 = vmax.f32 %v3573_v24, %v3576_v27 }
 0x12b   : > { %766 = vmatmul.mubr.bf16.gmra.mrb[124].mxu0 %v314_v26 }
 0x12c   : > { %799 = vmax.xlane.f32.xlu1 %v798_v2  ;;  %v801_v32 = vmax.f32 %v3579_v29, %v3582_v31 }
 0x12e   : > { %v507_v33 = vpop.f32.mrb[20].mxu0  ;;  %802 = vmax.xlane.f32.xlu0 %v801_v32 }
 0x12f   : > { %v3589_v34 = vadd.f32 %v507_v33, %v3518_v50  ;;  %v509_v36 = vpop.f32.mrb[21].mxu0 }
 0x130   : > { %v3592_v37 = vadd.f32 %v509_v36, %v3522_v53  ;;  %v511_v39 = vpop.f32.mrb[22].mxu0 }
 0x131   : > { %v3595_v41 = vadd.f32 %v511_v39, %v3518_v50  ;;  %v513_v44 = vpop.f32.mrb[23].mxu0 }
 0x132   : > { %v3598_v45 = vadd.f32 %v513_v44, %v3522_v53  ;;  %v804_v46 = vmax.f32 %v3589_v34, %v3592_v37 }
 0x134   : > { %805 = vmax.xlane.f32.xlu1 %v804_v46  ;;  %v807_v47 = vmax.f32 %v3595_v41, %v3598_v45 }
 0x136   : > { %v517_v48 = vpop.f32.mrb[24].mxu0  ;;  %808 = vmax.xlane.f32.xlu0 %v807_v47 }
 0x137   : > { %v3605_v52 = vadd.f32 %v517_v48, %v3518_v50  ;;  %v519_v54 = vpop.f32.mrb[25].mxu0  ;;  %v3663_v48 = vadd.f32 %v3501_v38, %v3518_v50 }
 0x138   : > { %v3608_v56 = vadd.f32 %v519_v54, %v3522_v53  ;;  %v521_v58 = vpop.f32.mrb[26].mxu0  ;;  %v3667_v54 = vadd.f32 %v3504_v40, %v3522_v53 }
 0x139   : > { %v3611_v59 = vadd.f32 %v521_v58, %v3518_v50  ;;  %v523_v60 = vpop.f32.mrb[27].mxu0  ;;  %4998 = vst [vmem:[#allocation7_spill] sm:$0xff] %v3663_v48 }
 0x13a   : > { %v3614_v61 = vadd.f32 %v523_v60, %v3522_v53  ;;  %v810_v63 = vmax.f32 %v3605_v52, %v3608_v56  ;;  %4999 = vst [vmem:[#allocation8_spill] sm:$0xff] %v3667_v54  ;;  %v774_v38 = vmax.f32 %v3663_v48, %v3667_v54 }
 0x13c   : > { %811 = vmax.xlane.f32.xlu1 %v810_v63  ;;  %v813_v0 = vmax.f32 %v3611_v59, %v3614_v61 }
 0x13e   : > { %v527_v3 = vpop.f32.mrb[28].mxu0  ;;  %814 = vmax.xlane.f32.xlu0 %v813_v0 }
 0x13f   : > { %v3621_v5 = vadd.f32 %v527_v3, %v3518_v50  ;;  %v529_v7 = vpop.f32.mrb[29].mxu0 }
 0x140   : > { %v3624_v8 = vadd.f32 %v529_v7, %v3522_v53  ;;  %v531_v9 = vpop.f32.mrb[30].mxu0 }
 0x141   : > { %v3627_v10 = vadd.f32 %v531_v9, %v3518_v50  ;;  %v533_v11 = vpop.f32.mrb[31].mxu0 }
 0x142   : > { %v3630_v13 = vadd.f32 %v533_v11, %v3522_v53  ;;  %v816_v14 = vmax.f32 %v3621_v5, %v3624_v8 }
 0x144   : > { %817 = vmax.xlane.f32.xlu1 %v816_v14  ;;  %v819_v16 = vmax.f32 %v3627_v10, %v3630_v13 }
 0x146   : > { %v537_v18 = vpop.f32.mrb[32].mxu0  ;;  %820 = vmax.xlane.f32.xlu0 %v819_v16 }
 0x147   : > { %v3637_v20 = vadd.f32 %v537_v18, %v3518_v50  ;;  %v539_v21 = vpop.f32.mrb[33].mxu0 }
 0x148   : > { %v3640_v22 = vadd.f32 %v539_v21, %v3522_v53  ;;  %v541_v23 = vpop.f32.mrb[34].mxu0 }
 0x149   : > { %v3643_v25 = vadd.f32 %v541_v23, %v3518_v50  ;;  %v543_v26 = vpop.f32.mrb[35].mxu0 }
 0x14a   : > { %v3646_v28 = vadd.f32 %v543_v26, %v3522_v53  ;;  %v822_v30 = vmax.f32 %v3637_v20, %v3640_v22 }
 0x14c   : > { %823 = vmax.xlane.f32.xlu1 %v822_v30  ;;  %v825_v2 = vmax.f32 %v3643_v25, %v3646_v28 }
 0x14e   : > { %v547_v32 = vpop.f32.mrb[36].mxu0  ;;  %826 = vmax.xlane.f32.xlu0 %v825_v2 }
 0x14f   : > { %v3653_v33 = vadd.f32 %v547_v32, %v3518_v50  ;;  %v549_v36 = vpop.f32.mrb[37].mxu0 }
 0x150   : > { %v3656_v39 = vadd.f32 %v549_v36, %v3522_v53  ;;  %v551_v44 = vpop.f32.mrb[38].mxu0 }
 0x151   : > { %v3659_v46 = vadd.f32 %v551_v44, %v3518_v50  ;;  %v553_v47 = vpop.f32.mrb[39].mxu0 }
 0x152   : > { %v3670_v58 = vadd.f32 %v553_v47, %v3522_v53  ;;  %v828_v60 = vmax.f32 %v3653_v33, %v3656_v39 }
 0x154   : > { %829 = vmax.xlane.f32.xlu1 %v828_v60  ;;  %v831_v63 = vmax.f32 %v3659_v46, %v3670_v58 }
 0x156   : > { %v557_v0 = vpop.f32.mrb[40].mxu0  ;;  %832 = vmax.xlane.f32.xlu0 %v831_v63 }
 0x157   : > { %v3679_v3 = vadd.f32 %v557_v0, %v3518_v50  ;;  %v559_v40 = vpop.f32.mrb[41].mxu0 }
 0x158   : > { %v3682_v7 = vadd.f32 %v559_v40, %v3522_v53  ;;  %v561_v9 = vpop.f32.mrb[42].mxu0  ;;  %775 = vmax.xlane.f32.xlu1 %v774_v38 }
 0x159   : > { %v3685_v11 = vadd.f32 %v561_v9, %v3518_v50  ;;  %v563_v14 = vpop.f32.mrb[43].mxu0 }
 0x15a   : > { %v3688_v16 = vadd.f32 %v563_v14, %v3522_v53  ;;  %v834_v18 = vmax.f32 %v3679_v3, %v3682_v7 }
 0x15c   : > { %835 = vmax.xlane.f32.xlu1 %v834_v18  ;;  %v837_v21 = vmax.f32 %v3685_v11, %v3688_v16 }
 0x15e   : > { %v567_v23 = vpop.f32.mrb[44].mxu0  ;;  %838 = vmax.xlane.f32.xlu0 %v837_v21 }
 0x15f   : > { %v3695_v26 = vadd.f32 %v567_v23, %v3518_v50  ;;  %v569_v30 = vpop.f32.mrb[45].mxu0 }
 0x160   : > { %v3698_v2 = vadd.f32 %v569_v30, %v3522_v53  ;;  %v571_v32 = vpop.f32.mrb[46].mxu0 }
 0x161   : > { %v573_v36 = vpop.f32.mrb[47].mxu0  ;;  %v3701_v44 = vadd.f32 %v571_v32, %v3518_v50 }
 0x162   : > { %v3704_v47 = vadd.f32 %v573_v36, %v3522_v53  ;;  %v840_v60 = vmax.f32 %v3695_v26, %v3698_v2 }
 0x164   : > { %841 = vmax.xlane.f32.xlu1 %v840_v60  ;;  %v843_v0 = vmax.f32 %v3701_v44, %v3704_v47 }
 0x166   : > { %v577_v63 = vpop.f32.mrb[48].mxu0 }
 0x167   : > { %v3711_v38 = vadd.f32 %v577_v63, %v3518_v50  ;;  %v579_v40 = vpop.f32.mrb[49].mxu0 }
 0x168   : > { %v3714_v9 = vadd.f32 %v579_v40, %v3522_v53  ;;  %v581_v14 = vpop.f32.mrb[50].mxu0  ;;  %844 = vmax.xlane.f32.xlu1 %v843_v0 }
 0x169   : > { %v583_v18 = vpop.f32.mrb[51].mxu0  ;;  %v3717_v21 = vadd.f32 %v581_v14, %v3518_v50 }
 0x16a   : > { %v3720_v23 = vadd.f32 %v583_v18, %v3522_v53  ;;  %v846_v30 = vmax.f32 %v3711_v38, %v3714_v9 }
 0x16c   : > { %847 = vmax.xlane.f32.xlu1 %v846_v30  ;;  %v849_v36 = vmax.f32 %v3717_v21, %v3720_v23 }
 0x16e   : > { %v587_v32 = vpop.f32.mrb[52].mxu0 }
 0x16f   : > { %v3727_v60 = vadd.f32 %v587_v32, %v3518_v50  ;;  %v589_v63 = vpop.f32.mrb[53].mxu0 }
 0x170   : > { %v3730_v0 = vadd.f32 %v589_v63, %v3522_v53  ;;  %v591_v40 = vpop.f32.mrb[54].mxu0  ;;  %850 = vmax.xlane.f32.xlu1 %v849_v36  ;;  %v1787_v63 = vld [vmem:[%s4957_s3] sm:$0xff]  ;;  %v1788_v36 = vld [vmem:[%s4957_s3 + $0x8] sm:$0xff] }
 0x171   : > { %5000 = vst [vmem:[#allocation9_spill] sm:$0xff] %v3727_v60  ;;  %v593_v14 = vpop.f32.mrb[55].mxu0  ;;  %v3733_v18 = vadd.f32 %v591_v40, %v3518_v50  ;;  %v3014_v48 = vpack.c.bf16 %v1788_v36, %v1787_v63  ;;  %v1790_v36 = vld [vmem:[%s4957_s3 + $0x18] sm:$0xff] }
 0x172   : > { %5001 = vst [vmem:[#allocation10_spill] sm:$0xff] %v3730_v0  ;;  %v3736_v35 = vadd.f32 %v593_v14, %v3522_v53  ;;  %v852_v30 = vmax.f32 %v3727_v60, %v3730_v0 }
 0x173   : > { %5002 = vst [vmem:[#allocation11_spill] sm:$0xff] %v3733_v18  ;;  %3077 = vmatpush1.bf16.msra.mxu1 %v3014_v48  ;;  %3015 = vmatpush1.bf16.msra.mxu0 %v3014_v48 }
 0x174   : > { %5003 = vst [vmem:[#allocation12_spill] sm:$0xff] %v3736_v35  ;;  %853 = vmax.xlane.f32.xlu1 %v852_v30  ;;  %v855_v32 = vmax.f32 %v3733_v18, %v3736_v35  ;;  %3062 = vmatprep.subr.bf16.mxu1 %v3303_v49 }
 0x175   : > { %3016 = vmatprep.subr.bf16.mxu0 %v3303_v49 }
 0x176   : > { %v597_v54 = vpop.f32.mrb[56].mxu0 }
 0x177   : > { %v3749_v40 = vadd.f32 %v597_v54, %v3518_v50  ;;  %v599_v14 = vpop.f32.mrb[57].mxu0 }
 0x178   : > { %v3752_v51 = vadd.f32 %v599_v14, %v3522_v53  ;;  %v601_v30 = vpop.f32.mrb[58].mxu0  ;;  %856 = vmax.xlane.f32.xlu1 %v855_v32  ;;  %v1789_v32 = vld [vmem:[%s4957_s3 + $0x10] sm:$0xff] }
 0x179   : > { %5004 = vst [vmem:[#allocation13_spill] sm:$0xff] %v3749_v40  ;;  %v603_v43 = vpop.f32.mrb[59].mxu0  ;;  %v3757_v42 = vadd.f32 %v601_v30, %v3518_v50  ;;  %v3017_v14 = vpack.c.bf16 %v1790_v36, %v1789_v32 }
 0x17a   : > { %5005 = vst [vmem:[#allocation14_spill] sm:$0xff] %v3752_v51  ;;  %v3760_v54 = vadd.f32 %v603_v43, %v3522_v53  ;;  %v858_v63 = vmax.f32 %v3749_v40, %v3752_v51  ;;  %v1791_v51 = vld [vmem:[%s4957_s3 + $0x20] sm:$0xff]  ;;  %v1792_v40 = vld [vmem:[%s4957_s3 + $0x28] sm:$0xff] }
 0x17b   : > { %5006 = vst [vmem:[#allocation15_spill] sm:$0xff] %v3757_v42  ;;  %3078 = vmatpush1.bf16.msra.mxu1 %v3017_v14  ;;  %3018 = vmatpush1.bf16.msra.mxu0 %v3017_v14  ;;  %v3020_v32 = vpack.c.bf16 %v1792_v40, %v1791_v51  ;;  %v1793_v51 = vld [vmem:[%s4957_s3 + $0x30] sm:$0xff]  ;;  %v1794_v40 = vld [vmem:[%s4957_s3 + $0x38] sm:$0xff] }
 0x17c   : > { %5007 = vst [vmem:[#allocation16_spill] sm:$0xff] %v3760_v54  ;;  %859 = vmax.xlane.f32.xlu1 %v858_v63  ;;  %v861_v30 = vmax.f32 %v3757_v42, %v3760_v54  ;;  %3063 = vmatprep.subr.bf16.mxu1 %v3303_v49 }
 0x17d   : > { %3019 = vmatprep.subr.bf16.mxu0 %v3303_v49 }
 0x17e   : > { %v607_v43 = vpop.f32.mrb[60].mxu0 }
 0x17f   : > { %v3782_v48 = vadd.f32 %v607_v43, %v3518_v50  ;;  %v609_v63 = vpop.f32.mrb[61].mxu0  ;;  %3079 = vmatpush1.bf16.msra.mxu1 %v3020_v32  ;;  %3021 = vmatpush1.bf16.msra.mxu0 %v3020_v32  ;;  %v3023_v43 = vpack.c.bf16 %v1794_v40, %v1793_v51 }
 0x180   : > { %v3786_v36 = vadd.f32 %v609_v63, %v3522_v53  ;;  %v611_v54 = vpop.f32.mrb[62].mxu0  ;;  %862 = vmax.xlane.f32.xlu1 %v861_v30  ;;  %3064 = vmatprep.subr.bf16.mxu1 %v3303_v49  ;;  %v1795_v30 = vld [vmem:[%s4957_s3 + $0x40] sm:$0xff]  ;;  %v1796_v63 = vld [vmem:[%s4957_s3 + $0x48] sm:$0xff] }
 0x181   : > { %5008 = vst [vmem:[#allocation17_spill] sm:$0xff] %v3782_v48  ;;  %v613_v42 = vpop.f32.mrb[63].mxu0  ;;  %v3789_v35 = vadd.f32 %v611_v54, %v3518_v50  ;;  %3022 = vmatprep.subr.bf16.mxu0 %v3303_v49  ;;  %v3026_v51 = vpack.c.bf16 %v1796_v63, %v1795_v30  ;;  %v1799_v63 = vld [vmem:[%s4957_s3 + $0x60] sm:$0xff] }
 0x182   : > { %5009 = vst [vmem:[#allocation18_spill] sm:$0xff] %v3786_v36  ;;  %v3792_v18 = vadd.f32 %v613_v42, %v3522_v53  ;;  %v864_v14 = vmax.f32 %v3782_v48, %v3786_v36 }
 0x183   : > { %5010 = vst [vmem:[#allocation19_spill] sm:$0xff] %v3789_v35  ;;  %3080 = vmatpush1.bf16.msra.mxu1 %v3023_v43  ;;  %3024 = vmatpush1.bf16.msra.mxu0 %v3023_v43 }
 0x184   : > { %5011 = vst [vmem:[#allocation20_spill] sm:$0xff] %v3792_v18  ;;  %865 = vmax.xlane.f32.xlu1 %v864_v14  ;;  %v867_v54 = vmax.f32 %v3789_v35, %v3792_v18  ;;  %3065 = vmatprep.subr.bf16.mxu1 %v3303_v49 }
 0x185   : > { %3025 = vmatprep.subr.bf16.mxu0 %v3303_v49 }
 0x186   : > { %v617_v42 = vpop.f32.mrb[64].mxu0 }
 0x187   : > { %v3814_v32 = vadd.f32 %v617_v42, %v3518_v50  ;;  %v619_v14 = vpop.f32.mrb[65].mxu0  ;;  %3081 = vmatpush1.bf16.msra.mxu1 %v3026_v51  ;;  %v1797_v42 = vld [vmem:[%s4957_s3 + $0x50] sm:$0xff]  ;;  %3027 = vmatpush1.bf16.msra.mxu0 %v3026_v51 }
 0x188   : > { %v3818_v40 = vadd.f32 %v619_v14, %v3522_v53  ;;  %v621_v18 = vpop.f32.mrb[66].mxu0  ;;  %868 = vmax.xlane.f32.xlu1 %v867_v54  ;;  %3066 = vmatprep.subr.bf16.mxu1 %v3303_v49  ;;  %v1798_v54 = vld [vmem:[%s4957_s3 + $0x58] sm:$0xff]  ;;  %v1800_v14 = vld [vmem:[%s4957_s3 + $0x68] sm:$0xff] }
 0x189   : > { %5012 = vst [vmem:[#allocation21_spill] sm:$0xff] %v3814_v32  ;;  %v623_v35 = vpop.f32.mrb[67].mxu0  ;;  %v3821_v36 = vadd.f32 %v621_v18, %v3518_v50  ;;  %v3029_v30 = vpack.c.bf16 %v1798_v54, %v1797_v42  ;;  %3028 = vmatprep.subr.bf16.mxu0 %v3303_v49  ;;  %v3032_v42 = vpack.c.bf16 %v1800_v14, %v1799_v63  ;;  %v1803_v14 = vld [vmem:[%s4957_s3 + $0x80] sm:$0xff] }
 0x18a   : > { %5013 = vst [vmem:[#allocation22_spill] sm:$0xff] %v3818_v40  ;;  %v3824_v48 = vadd.f32 %v623_v35, %v3522_v53  ;;  %v870_v43 = vmax.f32 %v3814_v32, %v3818_v40 }
 0x18b   : > { %5014 = vst [vmem:[#allocation23_spill] sm:$0xff] %v3821_v36  ;;  %3082 = vmatpush1.bf16.msra.mxu1 %v3029_v30  ;;  %3030 = vmatpush1.bf16.msra.mxu0 %v3029_v30 }
 0x18c   : > { %5015 = vst [vmem:[#allocation24_spill] sm:$0xff] %v3824_v48  ;;  %871 = vmax.xlane.f32.xlu1 %v870_v43  ;;  %v873_v18 = vmax.f32 %v3821_v36, %v3824_v48  ;;  %3067 = vmatprep.subr.bf16.mxu1 %v3303_v49 }
 0x18d   : > { %3031 = vmatprep.subr.bf16.mxu0 %v3303_v49 }
 0x18e   : > { %v627_v35 = vpop.f32.mrb[68].mxu0 }
 0x18f   : > { %v3846_v51 = vadd.f32 %v627_v35, %v3518_v50  ;;  %v629_v43 = vpop.f32.mrb[69].mxu0  ;;  %3083 = vmatpush1.bf16.msra.mxu1 %v3032_v42  ;;  %v1801_v35 = vld [vmem:[%s4957_s3 + $0x70] sm:$0xff]  ;;  %3033 = vmatpush1.bf16.msra.mxu0 %v3032_v42 }
 0x190   : > { %v3850_v54 = vadd.f32 %v629_v43, %v3522_v53  ;;  %v631_v48 = vpop.f32.mrb[70].mxu0  ;;  %874 = vmax.xlane.f32.xlu1 %v873_v18  ;;  %3068 = vmatprep.subr.bf16.mxu1 %v3303_v49  ;;  %v1802_v18 = vld [vmem:[%s4957_s3 + $0x78] sm:$0xff]  ;;  %v1804_v43 = vld [vmem:[%s4957_s3 + $0x88] sm:$0xff] }
 0x191   : > { %5016 = vst [vmem:[#allocation25_spill] sm:$0xff] %v3846_v51  ;;  %v633_v36 = vpop.f32.mrb[71].mxu0  ;;  %v3853_v40 = vadd.f32 %v631_v48, %v3518_v50  ;;  %v3035_v63 = vpack.c.bf16 %v1802_v18, %v1801_v35  ;;  %3034 = vmatprep.subr.bf16.mxu0 %v3303_v49  ;;  %v3038_v35 = vpack.c.bf16 %v1804_v43, %v1803_v14  ;;  %v1805_v14 = vld [vmem:[%s4957_s3 + $0x90] sm:$0xff] }
 0x192   : > { %5017 = vst [vmem:[#allocation26_spill] sm:$0xff] %v3850_v54  ;;  %v3856_v32 = vadd.f32 %v633_v36, %v3522_v53  ;;  %v876_v30 = vmax.f32 %v3846_v51, %v3850_v54 }
 0x193   : > { %5018 = vst [vmem:[#allocation27_spill] sm:$0xff] %v3853_v40  ;;  %3084 = vmatpush1.bf16.msra.mxu1 %v3035_v63  ;;  %3036 = vmatpush1.bf16.msra.mxu0 %v3035_v63 }
 0x194   : > { %5019 = vst [vmem:[#allocation28_spill] sm:$0xff] %v3856_v32  ;;  %877 = vmax.xlane.f32.xlu1 %v876_v30  ;;  %v879_v36 = vmax.f32 %v3853_v40, %v3856_v32  ;;  %3069 = vmatprep.subr.bf16.mxu1 %v3303_v49  ;;  %v5022_v40 = vlaneseq }
 0x195   : > { %3037 = vmatprep.subr.bf16.mxu0 %v3303_v49 }
 0x196   : > { %v637_v48 = vpop.f32.mrb[72].mxu0  ;;  %v964_v54 = vand.u32 127, %v5022_v40  ;;  %v1806_v40 = vld [vmem:[%s4957_s3 + $0x98] sm:$0xff] }
 0x197   : > { %v3878_v42 = vadd.f32 %v637_v48, %v3518_v50  ;;  %v639_v30 = vpop.f32.mrb[73].mxu0  ;;  %3085 = vmatpush1.bf16.msra.mxu1 %v3038_v35  ;;  %3039 = vmatpush1.bf16.msra.mxu0 %v3038_v35  ;;  %v1808_v35 = vld [vmem:[%s4957_s3 + $0xa8] sm:$0xff] }
 0x198   : > { %v3882_v18 = vadd.f32 %v639_v30, %v3522_v53  ;;  %v641_v32 = vpop.f32.mrb[74].mxu0  ;;  %880 = vmax.xlane.f32.xlu1 %v879_v36  ;;  %3070 = vmatprep.subr.bf16.mxu1 %v3303_v49  ;;  %v3041_v36 = vpack.c.bf16 %v1806_v40, %v1805_v14  ;;  %v1807_v30 = vld [vmem:[%s4957_s3 + $0xa0] sm:$0xff] }
 0x199   : > { %5020 = vst [vmem:[#allocation29_spill] sm:$0xff] %v3878_v42  ;;  %v643_v51 = vpop.f32.mrb[75].mxu0  ;;  %v3886_v0 = vadd.f32 %v641_v32, %v3518_v50  ;;  %3040 = vmatprep.subr.bf16.mxu0 %v3303_v49  ;;  %v965_v32 = vadd.s32 128, %v964_v54  ;;  %v3044_v40 = vpack.c.bf16 %v1808_v35, %v1807_v30 }
 0x19a   : > { %5021 = vst [vmem:[#allocation30_spill] sm:$0xff] %v3882_v18  ;;  %v3889_v63 = vadd.f32 %v643_v51, %v3522_v53  ;;  %v882_v48 = vmax.f32 %v3878_v42, %v3882_v18  ;;  %v3917_v18 = vcvt.s32.f32 %v964_v54  ;;  %v1809_v54 = vld [vmem:[%s4957_s3 + $0xb0] sm:$0xff] }
 0x19b   : > { %5023 = vst [vmem:[#allocation31_spill] sm:$0xff] %v3886_v0  ;;  %3086 = vmatpush1.bf16.msra.mxu1 %v3041_v36  ;;  %3042 = vmatpush1.bf16.msra.mxu0 %v3041_v36  ;;  %v3919_v42 = vcvt.s32.f32 %v965_v32  ;;  %v1810_v32 = vld [vmem:[%s4957_s3 + $0xb8] sm:$0xff] }
 0x19c   : > { %5024 = vst [vmem:[#allocation32_spill] sm:$0xff] %v3889_v63  ;;  %883 = vmax.xlane.f32.xlu1 %v882_v48  ;;  %v885_v43 = vmax.f32 %v3886_v0, %v3889_v63  ;;  %3071 = vmatprep.subr.bf16.mxu1 %v3303_v49 }
 0x19d   : > { %3043 = vmatprep.subr.bf16.mxu0 %v3303_v49 }
 0x19e   : > { %v647_v51 = vpop.f32.mrb[76].mxu0 }
 0x19f   : > { %v3911_v14 = vadd.f32 %v647_v51, %v3518_v50  ;;  %v649_v48 = vpop.f32.mrb[77].mxu0  ;;  %3087 = vmatpush1.bf16.msra.mxu1 %v3044_v40  ;;  %3045 = vmatpush1.bf16.msra.mxu0 %v3044_v40  ;;  %v1811_v40 = vld [vmem:[%s4957_s3 + $0xc0] sm:$0xff] }
 0x1a0   : > { %v3915_v63 = vadd.f32 %v649_v48, %v3522_v53  ;;  %v651_v0 = vpop.f32.mrb[78].mxu0  ;;  %886 = vmax.xlane.f32.xlu1 %v885_v43  ;;  %3072 = vmatprep.subr.bf16.mxu1 %v3303_v49 }
 0x1a1   : > { %5025 = vst [vmem:[#allocation33_spill] sm:$0xff] %v3911_v14  ;;  %v653_v60 = vpop.f32.mrb[79].mxu0  ;;  %v3922_v36 = vadd.f32 %v651_v0, %v3518_v50  ;;  %v3047_v0 = vpack.c.bf16 %v1810_v32, %v1809_v54  ;;  %3046 = vmatprep.subr.bf16.mxu0 %v3303_v49 }
 0x1a2   : > { %5026 = vst [vmem:[#allocation34_spill] sm:$0xff] %v3915_v63  ;;  %v3925_v51 = vadd.f32 %v653_v60, %v3522_v53  ;;  %v888_v30 = vmax.f32 %v3911_v14, %v3915_v63 }
 0x1a3   : > { %v785_v43 = vpop.xlane.xlu0 %784  ;;  %3088 = vmatpush1.bf16.msra.mxu1 %v3047_v0  ;;  %3048 = vmatpush1.bf16.msra.mxu0 %v3047_v0 }
 0x1a4   : > { %5027 = vst [vmem:[#allocation35_spill] sm:$0xff] %v3925_v51  ;;  %889 = vmax.xlane.f32.xlu1 %v888_v30  ;;  %vm974_vm0 = vcmp.eq.f32.partialorder %v3525_v55, %v785_v43  ;;  %vm975_vm1 = vcmp.eq.f32.partialorder %v3528_v57, %v785_v43  ;;  %v891_v14 = vmax.f32 %v3922_v36, %v3925_v51  ;;  %v1812_v55 = vld [vmem:[%s4957_s3 + $0xc8] sm:$0xff] }
 0x1a5   : > { %v1100_v60 = vsel %vm974_vm0, %v3917_v18, 256.0  ;;  %v1101_v35 = vsel %vm975_vm1, %v3919_v42, 256.0  ;;  %3073 = vmatprep.subr.bf16.mxu1 %v3303_v49  ;;  %v3050_v54 = vpack.c.bf16 %v1812_v55, %v1811_v40  ;;  %3049 = vmatprep.subr.bf16.mxu0 %v3303_v49 }
 0x1a6   : > { %v657_v48 = vpop.f32.mrb[80].mxu0  ;;  %v1229_v63 = vmin.f32 %v1100_v60, %v1101_v35 }
 0x1a7   : > { %v3951_v57 = vadd.f32 %v657_v48, %v3518_v50  ;;  %v659_v30 = vpop.f32.mrb[81].mxu0  ;;  %3089 = vmatpush1.bf16.msra.mxu1 %v3050_v54  ;;  %3051 = vmatpush1.bf16.msra.mxu0 %v3050_v54 }
 0x1a8   : > { %v3955_v32 = vadd.f32 %v659_v30, %v3522_v53  ;;  %v661_v43 = vpop.f32.mrb[82].mxu0  ;;  %1230 = vmin.xlane.f32.xlu0 %v1229_v63  ;;  %892 = vmax.xlane.f32.xlu1 %v891_v14  ;;  %v1813_v63 = vld [vmem:[%s4957_s3 + $0xd0] sm:$0xff]  ;;  %v1814_v14 = vld [vmem:[%s4957_s3 + $0xd8] sm:$0xff] }
 0x1a9   : > { %v3958_v60 = vadd.f32 %v661_v43, %v3518_v50  ;;  %v663_v35 = vpop.f32.mrb[83].mxu0  ;;  %v788_v51 = vpop.xlane.xlu0 %787  ;;  %3074 = vmatprep.subr.bf16.mxu1 %v3303_v49  ;;  %v3053_v43 = vpack.c.bf16 %v1814_v14, %v1813_v63  ;;  %3052 = vmatprep.subr.bf16.mxu0 %v3303_v49 }
 0x1aa   : > { %5028 = vst [vmem:[#allocation36_spill] sm:$0xff] %v3955_v32  ;;  %v3961_v0 = vadd.f32 %v663_v35, %v3522_v53  ;;  %v894_v48 = vmax.f32 %v3951_v57, %v3955_v32  ;;  %vm976_vm2 = vcmp.eq.f32.partialorder %v3536_v62, %v788_v51  ;;  %vm977_vm3 = vcmp.eq.f32.partialorder %v3539_v1, %v788_v51 }
 0x1ab   : > { %v791_v40 = vpop.xlane.xlu1 %790  ;;  %v1102_v55 = vsel %vm976_vm2, %v3917_v18, 256.0  ;;  %v1103_v30 = vsel %vm977_vm3, %v3919_v42, 256.0  ;;  %3090 = vmatpush1.bf16.msra.mxu1 %v3053_v43  ;;  %3054 = vmatpush1.bf16.msra.mxu0 %v3053_v43 }
 0x1ac   : > { %5029 = vst [vmem:[#allocation37_spill] sm:$0xff] %v3961_v0  ;;  %895 = vmax.xlane.f32.xlu1 %v894_v48  ;;  %v1232_v62 = vmin.f32 %v1102_v55, %v1103_v30  ;;  %vm978_vm4 = vcmp.eq.f32.partialorder %v3542_v4, %v791_v40  ;;  %vm979_vm5 = vcmp.eq.f32.partialorder %v3545_v6, %v791_v40  ;;  %v1815_v4 = vld [vmem:[%s4957_s3 + $0xe0] sm:$0xff]  ;;  %v1816_v6 = vld [vmem:[%s4957_s3 + $0xe8] sm:$0xff] }
 0x1ad   : > { %v1104_v1 = vsel %vm978_vm4, %v3917_v18, 256.0  ;;  %v1105_v51 = vsel %vm979_vm5, %v3919_v42, 256.0  ;;  %v897_v32 = vmax.f32 %v3958_v60, %v3961_v0  ;;  %3075 = vmatprep.subr.bf16.mxu1 %v3303_v49  ;;  %v3056_v63 = vpack.c.bf16 %v1816_v6, %v1815_v4  ;;  %3055 = vmatprep.subr.bf16.mxu0 %v3303_v49 }
 0x1ae   : > { %v667_v35 = vpop.f32.mrb[84].mxu0  ;;  %1233 = vmin.xlane.f32.xlu0 %v1232_v62  ;;  %v1235_v55 = vmin.f32 %v1104_v1, %v1105_v51  ;;  %v1818_v1 = vld [vmem:[%s4957_s3 + $0xf8] sm:$0xff] }
 0x1af   : > { %v3991_v54 = vadd.f32 %v667_v35, %v3518_v50  ;;  %v669_v48 = vpop.f32.mrb[85].mxu0  ;;  %3091 = vmatpush1.bf16.msra.mxu1 %v3056_v63  ;;  %3057 = vmatpush1.bf16.msra.mxu0 %v3056_v63 }
 0x1b0   : > { %v3994_v14 = vadd.f32 %v669_v48, %v3522_v53  ;;  %v671_v40 = vpop.f32.mrb[86].mxu0  ;;  %898 = vmax.xlane.f32.xlu1 %v897_v32  ;;  %v1817_v32 = vld [vmem:[%s4957_s3 + $0xf0] sm:$0xff]  ;;  %3076 = vmatprep.subr.bf16.mxu1 %v3303_v49 }
 0x1b1   : > { %v3998_v30 = vadd.f32 %v671_v40, %v3518_v50  ;;  %v673_v62 = vpop.f32.mrb[87].mxu0  ;;  %v794_v0 = vpop.xlane.xlu1 %793  ;;  %v3059_v48 = vpack.c.bf16 %v1818_v1, %v1817_v32  ;;  %3058 = vmatprep.subr.bf16.mxu0 %v3303_v49 }
 0x1b2   : > { %v4001_v35 = vadd.f32 %v673_v62, %v3522_v53  ;;  %1236 = vmin.xlane.f32.xlu0 %v1235_v55  ;;  %v900_v43 = vmax.f32 %v3991_v54, %v3994_v14  ;;  %vm980_vm6 = vcmp.eq.f32.partialorder %v3555_v12, %v794_v0  ;;  %vm981_vm7 = vcmp.eq.f32.partialorder %v3558_v15, %v794_v0 }
 0x1b3   : > { %v797_v51 = vpop.xlane.xlu0 %796  ;;  %v1106_v4 = vsel %vm980_vm6, %v3917_v18, 256.0  ;;  %v1107_v6 = vsel %vm981_vm7, %v3919_v42, 256.0  ;;  %3092 = vmatpush1.bf16.msra.mxu1 %v3059_v48  ;;  %3060 = vmatpush1.bf16.msra.mxu0 %v3059_v48 }
 0x1b4   : > { %901 = vmax.xlane.f32.xlu1 %v900_v43  ;;  %v1238_v12 = vmin.f32 %v1106_v4, %v1107_v6  ;;  %vm982_vm8 = vcmp.eq.f32.partialorder %v3561_v17, %v797_v51  ;;  %vm983_vm9 = vcmp.eq.f32.partialorder %v3564_v19, %v797_v51  ;;  %v903_v55 = vmax.f32 %v3998_v30, %v4001_v35 }
 0x1b5   : > { %v1108_v15 = vsel %vm982_vm8, %v3917_v18, 256.0  ;;  %v1109_v0 = vsel %vm983_vm9, %v3919_v42, 256.0 }
 0x1b6   : > { %v677_v40 = vpop.f32.mrb[88].mxu0  ;;  %1239 = vmin.xlane.f32.xlu0 %v1238_v12  ;;  %v1241_v43 = vmin.f32 %v1108_v15, %v1109_v0 }
 0x1b7   : > { %v4024_v63 = vadd.f32 %v677_v40, %v3518_v50  ;;  %v679_v62 = vpop.f32.mrb[89].mxu0 }
 0x1b8   : > { %v4027_v17 = vadd.f32 %v679_v62, %v3522_v53  ;;  %v681_v19 = vpop.f32.mrb[90].mxu0  ;;  %904 = vmax.xlane.f32.xlu1 %v903_v55 }
 0x1b9   : > { %v4030_v32 = vadd.f32 %v681_v19, %v3518_v50  ;;  %v683_v49 = vpop.f32.mrb[91].mxu0  ;;  %v800_v1 = vpop.xlane.xlu1 %799 }
 0x1ba   : > { %v4033_v51 = vadd.f32 %v683_v49, %v3522_v53  ;;  %1242 = vmin.xlane.f32.xlu0 %v1241_v43  ;;  %v906_v4 = vmax.f32 %v4024_v63, %v4027_v17  ;;  %vm984_vm10 = vcmp.eq.f32.partialorder %v3573_v24, %v800_v1  ;;  %vm985_vm11 = vcmp.eq.f32.partialorder %v3576_v27, %v800_v1 }
 0x1bb   : > { %v803_v6 = vpop.xlane.xlu0 %802  ;;  %v1110_v48 = vsel %vm984_vm10, %v3917_v18, 256.0  ;;  %v1111_v12 = vsel %vm985_vm11, %v3919_v42, 256.0 }
 0x1bc   : > { %907 = vmax.xlane.f32.xlu1 %v906_v4  ;;  %v1244_v15 = vmin.f32 %v1110_v48, %v1111_v12  ;;  %vm986_vm12 = vcmp.eq.f32.partialorder %v3579_v29, %v803_v6  ;;  %vm987_vm13 = vcmp.eq.f32.partialorder %v3582_v31, %v803_v6  ;;  %v909_v24 = vmax.f32 %v4030_v32, %v4033_v51 }
 0x1bd   : > { %v1112_v0 = vsel %vm986_vm12, %v3917_v18, 256.0  ;;  %v1113_v40 = vsel %vm987_vm13, %v3919_v42, 256.0 }
 0x1be   : > { %v687_v55 = vpop.f32.mrb[92].mxu0  ;;  %1245 = vmin.xlane.f32.xlu0 %v1244_v15  ;;  %v1247_v29 = vmin.f32 %v1112_v0, %v1113_v40 }
 0x1bf   : > { %v4048_v27 = vadd.f32 %v687_v55, %v3518_v50  ;;  %v689_v62 = vpop.f32.mrb[93].mxu0 }
 0x1c0   : > { %v4051_v19 = vadd.f32 %v689_v62, %v3522_v53  ;;  %v691_v43 = vpop.f32.mrb[94].mxu0  ;;  %910 = vmax.xlane.f32.xlu1 %v909_v24 }
 0x1c1   : > { %v4054_v31 = vadd.f32 %v691_v43, %v3518_v50  ;;  %v693_v49 = vpop.f32.mrb[95].mxu0  ;;  %v806_v1 = vpop.xlane.xlu1 %805 }
 0x1c2   : > { %v4057_v4 = vadd.f32 %v693_v49, %v3522_v53  ;;  %1248 = vmin.xlane.f32.xlu0 %v1247_v29  ;;  %v912_v6 = vmax.f32 %v4048_v27, %v4051_v19  ;;  %vm988_vm14 = vcmp.eq.f32.partialorder %v3589_v34, %v806_v1  ;;  %vm989_vm15 = vcmp.eq.f32.partialorder %v3592_v37, %v806_v1 }
 0x1c3   : > { %v809_v48 = vpop.xlane.xlu0 %808  ;;  %v1114_v12 = vsel %vm988_vm14, %v3917_v18, 256.0  ;;  %v1115_v15 = vsel %vm989_vm15, %v3919_v42, 256.0 }
 0x1c4   : > { %913 = vmax.xlane.f32.xlu1 %v912_v6  ;;  %v1250_v0 = vmin.f32 %v1114_v12, %v1115_v15  ;;  %vm990_vm0 = vcmp.eq.f32.partialorder %v3595_v41, %v809_v48  ;;  %vm991_vm1 = vcmp.eq.f32.partialorder %v3598_v45, %v809_v48  ;;  %v915_v34 = vmax.f32 %v4054_v31, %v4057_v4 }
 0x1c5   : > { %v1116_v40 = vsel %vm990_vm0, %v3917_v18, 256.0  ;;  %v1117_v55 = vsel %vm991_vm1, %v3919_v42, 256.0 }
 0x1c6   : > { %v697_v24 = vpop.f32.mrb[96].mxu0  ;;  %1251 = vmin.xlane.f32.xlu0 %v1250_v0  ;;  %v1253_v41 = vmin.f32 %v1116_v40, %v1117_v55 }
 0x1c7   : > { %v4072_v37 = vadd.f32 %v697_v24, %v3518_v50  ;;  %v699_v62 = vpop.f32.mrb[97].mxu0 }
 0x1c8   : > { %v4075_v43 = vadd.f32 %v699_v62, %v3522_v53  ;;  %v701_v29 = vpop.f32.mrb[98].mxu0  ;;  %916 = vmax.xlane.f32.xlu1 %v915_v34 }
 0x1c9   : > { %v4078_v45 = vadd.f32 %v701_v29, %v3518_v50  ;;  %v703_v49 = vpop.f32.mrb[99].mxu0  ;;  %v812_v1 = vpop.xlane.xlu1 %811 }
 0x1ca   : > { %v4081_v6 = vadd.f32 %v703_v49, %v3522_v53  ;;  %1254 = vmin.xlane.f32.xlu0 %v1253_v41  ;;  %v918_v48 = vmax.f32 %v4072_v37, %v4075_v43  ;;  %vm992_vm2 = vcmp.eq.f32.partialorder %v3605_v52, %v812_v1  ;;  %vm993_vm3 = vcmp.eq.f32.partialorder %v3608_v56, %v812_v1 }
 0x1cb   : > { %v815_v12 = vpop.xlane.xlu0 %814  ;;  %v1118_v15 = vsel %vm992_vm2, %v3917_v18, 256.0  ;;  %v1119_v0 = vsel %vm993_vm3, %v3919_v42, 256.0 }
 0x1cc   : > { %919 = vmax.xlane.f32.xlu1 %v918_v48  ;;  %v1256_v40 = vmin.f32 %v1118_v15, %v1119_v0  ;;  %vm994_vm4 = vcmp.eq.f32.partialorder %v3611_v59, %v815_v12  ;;  %vm995_vm5 = vcmp.eq.f32.partialorder %v3614_v61, %v815_v12  ;;  %v921_v52 = vmax.f32 %v4078_v45, %v4081_v6 }
 0x1cd   : > { %v1120_v55 = vsel %vm994_vm4, %v3917_v18, 256.0  ;;  %v1121_v24 = vsel %vm995_vm5, %v3919_v42, 256.0 }
 0x1ce   : > { %v707_v34 = vpop.f32.mrb[100].mxu0  ;;  %1257 = vmin.xlane.f32.xlu0 %v1256_v40  ;;  %v1259_v59 = vmin.f32 %v1120_v55, %v1121_v24 }
 0x1cf   : > { %v4096_v56 = vadd.f32 %v707_v34, %v3518_v50  ;;  %v709_v62 = vpop.f32.mrb[101].mxu0 }
 0x1d0   : > { %v4099_v29 = vadd.f32 %v709_v62, %v3522_v53  ;;  %v711_v41 = vpop.f32.mrb[102].mxu0  ;;  %922 = vmax.xlane.f32.xlu1 %v921_v52 }
 0x1d1   : > { %v4102_v61 = vadd.f32 %v711_v41, %v3518_v50  ;;  %v713_v49 = vpop.f32.mrb[103].mxu0  ;;  %v818_v1 = vpop.xlane.xlu1 %817 }
 0x1d2   : > { %v4105_v48 = vadd.f32 %v713_v49, %v3522_v53  ;;  %1260 = vmin.xlane.f32.xlu0 %v1259_v59  ;;  %v924_v12 = vmax.f32 %v4096_v56, %v4099_v29  ;;  %vm996_vm6 = vcmp.eq.f32.partialorder %v3621_v5, %v818_v1  ;;  %vm997_vm7 = vcmp.eq.f32.partialorder %v3624_v8, %v818_v1 }
 0x1d3   : > { %v821_v15 = vpop.xlane.xlu0 %820  ;;  %v1122_v0 = vsel %vm996_vm6, %v3917_v18, 256.0  ;;  %v1123_v40 = vsel %vm997_vm7, %v3919_v42, 256.0 }
 0x1d4   : > { %925 = vmax.xlane.f32.xlu1 %v924_v12  ;;  %v1262_v55 = vmin.f32 %v1122_v0, %v1123_v40  ;;  %vm998_vm8 = vcmp.eq.f32.partialorder %v3627_v10, %v821_v15  ;;  %vm999_vm9 = vcmp.eq.f32.partialorder %v3630_v13, %v821_v15  ;;  %v927_v5 = vmax.f32 %v4102_v61, %v4105_v48 }
 0x1d5   : > { %v1124_v24 = vsel %vm998_vm8, %v3917_v18, 256.0  ;;  %v1125_v34 = vsel %vm999_vm9, %v3919_v42, 256.0 }
 0x1d6   : > { %v717_v52 = vpop.f32.mrb[104].mxu0  ;;  %1263 = vmin.xlane.f32.xlu0 %v1262_v55  ;;  %v1265_v10 = vmin.f32 %v1124_v24, %v1125_v34 }
 0x1d7   : > { %v4120_v8 = vadd.f32 %v717_v52, %v3518_v50  ;;  %v719_v62 = vpop.f32.mrb[105].mxu0 }
 0x1d8   : > { %v4123_v41 = vadd.f32 %v719_v62, %v3522_v53  ;;  %v721_v59 = vpop.f32.mrb[106].mxu0  ;;  %928 = vmax.xlane.f32.xlu1 %v927_v5 }
 0x1d9   : > { %v4126_v13 = vadd.f32 %v721_v59, %v3518_v50  ;;  %v723_v49 = vpop.f32.mrb[107].mxu0  ;;  %v824_v1 = vpop.xlane.xlu1 %823 }
 0x1da   : > { %v4129_v12 = vadd.f32 %v723_v49, %v3522_v53  ;;  %1266 = vmin.xlane.f32.xlu0 %v1265_v10  ;;  %v930_v15 = vmax.f32 %v4120_v8, %v4123_v41  ;;  %vm1000_vm10 = vcmp.eq.f32.partialorder %v3637_v20, %v824_v1  ;;  %vm1001_vm11 = vcmp.eq.f32.partialorder %v3640_v22, %v824_v1 }
 0x1db   : > { %v827_v0 = vpop.xlane.xlu0 %826  ;;  %v1126_v40 = vsel %vm1000_vm10, %v3917_v18, 256.0  ;;  %v1127_v55 = vsel %vm1001_vm11, %v3919_v42, 256.0 }
 0x1dc   : > { %931 = vmax.xlane.f32.xlu1 %v930_v15  ;;  %v1268_v24 = vmin.f32 %v1126_v40, %v1127_v55  ;;  %vm1002_vm12 = vcmp.eq.f32.partialorder %v3643_v25, %v827_v0  ;;  %vm1003_vm13 = vcmp.eq.f32.partialorder %v3646_v28, %v827_v0  ;;  %v933_v20 = vmax.f32 %v4126_v13, %v4129_v12 }
 0x1dd   : > { %v1128_v34 = vsel %vm1002_vm12, %v3917_v18, 256.0  ;;  %v1129_v52 = vsel %vm1003_vm13, %v3919_v42, 256.0 }
 0x1de   : > { %v727_v5 = vpop.f32.mrb[108].mxu0  ;;  %1269 = vmin.xlane.f32.xlu0 %v1268_v24  ;;  %v1271_v25 = vmin.f32 %v1128_v34, %v1129_v52 }
 0x1df   : > { %v4144_v22 = vadd.f32 %v727_v5, %v3518_v50  ;;  %v729_v62 = vpop.f32.mrb[109].mxu0 }
 0x1e0   : > { %v4147_v59 = vadd.f32 %v729_v62, %v3522_v53  ;;  %v731_v10 = vpop.f32.mrb[110].mxu0  ;;  %934 = vmax.xlane.f32.xlu1 %v933_v20 }
 0x1e1   : > { %v4150_v28 = vadd.f32 %v731_v10, %v3518_v50  ;;  %v733_v49 = vpop.f32.mrb[111].mxu0  ;;  %v830_v1 = vpop.xlane.xlu1 %829 }
 0x1e2   : > { %v4153_v15 = vadd.f32 %v733_v49, %v3522_v53  ;;  %1272 = vmin.xlane.f32.xlu0 %v1271_v25  ;;  %v936_v0 = vmax.f32 %v4144_v22, %v4147_v59  ;;  %vm1004_vm14 = vcmp.eq.f32.partialorder %v3653_v33, %v830_v1  ;;  %vm1005_vm15 = vcmp.eq.f32.partialorder %v3656_v39, %v830_v1 }
 0x1e3   : > { %v833_v40 = vpop.xlane.xlu0 %832  ;;  %v1130_v55 = vsel %vm1004_vm14, %v3917_v18, 256.0  ;;  %v1131_v24 = vsel %vm1005_vm15, %v3919_v42, 256.0 }
 0x1e4   : > { %937 = vmax.xlane.f32.xlu1 %v936_v0  ;;  %v1274_v34 = vmin.f32 %v1130_v55, %v1131_v24  ;;  %vm1006_vm0 = vcmp.eq.f32.partialorder %v3659_v46, %v833_v40  ;;  %vm1007_vm1 = vcmp.eq.f32.partialorder %v3670_v58, %v833_v40  ;;  %v939_v39 = vmax.f32 %v4150_v28, %v4153_v15 }
 0x1e5   : > { %v4163_v52 = vpop.xlane.xlu1 %775  ;;  %v1132_v5 = vsel %vm1006_vm0, %v3917_v18, 256.0  ;;  %v1133_v20 = vsel %vm1007_vm1, %v3919_v42, 256.0 }
 0x1e6   : > { %v737_v33 = vpop.f32.mrb[112].mxu0  ;;  %1275 = vmin.xlane.f32.xlu0 %v1274_v34  ;;  %v1277_v58 = vmin.f32 %v1132_v5, %v1133_v20 }
 0x1e7   : > { %v4170_v62 = vadd.f32 %v737_v33, %v3518_v50  ;;  %v739_v10 = vpop.f32.mrb[113].mxu0 }
 0x1e8   : > { %v4173_v25 = vadd.f32 %v739_v10, %v3522_v53  ;;  %v741_v46 = vpop.f32.mrb[114].mxu0  ;;  %940 = vmax.xlane.f32.xlu1 %v939_v39 }
 0x1e9   : > { %v4176_v49 = vadd.f32 %v741_v46, %v3518_v50  ;;  %v743_v1 = vpop.f32.mrb[115].mxu0  ;;  %v836_v0 = vpop.xlane.xlu1 %835 }
 0x1ea   : > { %v4179_v40 = vadd.f32 %v743_v1, %v3522_v53  ;;  %1278 = vmin.xlane.f32.xlu0 %v1277_v58  ;;  %v942_v55 = vmax.f32 %v4170_v62, %v4173_v25  ;;  %vm1008_vm2 = vcmp.eq.f32.partialorder %v3679_v3, %v836_v0  ;;  %vm1009_vm3 = vcmp.eq.f32.partialorder %v3682_v7, %v836_v0 }
 0x1eb   : > { %v839_v24 = vpop.xlane.xlu0 %838  ;;  %v1134_v34 = vsel %vm1008_vm2, %v3917_v18, 256.0  ;;  %v1135_v5 = vsel %vm1009_vm3, %v3919_v42, 256.0 }
 0x1ec   : > { %943 = vmax.xlane.f32.xlu1 %v942_v55  ;;  %v1280_v20 = vmin.f32 %v1134_v34, %v1135_v5  ;;  %vm1010_vm4 = vcmp.eq.f32.partialorder %v3685_v11, %v839_v24  ;;  %vm1011_vm5 = vcmp.eq.f32.partialorder %v3688_v16, %v839_v24  ;;  %v945_v3 = vmax.f32 %v4176_v49, %v4179_v40 }
 0x1ed   : > { %v1136_v33 = vsel %vm1010_vm4, %v3917_v18, 256.0  ;;  %v1137_v39 = vsel %vm1011_vm5, %v3919_v42, 256.0 }
 0x1ee   : > { %v747_v10 = vpop.f32.mrb[116].mxu0  ;;  %1281 = vmin.xlane.f32.xlu0 %v1280_v20  ;;  %v1283_v11 = vmin.f32 %v1136_v33, %v1137_v39 }
 0x1ef   : > { %v4194_v7 = vadd.f32 %v747_v10, %v3518_v50  ;;  %v749_v46 = vpop.f32.mrb[117].mxu0 }
 0x1f0   : > { %v4197_v58 = vadd.f32 %v749_v46, %v3522_v53  ;;  %v751_v1 = vpop.f32.mrb[118].mxu0  ;;  %946 = vmax.xlane.f32.xlu1 %v945_v3 }
 0x1f1   : > { %v4200_v16 = vadd.f32 %v751_v1, %v3518_v50  ;;  %v753_v0 = vpop.f32.mrb[119].mxu0  ;;  %v842_v55 = vpop.xlane.xlu1 %841 }
 0x1f2   : > { %v4203_v24 = vadd.f32 %v753_v0, %v3522_v53  ;;  %1284 = vmin.xlane.f32.xlu0 %v1283_v11  ;;  %v948_v34 = vmax.f32 %v4194_v7, %v4197_v58  ;;  %vm1012_vm6 = vcmp.eq.f32.partialorder %v3695_v26, %v842_v55  ;;  %vm1013_vm7 = vcmp.eq.f32.partialorder %v3698_v2, %v842_v55 }
 0x1f3   : > { %v1138_v5 = vsel %vm1012_vm6, %v3917_v18, 256.0  ;;  %v1139_v20 = vsel %vm1013_vm7, %v3919_v42, 256.0 }
 0x1f4   : > { %949 = vmax.xlane.f32.xlu1 %v948_v34  ;;  %v1286_v33 = vmin.f32 %v1138_v5, %v1139_v20  ;;  %v951_v3 = vmax.f32 %v4200_v16, %v4203_v24 }
 0x1f5   : > { %v845_v39 = vpop.xlane.xlu1 %844 }
 0x1f6   : > { %v757_v10 = vpop.f32.mrb[120].mxu0  ;;  %1287 = vmin.xlane.f32.xlu0 %v1286_v33  ;;  %vm1014_vm8 = vcmp.eq.f32.partialorder %v3701_v44, %v845_v39  ;;  %vm1015_vm9 = vcmp.eq.f32.partialorder %v3704_v47, %v845_v39 }
 0x1f7   : > { %v4216_v26 = vadd.f32 %v757_v10, %v3518_v50  ;;  %v759_v2 = vpop.f32.mrb[121].mxu0  ;;  %v1140_v46 = vsel %vm1014_vm8, %v3917_v18, 256.0  ;;  %v1141_v1 = vsel %vm1015_vm9, %v3919_v42, 256.0 }
 0x1f8   : > { %v4221_v11 = vadd.f32 %v759_v2, %v3522_v53  ;;  %v761_v0 = vpop.f32.mrb[122].mxu0  ;;  %952 = vmax.xlane.f32.xlu1 %v951_v3  ;;  %v1289_v55 = vmin.f32 %v1140_v46, %v1141_v1 }
 0x1f9   : > { %v4224_v34 = vadd.f32 %v761_v0, %v3518_v50  ;;  %v763_v44 = vpop.f32.mrb[123].mxu0  ;;  %v848_v5 = vpop.xlane.xlu1 %847 }
 0x1fa   : > { %v4227_v47 = vadd.f32 %v763_v44, %v3522_v53  ;;  %1290 = vmin.xlane.f32.xlu0 %v1289_v55  ;;  %v954_v20 = vmax.f32 %v4216_v26, %v4221_v11  ;;  %vm1016_vm10 = vcmp.eq.f32.partialorder %v3711_v38, %v848_v5  ;;  %vm1017_vm11 = vcmp.eq.f32.partialorder %v3714_v9, %v848_v5  ;;  %v5032_v5 = vld [vmem:[#allocation9_spill] sm:$0xff] }
 0x1fb   : > { %5030 = vst [vmem:[#allocation38_spill] sm:$0xff] %v4224_v34  ;;  %v1142_v10 = vsel %vm1016_vm10, %v3917_v18, 256.0  ;;  %v1143_v3 = vsel %vm1017_vm11, %v3919_v42, 256.0 }
 0x1fc   : > { %5031 = vst [vmem:[#allocation39_spill] sm:$0xff] %v4227_v47  ;;  %v957_v33 = vmax.f32 %v4224_v34, %v4227_v47  ;;  %v1292_v38 = vmin.f32 %v1142_v10, %v1143_v3  ;;  %v5034_v47 = vld [vmem:[#allocation11_spill] sm:$0xff]  ;;  %v5035_v10 = vld [vmem:[#allocation12_spill] sm:$0xff]  ;;  %v5036_v34 = vld [vmem:[#allocation13_spill] sm:$0xff] }
 0x1fd   : > { %v851_v39 = vpop.xlane.xlu1 %850 }
 0x1fe   : > { %958 = vmax.xlane.f32.xlu1 %v957_v33  ;;  %955 = vmax.xlane.f32.xlu0 %v954_v20  ;;  %vm1018_vm12 = vcmp.eq.f32.partialorder %v3717_v21, %v851_v39  ;;  %vm1019_vm13 = vcmp.eq.f32.partialorder %v3720_v23, %v851_v39  ;;  %v4239_v2 = vpop.f32.mrb[124].mxu0  ;;  %v5033_v33 = vld [vmem:[#allocation10_spill] sm:$0xff] }
 0x1ff   : > { %v4241_v46 = vpop.f32.mrb[125].mxu0  ;;  %v1144_v0 = vsel %vm1018_vm12, %v3917_v18, 256.0  ;;  %v1145_v55 = vsel %vm1019_vm13, %v3919_v42, 256.0 }
 0x200   : > { %v771_v9 = vpop.f32.mrb[126].mxu0  ;;  %v1295_v21 = vmin.f32 %v1144_v0, %v1145_v55 }
 0x201   : > { %v854_v1 = vpop.xlane.xlu1 %853  ;;  %v772_v44 = vpop.f32.mrb[127].mxu0 }
 0x202   : > { %vm1020_vm14 = vcmp.eq.f32.partialorder %v5032_v5, %v854_v1  ;;  %vm1021_vm15 = vcmp.eq.f32.partialorder %v5033_v33, %v854_v1  ;;  %1293 = vmin.xlane.f32.xlu0 %v1292_v38  ;;  %v5037_v38 = vld [vmem:[#allocation14_spill] sm:$0xff]  ;;  %v5038_v33 = vld [vmem:[#allocation15_spill] sm:$0xff] }
 0x203   : > { %v1146_v23 = vsel %vm1020_vm14, %v3917_v18, 256.0  ;;  %v1147_v39 = vsel %vm1021_vm15, %v3919_v42, 256.0 }
 0x204   : > { %v1298_v3 = vmin.f32 %v1146_v23, %v1147_v39 }
 0x205   : > { %v857_v20 = vpop.xlane.xlu1 %856 }
 0x206   : > { %vm1022_vm0 = vcmp.eq.f32.partialorder %v5034_v47, %v857_v20  ;;  %vm1023_vm1 = vcmp.eq.f32.partialorder %v5035_v10, %v857_v20  ;;  %1296 = vmin.xlane.f32.xlu0 %v1295_v21  ;;  %v5039_v21 = vld [vmem:[#allocation16_spill] sm:$0xff]  ;;  %v5040_v10 = vld [vmem:[#allocation17_spill] sm:$0xff] }
 0x207   : > { %v1148_v44 = vsel %vm1022_vm0, %v3917_v18, 256.0  ;;  %v1149_v5 = vsel %vm1023_vm1, %v3919_v42, 256.0 }
 0x208   : > { %v1301_v1 = vmin.f32 %v1148_v44, %v1149_v5 }
 0x209   : > { %v860_v9 = vpop.xlane.xlu1 %859 }
 0x20a   : > { %vm1024_vm2 = vcmp.eq.f32.partialorder %v5036_v34, %v860_v9  ;;  %vm1025_vm3 = vcmp.eq.f32.partialorder %v5037_v38, %v860_v9  ;;  %1299 = vmin.xlane.f32.xlu0 %v1298_v3  ;;  %v5041_v3 = vld [vmem:[#allocation18_spill] sm:$0xff] }
 0x20b   : > { %v1150_v55 = vsel %vm1024_vm2, %v3917_v18, 256.0  ;;  %v1151_v47 = vsel %vm1025_vm3, %v3919_v42, 256.0 }
 0x20c   : > { %v1304_v20 = vmin.f32 %v1150_v55, %v1151_v47 }
 0x20d   : > { %v863_v0 = vpop.xlane.xlu1 %862 }
 0x20e   : > { %vm1026_vm4 = vcmp.eq.f32.partialorder %v5038_v33, %v863_v0  ;;  %vm1027_vm5 = vcmp.eq.f32.partialorder %v5039_v21, %v863_v0  ;;  %1302 = vmin.xlane.f32.xlu0 %v1301_v1  ;;  %v5042_v33 = vld [vmem:[#allocation19_spill] sm:$0xff]  ;;  %v5043_v1 = vld [vmem:[#allocation20_spill] sm:$0xff] }
 0x20f   : > { %v1152_v39 = vsel %vm1026_vm4, %v3917_v18, 256.0  ;;  %v1153_v34 = vsel %vm1027_vm5, %v3919_v42, 256.0 }
 0x210   : > { %v1307_v9 = vmin.f32 %v1152_v39, %v1153_v34 }
 0x211   : > { %v866_v23 = vpop.xlane.xlu1 %865 }
 0x212   : > { %vm1028_vm6 = vcmp.eq.f32.partialorder %v5040_v10, %v866_v23  ;;  %vm1029_vm7 = vcmp.eq.f32.partialorder %v5041_v3, %v866_v23  ;;  %1305 = vmin.xlane.f32.xlu0 %v1304_v20  ;;  %v5044_v10 = vld [vmem:[#allocation21_spill] sm:$0xff]  ;;  %v5045_v20 = vld [vmem:[#allocation22_spill] sm:$0xff] }
 0x213   : > { %v1154_v5 = vsel %vm1028_vm6, %v3917_v18, 256.0  ;;  %v1155_v38 = vsel %vm1029_vm7, %v3919_v42, 256.0 }
 0x214   : > { %v1310_v0 = vmin.f32 %v1154_v5, %v1155_v38 }
 0x215   : > { %v869_v44 = vpop.xlane.xlu1 %868 }
 0x216   : > { %vm1030_vm8 = vcmp.eq.f32.partialorder %v5042_v33, %v869_v44  ;;  %vm1031_vm9 = vcmp.eq.f32.partialorder %v5043_v1, %v869_v44  ;;  %1308 = vmin.xlane.f32.xlu0 %v1307_v9  ;;  %v5046_v33 = vld [vmem:[#allocation23_spill] sm:$0xff]  ;;  %v5047_v9 = vld [vmem:[#allocation24_spill] sm:$0xff] }
 0x217   : > { %v1156_v47 = vsel %vm1030_vm8, %v3917_v18, 256.0  ;;  %v1157_v21 = vsel %vm1031_vm9, %v3919_v42, 256.0 }
 0x218   : > { %v1313_v23 = vmin.f32 %v1156_v47, %v1157_v21 }
 0x219   : > { %v872_v55 = vpop.xlane.xlu1 %871 }
 0x21a   : > { %vm1032_vm10 = vcmp.eq.f32.partialorder %v5044_v10, %v872_v55  ;;  %vm1033_vm11 = vcmp.eq.f32.partialorder %v5045_v20, %v872_v55  ;;  %1311 = vmin.xlane.f32.xlu0 %v1310_v0  ;;  %v5048_v10 = vld [vmem:[#allocation25_spill] sm:$0xff]  ;;  %v5049_v0 = vld [vmem:[#allocation26_spill] sm:$0xff] }
 0x21b   : > { %v1158_v34 = vsel %vm1032_vm10, %v3917_v18, 256.0  ;;  %v1159_v3 = vsel %vm1033_vm11, %v3919_v42, 256.0 }
 0x21c   : > { %v1316_v44 = vmin.f32 %v1158_v34, %v1159_v3 }
 0x21d   : > { %v875_v39 = vpop.xlane.xlu1 %874 }
 0x21e   : > { %vm1034_vm12 = vcmp.eq.f32.partialorder %v5046_v33, %v875_v39  ;;  %vm1035_vm13 = vcmp.eq.f32.partialorder %v5047_v9, %v875_v39  ;;  %1314 = vmin.xlane.f32.xlu0 %v1313_v23  ;;  %v5050_v33 = vld [vmem:[#allocation27_spill] sm:$0xff]  ;;  %v5051_v23 = vld [vmem:[#allocation28_spill] sm:$0xff] }
 0x21f   : > { %v1160_v38 = vsel %vm1034_vm12, %v3917_v18, 256.0  ;;  %v1161_v1 = vsel %vm1035_vm13, %v3919_v42, 256.0 }
 0x220   : > { %v1319_v55 = vmin.f32 %v1160_v38, %v1161_v1 }
 0x221   : > { %v878_v5 = vpop.xlane.xlu1 %877 }
 0x222   : > { %vm1036_vm14 = vcmp.eq.f32.partialorder %v5048_v10, %v878_v5  ;;  %vm1037_vm15 = vcmp.eq.f32.partialorder %v5049_v0, %v878_v5  ;;  %1317 = vmin.xlane.f32.xlu0 %v1316_v44  ;;  %v5052_v10 = vld [vmem:[#allocation29_spill] sm:$0xff]  ;;  %v5053_v44 = vld [vmem:[#allocation30_spill] sm:$0xff] }
 0x223   : > { %v1162_v21 = vsel %vm1036_vm14, %v3917_v18, 256.0  ;;  %v1163_v20 = vsel %vm1037_vm15, %v3919_v42, 256.0 }
 0x224   : > { %v1322_v39 = vmin.f32 %v1162_v21, %v1163_v20 }
 0x225   : > { %v881_v47 = vpop.xlane.xlu1 %880 }
 0x226   : > { %vm1038_vm0 = vcmp.eq.f32.partialorder %v5050_v33, %v881_v47  ;;  %vm1039_vm1 = vcmp.eq.f32.partialorder %v5051_v23, %v881_v47  ;;  %1320 = vmin.xlane.f32.xlu0 %v1319_v55  ;;  %v5054_v33 = vld [vmem:[#allocation31_spill] sm:$0xff]  ;;  %v5055_v55 = vld [vmem:[#allocation32_spill] sm:$0xff] }
 0x227   : > { %v1164_v3 = vsel %vm1038_vm0, %v3917_v18, 256.0  ;;  %v1165_v9 = vsel %vm1039_vm1, %v3919_v42, 256.0 }
 0x228   : > { %v1325_v5 = vmin.f32 %v1164_v3, %v1165_v9 }
 0x229   : > { %v884_v34 = vpop.xlane.xlu1 %883 }
 0x22a   : > { %vm1040_vm2 = vcmp.eq.f32.partialorder %v5052_v10, %v884_v34  ;;  %vm1041_vm3 = vcmp.eq.f32.partialorder %v5053_v44, %v884_v34  ;;  %1323 = vmin.xlane.f32.xlu0 %v1322_v39  ;;  %v5056_v10 = vld [vmem:[#allocation33_spill] sm:$0xff]  ;;  %v5057_v39 = vld [vmem:[#allocation34_spill] sm:$0xff] }
 0x22b   : > { %v1166_v1 = vsel %vm1040_vm2, %v3917_v18, 256.0  ;;  %v1167_v0 = vsel %vm1041_vm3, %v3919_v42, 256.0 }
 0x22c   : > { %v1328_v47 = vmin.f32 %v1166_v1, %v1167_v0 }
 0x22d   : > { %v887_v38 = vpop.xlane.xlu1 %886 }
 0x22e   : > { %vm1042_vm4 = vcmp.eq.f32.partialorder %v5054_v33, %v887_v38  ;;  %vm1043_vm5 = vcmp.eq.f32.partialorder %v5055_v55, %v887_v38  ;;  %1326 = vmin.xlane.f32.xlu0 %v1325_v5  ;;  %v5058_v5 = vld [vmem:[#allocation35_spill] sm:$0xff]  ;;  %v3304_v38 = vmov 1.0  }
 0x22f   : > { %v1168_v20 = vsel %vm1042_vm4, %v3917_v18, 256.0  ;;  %v1169_v23 = vsel %vm1043_vm5, %v3919_v42, 256.0 }
 0x230   : > { %v1331_v34 = vmin.f32 %v1168_v20, %v1169_v23 }
 0x231   : > { %v890_v21 = vpop.xlane.xlu1 %889 }
 0x232   : > { %vm1044_vm6 = vcmp.eq.f32.partialorder %v5056_v10, %v890_v21  ;;  %vm1045_vm7 = vcmp.eq.f32.partialorder %v5057_v39, %v890_v21  ;;  %1329 = vmin.xlane.f32.xlu0 %v1328_v47 }
 0x233   : > { %v1170_v44 = vsel %vm1044_vm6, %v3917_v18, 256.0  ;;  %v1171_v33 = vsel %vm1045_vm7, %v3919_v42, 256.0 }
 0x234   : > { %v1334_v1 = vmin.f32 %v1170_v44, %v1171_v33 }
 0x235   : > { %v1231_v3 = vpop.xlane.xlu0 %1230  ;;  %v893_v9 = vpop.xlane.xlu1 %892 }
 0x236   : > { %vm1046_vm8 = vcmp.eq.f32.partialorder %v3922_v36, %v893_v9  ;;  %vm1047_vm9 = vcmp.eq.f32.partialorder %v5058_v5, %v893_v9  ;;  %1332 = vmin.xlane.f32.xlu0 %v1331_v34  ;;  %vm1416_vm10 = vcmp.eq.f32.partialorder %v3919_v42, %v1231_v3  ;;  %vm1415_vm11 = vcmp.eq.f32.partialorder %v3917_v18, %v1231_v3  ;;  %v5059_v36 = vld [vmem:[#allocation36_spill] sm:$0xff]  ;;  %v5060_v34 = vld [vmem:[#allocation37_spill] sm:$0xff] }
 0x237   : > { %2880 = vmatprep.mubr.msk.f32.mxu1 %vm1416_vm10, %v3304_v38  ;;  %v1172_v55 = vsel %vm1046_vm8, %v3917_v18, 256.0  ;;  %v1173_v47 = vsel %vm1047_vm9, %v3919_v42, 256.0  ;;  %v5062_v9 = vld [vmem:[#allocation4_spill] sm:$0xff] }
 0x238   : > { %2881 = vmatmul.mubr.msk.f32.vlgmr.msra.gmra.mrb[0].mxu1 %vm1415_vm11, %v3304_v38  ;;  %v1337_v20 = vmin.f32 %v1172_v55, %v1173_v47  ;;  %v4321_v44 = vadd.f32 %v5062_v9, %v3522_v53  ;;  %v5063_v55 = vld [vmem:[#allocation5_spill] sm:$0xff]  ;;  %v4356_v9 = vadd.f32 %v4241_v46, %v3522_v53 }
 0x239   : > { %v896_v0 = vpop.xlane.xlu1 %895  ;;  %v4329_v47 = vadd.f32 %v5063_v55, %v3518_v50 }
 0x23a   : > { %vm1048_vm12 = vcmp.eq.f32.partialorder %v3951_v57, %v896_v0  ;;  %vm1049_vm13 = vcmp.eq.f32.partialorder %v5059_v36, %v896_v0  ;;  %1335 = vmin.xlane.f32.xlu0 %v1334_v1  ;;  %v5061_v57 = vld [vmem:[#allocation3_spill] sm:$0xff]  ;;  %v5064_v36 = vld [vmem:[#allocation6_spill] sm:$0xff] }
 0x23b   : > { %v1234_v21 = vpop.xlane.xlu0 %1233  ;;  %v1174_v10 = vsel %vm1048_vm12, %v3917_v18, 256.0  ;;  %v1175_v39 = vsel %vm1049_vm13, %v3919_v42, 256.0  ;;  %v4317_v3 = vadd.f32 %v5061_v57, %v3518_v50 }
 0x23c   : > { %vm1418_vm14 = vcmp.eq.f32.partialorder %v3919_v42, %v1234_v21  ;;  %vm1417_vm15 = vcmp.eq.f32.partialorder %v3917_v18, %v1234_v21  ;;  %v4333_v21 = vadd.f32 %v5064_v36, %v3522_v53 }
 0x23d   : > { %2882 = vmatprep.mubr.msk.f32.mxu1 %vm1418_vm14, %v3304_v38  ;;  %v899_v23 = vpop.xlane.xlu1 %898 }
 0x23e   : > { %vm1050_vm0 = vcmp.eq.f32.partialorder %v3958_v60, %v899_v23  ;;  %vm1051_vm1 = vcmp.eq.f32.partialorder %v5060_v34, %v899_v23  ;;  %2883 = vmatmul.mubr.msk.f32.gmra.mrb[2].mxu1 %vm1417_vm15, %v3304_v38  ;;  %1338 = vmin.xlane.f32.xlu0 %v1337_v20  ;;  %v1340_v60 = vmin.f32 %v1174_v10, %v1175_v39 }
 0x23f   : > { %v1176_v33 = vsel %vm1050_vm0, %v3917_v18, 256.0  ;;  %v1177_v5 = vsel %vm1051_vm1, %v3919_v42, 256.0  ;;  %v1237_v1 = vpop.xlane.xlu0 %1236  ;;  %v777_v10 = vmax.f32 %v4317_v3, %v4321_v44  ;;  %v780_v39 = vmax.f32 %v4329_v47, %v4333_v21 }
 0x240   : > { %v1343_v0 = vmin.f32 %v1176_v33, %v1177_v5  ;;  %vm1420_vm2 = vcmp.eq.f32.partialorder %v3919_v42, %v1237_v1  ;;  %vm1419_vm3 = vcmp.eq.f32.partialorder %v3917_v18, %v1237_v1 }
 0x241   : > { %2884 = vmatprep.mubr.msk.f32.mxu1 %vm1420_vm2, %v3304_v38  ;;  %v902_v20 = vpop.xlane.xlu1 %901 }
 0x242   : > { %vm1052_vm4 = vcmp.eq.f32.partialorder %v3991_v54, %v902_v20  ;;  %vm1053_vm5 = vcmp.eq.f32.partialorder %v3994_v14, %v902_v20  ;;  %2885 = vmatmul.mubr.msk.f32.gmra.mrb[4].mxu1 %vm1419_vm3, %v3304_v38  ;;  %1341 = vmin.xlane.f32.xlu0 %v1340_v60  ;;  %v4349_v14 = vadd.f32 %v4239_v2, %v3518_v50 }
 0x243   : > { %1344 = vmin.xlane.f32.xlu1 %v1343_v0  ;;  %v1240_v23 = vpop.xlane.xlu0 %1239  ;;  %v1178_v34 = vsel %vm1052_vm4, %v3917_v18, 256.0  ;;  %v1179_v54 = vsel %vm1053_vm5, %v3919_v42, 256.0 }
 0x244   : > { %vm1422_vm6 = vcmp.eq.f32.partialorder %v3919_v42, %v1240_v23  ;;  %vm1421_vm7 = vcmp.eq.f32.partialorder %v3917_v18, %v1240_v23  ;;  %v1346_v2 = vmin.f32 %v1178_v34, %v1179_v54  ;;  %v960_v53 = vmax.f32 %v4349_v14, %v4356_v9 }
 0x245   : > { %2886 = vmatprep.mubr.msk.f32.mxu1 %vm1422_vm6, %v3304_v38  ;;  %v905_v57 = vpop.xlane.xlu1 %904 }
 0x246   : > { %vm1054_vm8 = vcmp.eq.f32.partialorder %v3998_v30, %v905_v57  ;;  %vm1055_vm9 = vcmp.eq.f32.partialorder %v4001_v35, %v905_v57  ;;  %2887 = vmatmul.mubr.msk.f32.gmra.mrb[6].mxu1 %vm1421_vm7, %v3304_v38  ;;  %778 = vmax.xlane.f32.xlu0 %v777_v10 }
 0x247   : > { %v1180_v33 = vsel %vm1054_vm8, %v3917_v18, 256.0  ;;  %v1181_v5 = vsel %vm1055_vm9, %v3919_v42, 256.0  ;;  %781 = vmax.xlane.f32.xlu1 %v780_v39  ;;  %v1243_v50 = vpop.xlane.xlu0 %1242 }
 0x248   : > { %v1349_v1 = vmin.f32 %v1180_v33, %v1181_v5  ;;  %vm1423_vm10 = vcmp.eq.f32.partialorder %v3917_v18, %v1243_v50  ;;  %vm1424_vm11 = vcmp.eq.f32.partialorder %v3919_v42, %v1243_v50 }
 0x249   : > { %2888 = vmatprep.mubr.msk.f32.mxu1 %vm1424_vm11, %v3304_v38  ;;  %v908_v30 = vpop.xlane.xlu1 %907 }
 0x24a   : > { %vm1056_vm12 = vcmp.eq.f32.partialorder %v4024_v63, %v908_v30  ;;  %vm1057_vm13 = vcmp.eq.f32.partialorder %v4027_v17, %v908_v30  ;;  %2889 = vmatmul.mubr.msk.f32.gmra.mrb[8].mxu1 %vm1423_vm10, %v3304_v38  ;;  %1347 = vmin.xlane.f32.xlu0 %v1346_v2 }
 0x24b   : > { %1350 = vmin.xlane.f32.xlu1 %v1349_v1  ;;  %v1246_v35 = vpop.xlane.xlu0 %1245  ;;  %v1182_v46 = vsel %vm1056_vm12, %v3917_v18, 256.0  ;;  %v1183_v0 = vsel %vm1057_vm13, %v3919_v42, 256.0 }
 0x24c   : > { %vm1425_vm14 = vcmp.eq.f32.partialorder %v3917_v18, %v1246_v35  ;;  %vm1426_vm15 = vcmp.eq.f32.partialorder %v3919_v42, %v1246_v35  ;;  %v1352_v36 = vmin.f32 %v1182_v46, %v1183_v0 }
 0x24d   : > { %2890 = vmatprep.mubr.msk.f32.mxu1 %vm1426_vm15, %v3304_v38  ;;  %v911_v60 = vpop.xlane.xlu1 %910 }
 0x24e   : > { %vm1058_vm0 = vcmp.eq.f32.partialorder %v4030_v32, %v911_v60  ;;  %vm1059_vm1 = vcmp.eq.f32.partialorder %v4033_v51, %v911_v60  ;;  %2891 = vmatmul.mubr.msk.f32.gmra.mrb[10].mxu1 %vm1425_vm14, %v3304_v38  ;;  %961 = vmax.xlane.f32.xlu0 %v960_v53 }
 0x24f   : > { %v1184_v63 = vsel %vm1058_vm0, %v3917_v18, 256.0  ;;  %v1185_v17 = vsel %vm1059_vm1, %v3919_v42, 256.0  ;;  %v1249_v55 = vpop.xlane.xlu0 %1248 }
 0x250   : > { %v1355_v20 = vmin.f32 %v1184_v63, %v1185_v17  ;;  %vm1427_vm2 = vcmp.eq.f32.partialorder %v3917_v18, %v1249_v55  ;;  %vm1428_vm3 = vcmp.eq.f32.partialorder %v3919_v42, %v1249_v55 }
 0x251   : > { %2892 = vmatprep.mubr.msk.f32.mxu1 %vm1428_vm3, %v3304_v38  ;;  %v914_v23 = vpop.xlane.xlu1 %913 }
 0x252   : > { %vm1060_vm4 = vcmp.eq.f32.partialorder %v4048_v27, %v914_v23  ;;  %vm1061_vm5 = vcmp.eq.f32.partialorder %v4051_v19, %v914_v23  ;;  %2893 = vmatmul.mubr.msk.f32.gmra.mrb[12].mxu1 %vm1427_vm2, %v3304_v38  ;;  %1353 = vmin.xlane.f32.xlu0 %v1352_v36 }
 0x253   : > { %v1186_v32 = vsel %vm1060_vm4, %v3917_v18, 256.0  ;;  %v1187_v51 = vsel %vm1061_vm5, %v3919_v42, 256.0  ;;  %1356 = vmin.xlane.f32.xlu1 %v1355_v20  ;;  %v1252_v10 = vpop.xlane.xlu0 %1251 }
 0x254   : > { %v1358_v39 = vmin.f32 %v1186_v32, %v1187_v51  ;;  %vm1429_vm6 = vcmp.eq.f32.partialorder %v3917_v18, %v1252_v10  ;;  %vm1430_vm7 = vcmp.eq.f32.partialorder %v3919_v42, %v1252_v10 }
 0x255   : > { %2894 = vmatprep.mubr.msk.f32.mxu1 %vm1430_vm7, %v3304_v38  ;;  %v917_v34 = vpop.xlane.xlu1 %916 }
 0x256   : > { %vm1062_vm8 = vcmp.eq.f32.partialorder %v4054_v31, %v917_v34  ;;  %vm1063_vm9 = vcmp.eq.f32.partialorder %v4057_v4, %v917_v34  ;;  %2895 = vmatmul.mubr.msk.f32.gmra.mrb[14].mxu1 %vm1429_vm6, %v3304_v38  ;;  %1359 = vmin.xlane.f32.xlu0 %v1358_v39 }
 0x257   : > { %v1188_v27 = vsel %vm1062_vm8, %v3917_v18, 256.0  ;;  %v1189_v19 = vsel %vm1063_vm9, %v3919_v42, 256.0  ;;  %v1255_v54 = vpop.xlane.xlu0 %1254 }
 0x258   : > { %v1361_v57 = vmin.f32 %v1188_v27, %v1189_v19  ;;  %vm1431_vm10 = vcmp.eq.f32.partialorder %v3917_v18, %v1255_v54  ;;  %vm1432_vm11 = vcmp.eq.f32.partialorder %v3919_v42, %v1255_v54 }
 0x259   : > { %2896 = vmatprep.mubr.msk.f32.mxu1 %vm1432_vm11, %v3304_v38  ;;  %v920_v33 = vpop.xlane.xlu1 %919 }
 0x25a   : > { %vm1064_vm12 = vcmp.eq.f32.partialorder %v4072_v37, %v920_v33  ;;  %vm1065_vm13 = vcmp.eq.f32.partialorder %v4075_v43, %v920_v33  ;;  %2897 = vmatmul.mubr.msk.f32.gmra.mrb[16].mxu1 %vm1431_vm10, %v3304_v38  ;;  %1362 = vmin.xlane.f32.xlu1 %v1361_v57 }
 0x25b   : > { %v1190_v31 = vsel %vm1064_vm12, %v3917_v18, 256.0  ;;  %v1191_v4 = vsel %vm1065_vm13, %v3919_v42, 256.0  ;;  %v1258_v5 = vpop.xlane.xlu0 %1257 }
 0x25c   : > { %v1364_v50 = vmin.f32 %v1190_v31, %v1191_v4  ;;  %vm1433_vm14 = vcmp.eq.f32.partialorder %v3917_v18, %v1258_v5  ;;  %vm1434_vm15 = vcmp.eq.f32.partialorder %v3919_v42, %v1258_v5 }
 0x25d   : > { %2898 = vmatprep.mubr.msk.f32.mxu1 %vm1434_vm15, %v3304_v38  ;;  %v923_v2 = vpop.xlane.xlu1 %922 }
 0x25e   : > { %vm1066_vm0 = vcmp.eq.f32.partialorder %v4078_v45, %v923_v2  ;;  %vm1067_vm1 = vcmp.eq.f32.partialorder %v4081_v6, %v923_v2  ;;  %2899 = vmatmul.mubr.msk.f32.gmra.mrb[18].mxu1 %vm1433_vm14, %v3304_v38  ;;  %1365 = vmin.xlane.f32.xlu0 %v1364_v50  ;;  %v5065_v50 = vld [vmem:[#allocation7_spill] sm:$0xff] }
 0x25f   : > { %v1192_v37 = vsel %vm1066_vm0, %v3917_v18, 256.0  ;;  %v1193_v43 = vsel %vm1067_vm1, %v3919_v42, 256.0  ;;  %v1261_v1 = vpop.xlane.xlu0 %1260 }
 0x260   : > { %v1367_v30 = vmin.f32 %v1192_v37, %v1193_v43  ;;  %vm1435_vm2 = vcmp.eq.f32.partialorder %v3917_v18, %v1261_v1  ;;  %vm1436_vm3 = vcmp.eq.f32.partialorder %v3919_v42, %v1261_v1 }
 0x261   : > { %2900 = vmatprep.mubr.msk.f32.mxu1 %vm1436_vm3, %v3304_v38  ;;  %v926_v53 = vpop.xlane.xlu1 %925 }
 0x262   : > { %vm1068_vm4 = vcmp.eq.f32.partialorder %v4096_v56, %v926_v53  ;;  %vm1069_vm5 = vcmp.eq.f32.partialorder %v4099_v29, %v926_v53  ;;  %2901 = vmatmul.mubr.msk.f32.gmra.mrb[20].mxu1 %vm1435_vm2, %v3304_v38  ;;  %1368 = vmin.xlane.f32.xlu1 %v1367_v30 }
 0x263   : > { %v1194_v45 = vsel %vm1068_vm4, %v3917_v18, 256.0  ;;  %v1195_v6 = vsel %vm1069_vm5, %v3919_v42, 256.0  ;;  %v1264_v35 = vpop.xlane.xlu0 %1263 }
 0x264   : > { %v1370_v46 = vmin.f32 %v1194_v45, %v1195_v6  ;;  %vm1437_vm6 = vcmp.eq.f32.partialorder %v3917_v18, %v1264_v35  ;;  %vm1438_vm7 = vcmp.eq.f32.partialorder %v3919_v42, %v1264_v35 }
 0x265   : > { %2902 = vmatprep.mubr.msk.f32.mxu1 %vm1438_vm7, %v3304_v38  ;;  %v929_v0 = vpop.xlane.xlu1 %928 }
 0x266   : > { %vm1070_vm8 = vcmp.eq.f32.partialorder %v4102_v61, %v929_v0  ;;  %vm1071_vm9 = vcmp.eq.f32.partialorder %v4105_v48, %v929_v0  ;;  %2903 = vmatmul.mubr.msk.f32.gmra.mrb[22].mxu1 %vm1437_vm6, %v3304_v38  ;;  %1371 = vmin.xlane.f32.xlu0 %v1370_v46  ;;  %v5067_v46 = vld [vmem:[#allocation38_spill] sm:$0xff]  ;;  %v5068_v0 = vld [vmem:[#allocation39_spill] sm:$0xff] }
 0x267   : > { %v1196_v56 = vsel %vm1070_vm8, %v3917_v18, 256.0  ;;  %v1197_v29 = vsel %vm1071_vm9, %v3919_v42, 256.0  ;;  %v1267_v60 = vpop.xlane.xlu0 %1266 }
 0x268   : > { %v1373_v63 = vmin.f32 %v1196_v56, %v1197_v29  ;;  %vm1439_vm10 = vcmp.eq.f32.partialorder %v3917_v18, %v1267_v60  ;;  %vm1440_vm11 = vcmp.eq.f32.partialorder %v3919_v42, %v1267_v60 }
 0x269   : > { %2904 = vmatprep.mubr.msk.f32.mxu1 %vm1440_vm11, %v3304_v38  ;;  %v932_v17 = vpop.xlane.xlu1 %931 }
 0x26a   : > { %vm1072_vm12 = vcmp.eq.f32.partialorder %v4120_v8, %v932_v17  ;;  %vm1073_vm13 = vcmp.eq.f32.partialorder %v4123_v41, %v932_v17  ;;  %2905 = vmatmul.mubr.msk.f32.gmra.mrb[24].mxu1 %vm1439_vm10, %v3304_v38  ;;  %1374 = vmin.xlane.f32.xlu1 %v1373_v63 }
 0x26b   : > { %v1198_v61 = vsel %vm1072_vm12, %v3917_v18, 256.0  ;;  %v1199_v48 = vsel %vm1073_vm13, %v3919_v42, 256.0  ;;  %v1270_v55 = vpop.xlane.xlu0 %1269 }
 0x26c   : > { %v1376_v36 = vmin.f32 %v1198_v61, %v1199_v48  ;;  %vm1441_vm14 = vcmp.eq.f32.partialorder %v3917_v18, %v1270_v55  ;;  %vm1442_vm15 = vcmp.eq.f32.partialorder %v3919_v42, %v1270_v55 }
 0x26d   : > { %2906 = vmatprep.mubr.msk.f32.mxu1 %vm1442_vm15, %v3304_v38  ;;  %v935_v20 = vpop.xlane.xlu1 %934 }
 0x26e   : > { %vm1074_vm0 = vcmp.eq.f32.partialorder %v4126_v13, %v935_v20  ;;  %vm1075_vm1 = vcmp.eq.f32.partialorder %v4129_v12, %v935_v20  ;;  %2907 = vmatmul.mubr.msk.f32.gmra.mrb[26].mxu1 %vm1441_vm14, %v3304_v38  ;;  %1377 = vmin.xlane.f32.xlu0 %v1376_v36 }
 0x26f   : > { %v1200_v8 = vsel %vm1074_vm0, %v3917_v18, 256.0  ;;  %v1201_v41 = vsel %vm1075_vm1, %v3919_v42, 256.0  ;;  %v1273_v23 = vpop.xlane.xlu0 %1272 }
 0x270   : > { %v1379_v32 = vmin.f32 %v1200_v8, %v1201_v41  ;;  %vm1443_vm2 = vcmp.eq.f32.partialorder %v3917_v18, %v1273_v23  ;;  %vm1444_vm3 = vcmp.eq.f32.partialorder %v3919_v42, %v1273_v23 }
 0x271   : > { %2908 = vmatprep.mubr.msk.f32.mxu1 %vm1444_vm3, %v3304_v38  ;;  %v938_v51 = vpop.xlane.xlu1 %937 }
 0x272   : > { %vm1076_vm4 = vcmp.eq.f32.partialorder %v4144_v22, %v938_v51  ;;  %vm1077_vm5 = vcmp.eq.f32.partialorder %v4147_v59, %v938_v51  ;;  %2909 = vmatmul.mubr.msk.f32.gmra.mrb[28].mxu1 %vm1443_vm2, %v3304_v38  ;;  %1380 = vmin.xlane.f32.xlu1 %v1379_v32 }
 0x273   : > { %v1202_v13 = vsel %vm1076_vm4, %v3917_v18, 256.0  ;;  %v1203_v12 = vsel %vm1077_vm5, %v3919_v42, 256.0  ;;  %v1276_v10 = vpop.xlane.xlu0 %1275  ;;  %vm968_vm4 = vcmp.eq.f32.partialorder %v5065_v50, %v4163_v52 }
 0x274   : > { %v1382_v39 = vmin.f32 %v1202_v13, %v1203_v12  ;;  %vm1445_vm6 = vcmp.eq.f32.partialorder %v3917_v18, %v1276_v10  ;;  %vm1446_vm7 = vcmp.eq.f32.partialorder %v3919_v42, %v1276_v10  ;;  %v1094_v30 = vsel %vm968_vm4, %v3917_v18, 256.0 }
 0x275   : > { %2910 = vmatprep.mubr.msk.f32.mxu1 %vm1446_vm7, %v3304_v38  ;;  %v941_v34 = vpop.xlane.xlu1 %940 }
 0x276   : > { %vm1078_vm8 = vcmp.eq.f32.partialorder %v4150_v28, %v941_v34  ;;  %vm1079_vm9 = vcmp.eq.f32.partialorder %v4153_v15, %v941_v34  ;;  %2911 = vmatmul.mubr.msk.f32.gmra.mrb[30].mxu1 %vm1445_vm6, %v3304_v38  ;;  %1383 = vmin.xlane.f32.xlu0 %v1382_v39 }
 0x277   : > { %v1204_v22 = vsel %vm1078_vm8, %v3917_v18, 256.0  ;;  %v1205_v59 = vsel %vm1079_vm9, %v3919_v42, 256.0  ;;  %v1279_v27 = vpop.xlane.xlu0 %1278 }
 0x278   : > { %v1385_v19 = vmin.f32 %v1204_v22, %v1205_v59  ;;  %vm1447_vm10 = vcmp.eq.f32.partialorder %v3917_v18, %v1279_v27  ;;  %vm1448_vm11 = vcmp.eq.f32.partialorder %v3919_v42, %v1279_v27 }
 0x279   : > { %2912 = vmatprep.mubr.msk.f32.mxu1 %vm1448_vm11, %v3304_v38  ;;  %v944_v54 = vpop.xlane.xlu1 %943 }
 0x27a   : > { %vm1080_vm12 = vcmp.eq.f32.partialorder %v4170_v62, %v944_v54  ;;  %vm1081_vm13 = vcmp.eq.f32.partialorder %v4173_v25, %v944_v54  ;;  %2913 = vmatmul.mubr.msk.f32.gmra.mrb[32].mxu1 %vm1447_vm10, %v3304_v38  ;;  %1386 = vmin.xlane.f32.xlu1 %v1385_v19 }
 0x27b   : > { %v1206_v28 = vsel %vm1080_vm12, %v3917_v18, 256.0  ;;  %v1207_v15 = vsel %vm1081_vm13, %v3919_v42, 256.0  ;;  %v1282_v57 = vpop.xlane.xlu0 %1281 }
 0x27c   : > { %v1388_v33 = vmin.f32 %v1206_v28, %v1207_v15  ;;  %vm1449_vm14 = vcmp.eq.f32.partialorder %v3917_v18, %v1282_v57  ;;  %vm1450_vm15 = vcmp.eq.f32.partialorder %v3919_v42, %v1282_v57 }
 0x27d   : > { %2914 = vmatprep.mubr.msk.f32.mxu1 %vm1450_vm15, %v3304_v38  ;;  %v947_v31 = vpop.xlane.xlu1 %946 }
 0x27e   : > { %vm1082_vm0 = vcmp.eq.f32.partialorder %v4176_v49, %v947_v31  ;;  %vm1083_vm1 = vcmp.eq.f32.partialorder %v4179_v40, %v947_v31  ;;  %2915 = vmatmul.mubr.msk.f32.gmra.mrb[34].mxu1 %vm1449_vm14, %v3304_v38  ;;  %1389 = vmin.xlane.f32.xlu0 %v1388_v33  ;;  %v5066_v40 = vld [vmem:[#allocation8_spill] sm:$0xff] }
 0x27f   : > { %v1208_v62 = vsel %vm1082_vm0, %v3917_v18, 256.0  ;;  %v1209_v25 = vsel %vm1083_vm1, %v3919_v42, 256.0  ;;  %v1285_v4 = vpop.xlane.xlu0 %1284  ;;  %vm969_vm5 = vcmp.eq.f32.partialorder %v5066_v40, %v4163_v52 }
 0x280   : > { %v1391_v5 = vmin.f32 %v1208_v62, %v1209_v25  ;;  %vm1451_vm2 = vcmp.eq.f32.partialorder %v3917_v18, %v1285_v4  ;;  %vm1452_vm3 = vcmp.eq.f32.partialorder %v3919_v42, %v1285_v4  ;;  %v1095_v52 = vsel %vm969_vm5, %v3919_v42, 256.0 }
 0x281   : > { %2916 = vmatprep.mubr.msk.f32.mxu1 %vm1452_vm3, %v3304_v38  ;;  %v950_v49 = vpop.xlane.xlu1 %949  ;;  %v1220_v35 = vmin.f32 %v1094_v30, %v1095_v52 }
 0x282   : > { %vm1084_vm6 = vcmp.eq.f32.partialorder %v4194_v7, %v950_v49  ;;  %vm1085_vm7 = vcmp.eq.f32.partialorder %v4197_v58, %v950_v49  ;;  %2917 = vmatmul.mubr.msk.f32.gmra.mrb[36].mxu1 %vm1451_vm2, %v3304_v38  ;;  %1392 = vmin.xlane.f32.xlu1 %v1391_v5 }
 0x283   : > { %v1210_v2 = vsel %vm1084_vm6, %v3917_v18, 256.0  ;;  %v1211_v37 = vsel %vm1085_vm7, %v3919_v42, 256.0  ;;  %v1288_v43 = vpop.xlane.xlu0 %1287 }
 0x284   : > { %v1394_v1 = vmin.f32 %v1210_v2, %v1211_v37  ;;  %vm1453_vm8 = vcmp.eq.f32.partialorder %v3917_v18, %v1288_v43  ;;  %vm1454_vm9 = vcmp.eq.f32.partialorder %v3919_v42, %v1288_v43 }
 0x285   : > { %2918 = vmatprep.mubr.msk.f32.mxu1 %vm1454_vm9, %v3304_v38  ;;  %v953_v7 = vpop.xlane.xlu1 %952 }
 0x286   : > { %vm1086_vm10 = vcmp.eq.f32.partialorder %v4200_v16, %v953_v7  ;;  %vm1087_vm11 = vcmp.eq.f32.partialorder %v4203_v24, %v953_v7  ;;  %2919 = vmatmul.mubr.msk.f32.gmra.mrb[38].mxu1 %vm1453_vm8, %v3304_v38  ;;  %1395 = vmin.xlane.f32.xlu0 %v1394_v1 }
 0x287   : > { %v1212_v58 = vsel %vm1086_vm10, %v3917_v18, 256.0  ;;  %v1213_v53 = vsel %vm1087_vm11, %v3919_v42, 256.0  ;;  %v1291_v45 = vpop.xlane.xlu0 %1290 }
 0x288   : > { %v1397_v6 = vmin.f32 %v1212_v58, %v1213_v53  ;;  %vm1455_vm12 = vcmp.eq.f32.partialorder %v3917_v18, %v1291_v45  ;;  %vm1456_vm13 = vcmp.eq.f32.partialorder %v3919_v42, %v1291_v45 }
 0x289   : > { %2920 = vmatprep.mubr.msk.f32.mxu1 %vm1456_vm13, %v3304_v38 }
 0x28a   : > { %2921 = vmatmul.mubr.msk.f32.gmra.mrb[40].mxu1 %vm1455_vm12, %v3304_v38  ;;  %1221 = vmin.xlane.f32.xlu0 %v1220_v35 }
 0x28b   : > { %1398 = vmin.xlane.f32.xlu1 %v1397_v6  ;;  %v956_v16 = vpop.xlane.xlu0 %955  ;;  %v959_v24 = vpop.xlane.xlu1 %958 }
 0x28c   : > { %vm1088_vm14 = vcmp.eq.f32.partialorder %v4216_v26, %v956_v16  ;;  %vm1089_vm15 = vcmp.eq.f32.partialorder %v4221_v11, %v956_v16  ;;  %vm1090_vm0 = vcmp.eq.f32.partialorder %v5067_v46, %v959_v24  ;;  %vm1091_vm1 = vcmp.eq.f32.partialorder %v5068_v0, %v959_v24 }
 0x28d   : > { %v1214_v56 = vsel %vm1088_vm14, %v3917_v18, 256.0  ;;  %v1215_v29 = vsel %vm1089_vm15, %v3919_v42, 256.0  ;;  %v1216_v63 = vsel %vm1090_vm0, %v3917_v18, 256.0  ;;  %v1217_v17 = vsel %vm1091_vm1, %v3919_v42, 256.0 }
 0x28e   : > { %v1400_v60 = vmin.f32 %v1214_v56, %v1215_v29  ;;  %v1403_v26 = vmin.f32 %v1216_v63, %v1217_v17 }
 0x28f   : > { %v1294_v61 = vpop.xlane.xlu0 %1293 }
 0x290   : > { %vm1457_vm2 = vcmp.eq.f32.partialorder %v3917_v18, %v1294_v61  ;;  %vm1458_vm3 = vcmp.eq.f32.partialorder %v3919_v42, %v1294_v61  ;;  %1401 = vmin.xlane.f32.xlu1 %v1400_v60 }
 0x291   : > { %2922 = vmatprep.mubr.msk.f32.mxu1 %vm1458_vm3, %v3304_v38 }
 0x292   : > { %2923 = vmatmul.mubr.msk.f32.gmra.mrb[42].mxu1 %vm1457_vm2, %v3304_v38 }
 0x293   : > { %v1297_v11 = vpop.xlane.xlu0 %1296 }
 0x294   : > { %vm1459_vm4 = vcmp.eq.f32.partialorder %v3917_v18, %v1297_v11  ;;  %vm1460_vm5 = vcmp.eq.f32.partialorder %v3919_v42, %v1297_v11  ;;  %1404 = vmin.xlane.f32.xlu1 %v1403_v26 }
 0x295   : > { %2924 = vmatprep.mubr.msk.f32.mxu1 %vm1460_vm5, %v3304_v38 }
 0x296   : > { %2925 = vmatmul.mubr.msk.f32.gmra.mrb[44].mxu1 %vm1459_vm4, %v3304_v38 }
 0x297   : > { %v1300_v48 = vpop.xlane.xlu0 %1299 }
 0x298   : > { %vm1461_vm6 = vcmp.eq.f32.partialorder %v3917_v18, %v1300_v48  ;;  %vm1462_vm7 = vcmp.eq.f32.partialorder %v3919_v42, %v1300_v48 }
 0x299   : > { %2926 = vmatprep.mubr.msk.f32.mxu1 %vm1462_vm7, %v3304_v38 }
 0x29a   : > { %2927 = vmatmul.mubr.msk.f32.gmra.mrb[46].mxu1 %vm1461_vm6, %v3304_v38 }
 0x29b   : > { %v1303_v55 = vpop.xlane.xlu0 %1302 }
 0x29c   : > { %vm1463_vm8 = vcmp.eq.f32.partialorder %v3917_v18, %v1303_v55  ;;  %vm1464_vm9 = vcmp.eq.f32.partialorder %v3919_v42, %v1303_v55 }
 0x29d   : > { %2928 = vmatprep.mubr.msk.f32.mxu1 %vm1464_vm9, %v3304_v38 }
 0x29e   : > { %2929 = vmatmul.mubr.msk.f32.gmra.mrb[48].mxu1 %vm1463_vm8, %v3304_v38 }
 0x29f   : > { %v1306_v36 = vpop.xlane.xlu0 %1305 }
 0x2a0   : > { %vm1465_vm10 = vcmp.eq.f32.partialorder %v3917_v18, %v1306_v36  ;;  %vm1466_vm11 = vcmp.eq.f32.partialorder %v3919_v42, %v1306_v36 }
 0x2a1   : > { %2930 = vmatprep.mubr.msk.f32.mxu1 %vm1466_vm11, %v3304_v38 }
 0x2a2   : > { %2931 = vmatmul.mubr.msk.f32.gmra.mrb[50].mxu1 %vm1465_vm10, %v3304_v38 }
 0x2a3   : > { %v1309_v20 = vpop.xlane.xlu0 %1308 }
 0x2a4   : > { %vm1467_vm12 = vcmp.eq.f32.partialorder %v3917_v18, %v1309_v20  ;;  %vm1468_vm13 = vcmp.eq.f32.partialorder %v3919_v42, %v1309_v20 }
 0x2a5   : > { %2932 = vmatprep.mubr.msk.f32.mxu1 %vm1468_vm13, %v3304_v38 }
 0x2a6   : > { %2933 = vmatmul.mubr.msk.f32.gmra.mrb[52].mxu1 %vm1467_vm12, %v3304_v38 }
 0x2a7   : > { %v1312_v8 = vpop.xlane.xlu0 %1311 }
 0x2a8   : > { %vm1469_vm14 = vcmp.eq.f32.partialorder %v3917_v18, %v1312_v8  ;;  %vm1470_vm15 = vcmp.eq.f32.partialorder %v3919_v42, %v1312_v8 }
 0x2a9   : > { %2934 = vmatprep.mubr.msk.f32.mxu1 %vm1470_vm15, %v3304_v38 }
 0x2aa   : > { %2935 = vmatmul.mubr.msk.f32.gmra.mrb[54].mxu1 %vm1469_vm14, %v3304_v38 }
 0x2ab   : > { %v1315_v41 = vpop.xlane.xlu0 %1314 }
 0x2ac   : > { %vm1471_vm0 = vcmp.eq.f32.partialorder %v3917_v18, %v1315_v41  ;;  %vm1472_vm1 = vcmp.eq.f32.partialorder %v3919_v42, %v1315_v41 }
 0x2ad   : > { %2936 = vmatprep.mubr.msk.f32.mxu1 %vm1472_vm1, %v3304_v38 }
 0x2ae   : > { %2937 = vmatmul.mubr.msk.f32.gmra.mrb[56].mxu1 %vm1471_vm0, %v3304_v38 }
 0x2af   : > { %v1318_v23 = vpop.xlane.xlu0 %1317 }
 0x2b0   : > { %vm1473_vm2 = vcmp.eq.f32.partialorder %v3917_v18, %v1318_v23  ;;  %vm1474_vm3 = vcmp.eq.f32.partialorder %v3919_v42, %v1318_v23 }
 0x2b1   : > { %2938 = vmatprep.mubr.msk.f32.mxu1 %vm1474_vm3, %v3304_v38 }
 0x2b2   : > { %2939 = vmatmul.mubr.msk.f32.gmra.mrb[58].mxu1 %vm1473_vm2, %v3304_v38 }
 0x2b3   : > { %v1321_v32 = vpop.xlane.xlu0 %1320 }
 0x2b4   : > { %vm1475_vm4 = vcmp.eq.f32.partialorder %v3917_v18, %v1321_v32  ;;  %vm1476_vm5 = vcmp.eq.f32.partialorder %v3919_v42, %v1321_v32 }
 0x2b5   : > { %2940 = vmatprep.mubr.msk.f32.mxu1 %vm1476_vm5, %v3304_v38 }
 0x2b6   : > { %2941 = vmatmul.mubr.msk.f32.gmra.mrb[60].mxu1 %vm1475_vm4, %v3304_v38 }
 0x2b7   : > { %v1324_v51 = vpop.xlane.xlu0 %1323 }
 0x2b8   : > { %vm1477_vm6 = vcmp.eq.f32.partialorder %v3917_v18, %v1324_v51  ;;  %vm1478_vm7 = vcmp.eq.f32.partialorder %v3919_v42, %v1324_v51 }
 0x2b9   : > { %2942 = vmatprep.mubr.msk.f32.mxu1 %vm1478_vm7, %v3304_v38 }
 0x2ba   : > { %2943 = vmatmul.mubr.msk.f32.gmra.mrb[62].mxu1 %vm1477_vm6, %v3304_v38 }
 0x2bb   : > { %v1327_v13 = vpop.xlane.xlu0 %1326 }
 0x2bc   : > { %vm1479_vm8 = vcmp.eq.f32.partialorder %v3917_v18, %v1327_v13  ;;  %vm1480_vm9 = vcmp.eq.f32.partialorder %v3919_v42, %v1327_v13 }
 0x2bd   : > { %2944 = vmatprep.mubr.msk.f32.mxu1 %vm1480_vm9, %v3304_v38 }
 0x2be   : > { %2945 = vmatmul.mubr.msk.f32.gmra.mrb[64].mxu1 %vm1479_vm8, %v3304_v38 }
 0x2bf   : > { %v1330_v12 = vpop.xlane.xlu0 %1329 }
 0x2c0   : > { %vm1481_vm10 = vcmp.eq.f32.partialorder %v3917_v18, %v1330_v12  ;;  %vm1482_vm11 = vcmp.eq.f32.partialorder %v3919_v42, %v1330_v12 }
 0x2c1   : > { %2946 = vmatprep.mubr.msk.f32.mxu1 %vm1482_vm11, %v3304_v38 }
 0x2c2   : > { %2947 = vmatmul.mubr.msk.f32.gmra.mrb[66].mxu1 %vm1481_vm10, %v3304_v38 }
 0x2c3   : > { %v1333_v10 = vpop.xlane.xlu0 %1332 }
 0x2c4   : > { %vm1483_vm12 = vcmp.eq.f32.partialorder %v3917_v18, %v1333_v10  ;;  %vm1484_vm13 = vcmp.eq.f32.partialorder %v3919_v42, %v1333_v10 }
 0x2c5   : > { %2948 = vmatprep.mubr.msk.f32.mxu1 %vm1484_vm13, %v3304_v38 }
 0x2c6   : > { %2949 = vmatmul.mubr.msk.f32.gmra.mrb[68].mxu1 %vm1483_vm12, %v3304_v38 }
 0x2c7   : > { %v1336_v39 = vpop.xlane.xlu0 %1335 }
 0x2c8   : > { %vm1485_vm14 = vcmp.eq.f32.partialorder %v3917_v18, %v1336_v39  ;;  %vm1486_vm15 = vcmp.eq.f32.partialorder %v3919_v42, %v1336_v39 }
 0x2c9   : > { %2950 = vmatprep.mubr.msk.f32.mxu1 %vm1486_vm15, %v3304_v38 }
 0x2ca   : > { %2951 = vmatmul.mubr.msk.f32.gmra.mrb[70].mxu1 %vm1485_vm14, %v3304_v38 }
 0x2cb   : > { %v1339_v34 = vpop.xlane.xlu0 %1338 }
 0x2cc   : > { %vm1487_vm0 = vcmp.eq.f32.partialorder %v3917_v18, %v1339_v34  ;;  %vm1488_vm1 = vcmp.eq.f32.partialorder %v3919_v42, %v1339_v34 }
 0x2cd   : > { %2952 = vmatprep.mubr.msk.f32.mxu1 %vm1488_vm1, %v3304_v38 }
 0x2ce   : > { %2953 = vmatmul.mubr.msk.f32.gmra.mrb[72].mxu1 %vm1487_vm0, %v3304_v38 }
 0x2cf   : > { %v1342_v22 = vpop.xlane.xlu0 %1341 }
 0x2d0   : > { %vm1489_vm2 = vcmp.eq.f32.partialorder %v3917_v18, %v1342_v22  ;;  %vm1490_vm3 = vcmp.eq.f32.partialorder %v3919_v42, %v1342_v22  ;;  %v1345_v59 = vpop.xlane.xlu1 %1344 }
 0x2d1   : > { %2954 = vmatprep.mubr.msk.f32.mxu1 %vm1490_vm3, %v3304_v38  ;;  %vm1492_vm4 = vcmp.eq.f32.partialorder %v3919_v42, %v1345_v59  ;;  %vm1491_vm5 = vcmp.eq.f32.partialorder %v3917_v18, %v1345_v59 }
 0x2d2   : > { %2955 = vmatmul.mubr.msk.f32.gmra.mrb[74].mxu1 %vm1489_vm2, %v3304_v38 }
 0x2d3   : > { %v779_v27 = vpop.xlane.xlu0 %778  ;;  %2956 = vmatprep.mubr.msk.f32.mxu1 %vm1492_vm4, %v3304_v38 }
 0x2d4   : > { %vm970_vm6 = vcmp.eq.f32.partialorder %v4317_v3, %v779_v27  ;;  %vm971_vm7 = vcmp.eq.f32.partialorder %v4321_v44, %v779_v27  ;;  %v782_v19 = vpop.xlane.xlu1 %781 }
 0x2d5   : > { %v1096_v54 = vsel %vm970_vm6, %v3917_v18, 256.0  ;;  %v1097_v28 = vsel %vm971_vm7, %v3919_v42, 256.0  ;;  %vm972_vm8 = vcmp.eq.f32.partialorder %v4329_v47, %v782_v19  ;;  %vm973_vm9 = vcmp.eq.f32.partialorder %v4333_v21, %v782_v19 }
 0x2d6   : > { %v1223_v15 = vmin.f32 %v1096_v54, %v1097_v28  ;;  %2957 = vmatmul.mubr.msk.f32.gmra.mrb[76].mxu1 %vm1491_vm5, %v3304_v38  ;;  %v1098_v57 = vsel %vm972_vm8, %v3917_v18, 256.0  ;;  %v1099_v33 = vsel %vm973_vm9, %v3919_v42, 256.0 }
 0x2d7   : > { %v1348_v31 = vpop.xlane.xlu0 %1347  ;;  %v1226_v44 = vmin.f32 %v1098_v57, %v1099_v33 }
 0x2d8   : > { %vm1493_vm10 = vcmp.eq.f32.partialorder %v3917_v18, %v1348_v31  ;;  %vm1494_vm11 = vcmp.eq.f32.partialorder %v3919_v42, %v1348_v31  ;;  %v1351_v3 = vpop.xlane.xlu1 %1350  ;;  %1224 = vmin.xlane.f32.xlu0 %v1223_v15 }
 0x2d9   : > { %2958 = vmatprep.mubr.msk.f32.mxu1 %vm1494_vm11, %v3304_v38  ;;  %vm1496_vm12 = vcmp.eq.f32.partialorder %v3919_v42, %v1351_v3  ;;  %vm1495_vm15 = vcmp.eq.f32.partialorder %v3917_v18, %v1351_v3 }
 0x2da   : > { %2959 = vmatmul.mubr.msk.f32.gmra.mrb[78].mxu1 %vm1493_vm10, %v3304_v38 }
 0x2db   : > { %v962_v47 = vpop.xlane.xlu0 %961  ;;  %2960 = vmatprep.mubr.msk.f32.mxu1 %vm1496_vm12, %v3304_v38 }
 0x2dc   : > { %vm1092_vm13 = vcmp.eq.f32.partialorder %v4349_v14, %v962_v47  ;;  %vm1093_vm14 = vcmp.eq.f32.partialorder %v4356_v9, %v962_v47  ;;  %1227 = vmin.xlane.f32.xlu0 %v1226_v44 }
 0x2dd   : > { %v1218_v21 = vsel %vm1092_vm13, %v3917_v18, 256.0  ;;  %v1219_v62 = vsel %vm1093_vm14, %v3919_v42, 256.0 }
 0x2de   : > { %v1406_v25 = vmin.f32 %v1218_v21, %v1219_v62  ;;  %2961 = vmatmul.mubr.msk.f32.gmra.mrb[80].mxu1 %vm1495_vm15, %v3304_v38 }
 0x2df   : > { %v1354_v4 = vpop.xlane.xlu0 %1353 }
 0x2e0   : > { %vm1497_vm0 = vcmp.eq.f32.partialorder %v3917_v18, %v1354_v4  ;;  %vm1498_vm1 = vcmp.eq.f32.partialorder %v3919_v42, %v1354_v4  ;;  %v1357_v5 = vpop.xlane.xlu1 %1356  ;;  %1407 = vmin.xlane.f32.xlu1 %v1406_v25 }
 0x2e1   : > { %2962 = vmatprep.mubr.msk.f32.mxu1 %vm1498_vm1, %v3304_v38  ;;  %vm1500_vm2 = vcmp.eq.f32.partialorder %v3919_v42, %v1357_v5  ;;  %vm1499_vm3 = vcmp.eq.f32.partialorder %v3917_v18, %v1357_v5 }
 0x2e2   : > { %2963 = vmatmul.mubr.msk.f32.gmra.mrb[82].mxu1 %vm1497_vm0, %v3304_v38 }
 0x2e3   : > { %v1360_v14 = vpop.xlane.xlu0 %1359  ;;  %2964 = vmatprep.mubr.msk.f32.mxu1 %vm1500_vm2, %v3304_v38 }
 0x2e4   : > { %vm1502_vm4 = vcmp.eq.f32.partialorder %v3919_v42, %v1360_v14  ;;  %vm1501_vm5 = vcmp.eq.f32.partialorder %v3917_v18, %v1360_v14 }
 0x2e6   : > { %2965 = vmatmul.mubr.msk.f32.gmra.mrb[84].mxu1 %vm1499_vm3, %v3304_v38 }
 0x2e7   : > { %2966 = vmatprep.mubr.msk.f32.mxu1 %vm1502_vm4, %v3304_v38  ;;  %v1363_v9 = vpop.xlane.xlu1 %1362 }
 0x2e8   : > { %vm1504_vm6 = vcmp.eq.f32.partialorder %v3919_v42, %v1363_v9  ;;  %vm1503_vm7 = vcmp.eq.f32.partialorder %v3917_v18, %v1363_v9 }
 0x2ea   : > { %2967 = vmatmul.mubr.msk.f32.gmra.mrb[86].mxu1 %vm1501_vm5, %v3304_v38 }
 0x2eb   : > { %v1366_v50 = vpop.xlane.xlu0 %1365  ;;  %2968 = vmatprep.mubr.msk.f32.mxu1 %vm1504_vm6, %v3304_v38 }
 0x2ec   : > { %vm1506_vm8 = vcmp.eq.f32.partialorder %v3919_v42, %v1366_v50  ;;  %vm1505_vm9 = vcmp.eq.f32.partialorder %v3917_v18, %v1366_v50 }
 0x2ee   : > { %2969 = vmatmul.mubr.msk.f32.gmra.mrb[88].mxu1 %vm1503_vm7, %v3304_v38 }
 0x2ef   : > { %2970 = vmatprep.mubr.msk.f32.mxu1 %vm1506_vm8, %v3304_v38  ;;  %v1369_v49 = vpop.xlane.xlu1 %1368 }
 0x2f0   : > { %vm1508_vm10 = vcmp.eq.f32.partialorder %v3919_v42, %v1369_v49  ;;  %vm1507_vm11 = vcmp.eq.f32.partialorder %v3917_v18, %v1369_v49 }
 0x2f2   : > { %2971 = vmatmul.mubr.msk.f32.gmra.mrb[90].mxu1 %vm1505_vm9, %v3304_v38 }
 0x2f3   : > { %v1372_v40 = vpop.xlane.xlu0 %1371  ;;  %2972 = vmatprep.mubr.msk.f32.mxu1 %vm1508_vm10, %v3304_v38 }
 0x2f4   : > { %vm1510_vm12 = vcmp.eq.f32.partialorder %v3919_v42, %v1372_v40  ;;  %vm1509_vm13 = vcmp.eq.f32.partialorder %v3917_v18, %v1372_v40 }
 0x2f6   : > { %2973 = vmatmul.mubr.msk.f32.gmra.mrb[92].mxu1 %vm1507_vm11, %v3304_v38 }
 0x2f7   : > { %2974 = vmatprep.mubr.msk.f32.mxu1 %vm1510_vm12, %v3304_v38  ;;  %v1375_v2 = vpop.xlane.xlu1 %1374 }
 0x2f8   : > { %vm1512_vm14 = vcmp.eq.f32.partialorder %v3919_v42, %v1375_v2  ;;  %vm1511_vm15 = vcmp.eq.f32.partialorder %v3917_v18, %v1375_v2 }
 0x2fa   : > { %2975 = vmatmul.mubr.msk.f32.gmra.mrb[94].mxu1 %vm1509_vm13, %v3304_v38 }
 0x2fb   : > { %v1378_v37 = vpop.xlane.xlu0 %1377  ;;  %2976 = vmatprep.mubr.msk.f32.mxu1 %vm1512_vm14, %v3304_v38 }
 0x2fc   : > { %vm1514_vm0 = vcmp.eq.f32.partialorder %v3919_v42, %v1378_v37  ;;  %vm1513_vm1 = vcmp.eq.f32.partialorder %v3917_v18, %v1378_v37 }
 0x2fe   : > { %2977 = vmatmul.mubr.msk.f32.gmra.mrb[96].mxu1 %vm1511_vm15, %v3304_v38 }
 0x2ff   : > { %2978 = vmatprep.mubr.msk.f32.mxu1 %vm1514_vm0, %v3304_v38  ;;  %v1381_v43 = vpop.xlane.xlu1 %1380 }
 0x300   : > { %vm1516_vm2 = vcmp.eq.f32.partialorder %v3919_v42, %v1381_v43  ;;  %vm1515_vm3 = vcmp.eq.f32.partialorder %v3917_v18, %v1381_v43 }
 0x302   : > { %2979 = vmatmul.mubr.msk.f32.gmra.mrb[98].mxu1 %vm1513_vm1, %v3304_v38 }
 0x303   : > { %v1384_v1 = vpop.xlane.xlu0 %1383  ;;  %2980 = vmatprep.mubr.msk.f32.mxu1 %vm1516_vm2, %v3304_v38 }
 0x304   : > { %vm1518_vm4 = vcmp.eq.f32.partialorder %v3919_v42, %v1384_v1  ;;  %vm1517_vm5 = vcmp.eq.f32.partialorder %v3917_v18, %v1384_v1 }
 0x306   : > { %2981 = vmatmul.mubr.msk.f32.gmra.mrb[100].mxu1 %vm1515_vm3, %v3304_v38 }
 0x307   : > { %2982 = vmatprep.mubr.msk.f32.mxu1 %vm1518_vm4, %v3304_v38  ;;  %v1387_v30 = vpop.xlane.xlu1 %1386 }
 0x308   : > { %vm1520_vm6 = vcmp.eq.f32.partialorder %v3919_v42, %v1387_v30  ;;  %vm1519_vm7 = vcmp.eq.f32.partialorder %v3917_v18, %v1387_v30 }
 0x30a   : > { %2983 = vmatmul.mubr.msk.f32.gmra.mrb[102].mxu1 %vm1517_vm5, %v3304_v38 }
 0x30b   : > { %v1900_v52 = vpop.f32.mrb[0].mxu1  ;;  %v1390_v7 = vpop.xlane.xlu0 %1389  ;;  %2984 = vmatprep.mubr.msk.f32.mxu1 %vm1520_vm6, %v3304_v38 }
 0x30c   : > { %2202 = vst [vmem:[%s4648_s15 + $0x18] sm:$0xff] %v1900_v52  ;;  %v1902_v58 = vpop.f32.mrb[1].mxu1  ;;  %vm1522_vm8 = vcmp.eq.f32.partialorder %v3919_v42, %v1390_v7  ;;  %vm1521_vm9 = vcmp.eq.f32.partialorder %v3917_v18, %v1390_v7 }
 0x30e   : > { %2985 = vmatmul.mubr.msk.f32.gmra.mrb[104].mxu1 %vm1519_vm7, %v3304_v38 }
 0x30f   : > { %2986 = vmatprep.mubr.msk.f32.mxu1 %vm1522_vm8, %v3304_v38  ;;  %v1393_v53 = vpop.xlane.xlu1 %1392 }
 0x310   : > { %vm1524_vm10 = vcmp.eq.f32.partialorder %v3919_v42, %v1393_v53  ;;  %vm1523_vm11 = vcmp.eq.f32.partialorder %v3917_v18, %v1393_v53 }
 0x311   : > { %v1905_v45 = vpop.f32.mrb[2].mxu1 }
 0x312   : > { %2203 = vst [vmem:[%s4648_s15 + $0x20] sm:$0xff] %v1905_v45  ;;  %v1907_v6 = vpop.f32.mrb[3].mxu1  ;;  %2987 = vmatmul.mubr.msk.f32.gmra.mrb[106].mxu1 %vm1521_vm9, %v3304_v38 }
 0x313   : > { %v1396_v35 = vpop.xlane.xlu0 %1395  ;;  %2988 = vmatprep.mubr.msk.f32.mxu1 %vm1524_vm10, %v3304_v38 }
 0x314   : > { %vm1526_vm12 = vcmp.eq.f32.partialorder %v3919_v42, %v1396_v35  ;;  %vm1525_vm15 = vcmp.eq.f32.partialorder %v3917_v18, %v1396_v35 }
 0x315   : > { %v1910_v16 = vpop.f32.mrb[4].mxu1 }
 0x316   : > { %2204 = vst [vmem:[%s4648_s15 + $0x28] sm:$0xff] %v1910_v16  ;;  %v1912_v24 = vpop.f32.mrb[5].mxu1  ;;  %2989 = vmatmul.mubr.msk.f32.gmra.mrb[108].mxu1 %vm1523_vm11, %v3304_v38 }
 0x317   : > { %v1222_v46 = vpop.xlane.xlu0 %1221  ;;  %2990 = vmatprep.mubr.msk.f32.mxu1 %vm1526_vm12, %v3304_v38 }
 0x318   : > { %vm1409_vm13 = vcmp.eq.f32.partialorder %v3917_v18, %v1222_v46  ;;  %vm1410_vm14 = vcmp.eq.f32.partialorder %v3919_v42, %v1222_v46  ;;  %v1399_v0 = vpop.xlane.xlu1 %1398 }
 0x319   : > { %2874 = vmatprep.mubr.msk.f32.mxu0 %vm1410_vm14, %v3304_v38  ;;  %v1915_v56 = vpop.f32.mrb[6].mxu1  ;;  %vm1528_vm0 = vcmp.eq.f32.partialorder %v3919_v42, %v1399_v0  ;;  %vm1527_vm1 = vcmp.eq.f32.partialorder %v3917_v18, %v1399_v0 }
 0x31a   : > { %2205 = vst [vmem:[%s4648_s15 + $0x30] sm:$0xff] %v1915_v56  ;;  %2875 = vmatmul.mubr.msk.f32.vlgmr.msra.gmra.mrb[128].mxu0 %vm1409_vm13, %v3304_v38  ;;  %v1917_v29 = vpop.f32.mrb[7].mxu1  ;;  %2991 = vmatmul.mubr.msk.f32.gmra.mrb[110].mxu1 %vm1525_vm15, %v3304_v38 }
 0x31b   : > { %2992 = vmatprep.mubr.msk.f32.mxu1 %vm1528_vm0, %v3304_v38 }
 0x31d   : > { %v1920_v60 = vpop.f32.mrb[8].mxu1  ;;  %v1402_v63 = vpop.xlane.xlu1 %1401 }
 0x31e   : > { %2206 = vst [vmem:[%s4648_s15 + $0x38] sm:$0xff] %v1920_v60  ;;  %vm1530_vm2 = vcmp.eq.f32.partialorder %v3919_v42, %v1402_v63  ;;  %v1922_v17 = vpop.f32.mrb[9].mxu1  ;;  %2993 = vmatmul.mubr.msk.f32.gmra.mrb[112].mxu1 %vm1527_vm1, %v3304_v38  ;;  %vm1529_vm3 = vcmp.eq.f32.partialorder %v3917_v18, %v1402_v63 }
 0x31f   : > { %2994 = vmatprep.mubr.msk.f32.mxu1 %vm1530_vm2, %v3304_v38 }
 0x321   : > { %v1925_v61 = vpop.f32.mrb[10].mxu1  ;;  %v1405_v26 = vpop.xlane.xlu1 %1404 }
 0x322   : > { %2207 = vst [vmem:[%s4648_s15 + $0x40] sm:$0xff] %v1925_v61  ;;  %vm1532_vm4 = vcmp.eq.f32.partialorder %v3919_v42, %v1405_v26  ;;  %v1927_v11 = vpop.f32.mrb[11].mxu1  ;;  %2995 = vmatmul.mubr.msk.f32.gmra.mrb[114].mxu1 %vm1529_vm3, %v3304_v38  ;;  %vm1531_vm5 = vcmp.eq.f32.partialorder %v3917_v18, %v1405_v26 }
 0x323   : > { %2996 = vmatprep.mubr.msk.f32.mxu1 %vm1532_vm4, %v3304_v38 }
 0x325   : > { %v1930_v48 = vpop.f32.mrb[12].mxu1 }
 0x326   : > { %2208 = vst [vmem:[%s4648_s15 + $0x48] sm:$0xff] %v1930_v48  ;;  %v1932_v55 = vpop.f32.mrb[13].mxu1  ;;  %2997 = vmatmul.mubr.msk.f32.gmra.mrb[116].mxu1 %vm1531_vm5, %v3304_v38 }
 0x329   : > { %v1935_v36 = vpop.f32.mrb[14].mxu1 }
 0x32a   : > { %2209 = vst [vmem:[%s4648_s15 + $0x50] sm:$0xff] %v1935_v36  ;;  %v1937_v20 = vpop.f32.mrb[15].mxu1 }
 0x32d   : > { %v1940_v8 = vpop.f32.mrb[16].mxu1 }
 0x32e   : > { %2210 = vst [vmem:[%s4648_s15 + $0x58] sm:$0xff] %v1940_v8  ;;  %v1942_v41 = vpop.f32.mrb[17].mxu1 }
 0x331   : > { %v1945_v23 = vpop.f32.mrb[18].mxu1 }
 0x332   : > { %2211 = vst [vmem:[%s4648_s15 + $0x60] sm:$0xff] %v1945_v23  ;;  %v1947_v32 = vpop.f32.mrb[19].mxu1 }
 0x335   : > { %v1950_v51 = vpop.f32.mrb[20].mxu1 }
 0x336   : > { %2212 = vst [vmem:[%s4648_s15 + $0x68] sm:$0xff] %v1950_v51  ;;  %v1952_v13 = vpop.f32.mrb[21].mxu1 }
 0x339   : > { %v1955_v12 = vpop.f32.mrb[22].mxu1 }
 0x33a   : > { %2213 = vst [vmem:[%s4648_s15 + $0x70] sm:$0xff] %v1955_v12  ;;  %v1957_v10 = vpop.f32.mrb[23].mxu1 }
 0x33d   : > { %v1960_v39 = vpop.f32.mrb[24].mxu1 }
 0x33e   : > { %2214 = vst [vmem:[%s4648_s15 + $0x78] sm:$0xff] %v1960_v39  ;;  %v1962_v34 = vpop.f32.mrb[25].mxu1 }
 0x341   : > { %v1965_v22 = vpop.f32.mrb[26].mxu1 }
 0x342   : > { %2215 = vst [vmem:[%s4648_s15 + $0x80] sm:$0xff] %v1965_v22  ;;  %v1967_v59 = vpop.f32.mrb[27].mxu1 }
 0x345   : > { %v1970_v27 = vpop.f32.mrb[28].mxu1 }
 0x346   : > { %2216 = vst [vmem:[%s4648_s15 + $0x88] sm:$0xff] %v1970_v27  ;;  %v1972_v19 = vpop.f32.mrb[29].mxu1 }
 0x349   : > { %v1975_v54 = vpop.f32.mrb[30].mxu1 }
 0x34a   : > { %2217 = vst [vmem:[%s4648_s15 + $0x90] sm:$0xff] %v1975_v54  ;;  %v1977_v28 = vpop.f32.mrb[31].mxu1 }
 0x34d   : > { %v1980_v15 = vpop.f32.mrb[32].mxu1 }
 0x34e   : > { %2218 = vst [vmem:[%s4648_s15 + $0x98] sm:$0xff] %v1980_v15  ;;  %v1982_v57 = vpop.f32.mrb[33].mxu1 }
 0x351   : > { %v1985_v33 = vpop.f32.mrb[34].mxu1 }
 0x352   : > { %2219 = vst [vmem:[%s4648_s15 + $0xa0] sm:$0xff] %v1985_v33  ;;  %v1987_v31 = vpop.f32.mrb[35].mxu1 }
 0x355   : > { %v1990_v3 = vpop.f32.mrb[36].mxu1 }
 0x356   : > { %2220 = vst [vmem:[%s4648_s15 + $0xa8] sm:$0xff] %v1990_v3  ;;  %v1992_v44 = vpop.f32.mrb[37].mxu1 }
 0x359   : > { %v1995_v47 = vpop.f32.mrb[38].mxu1 }
 0x35a   : > { %2221 = vst [vmem:[%s4648_s15 + $0xb0] sm:$0xff] %v1995_v47  ;;  %v1997_v21 = vpop.f32.mrb[39].mxu1 }
 0x35d   : > { %v2000_v62 = vpop.f32.mrb[40].mxu1 }
 0x35e   : > { %2222 = vst [vmem:[%s4648_s15 + $0xb8] sm:$0xff] %v2000_v62  ;;  %v2002_v25 = vpop.f32.mrb[41].mxu1 }
 0x365   : > { %v2005_v4 = vpop.f32.mrb[42].mxu1  ;;  %v1225_v5 = vpop.xlane.xlu0 %1224 }
 0x366   : > { %2223 = vst [vmem:[%s4648_s15 + $0xc0] sm:$0xff] %v2005_v4  ;;  %vm1411_vm6 = vcmp.eq.f32.partialorder %v3917_v18, %v1225_v5  ;;  %vm1412_vm7 = vcmp.eq.f32.partialorder %v3919_v42, %v1225_v5  ;;  %v2007_v14 = vpop.f32.mrb[43].mxu1 }
 0x367   : > { %2876 = vmatprep.mubr.msk.f32.mxu0 %vm1412_vm7, %v3304_v38 }
 0x368   : > { %2877 = vmatmul.mubr.msk.f32.gmra.mrb[130].mxu0 %vm1411_vm6, %v3304_v38 }
 0x369   : > { %v2010_v9 = vpop.f32.mrb[44].mxu1  ;;  %v1228_v50 = vpop.xlane.xlu0 %1227 }
 0x36a   : > { %2224 = vst [vmem:[%s4648_s15 + $0xc8] sm:$0xff] %v2010_v9  ;;  %vm1413_vm8 = vcmp.eq.f32.partialorder %v3917_v18, %v1228_v50  ;;  %vm1414_vm9 = vcmp.eq.f32.partialorder %v3919_v42, %v1228_v50  ;;  %v2012_v49 = vpop.f32.mrb[45].mxu1 }
 0x36b   : > { %2878 = vmatprep.mubr.msk.f32.mxu0 %vm1414_vm9, %v3304_v38 }
 0x36c   : > { %2879 = vmatmul.mubr.msk.f32.gmra.mrb[132].mxu0 %vm1413_vm8, %v3304_v38 }
 0x36d   : > { %v2015_v40 = vpop.f32.mrb[46].mxu1  ;;  %v1408_v2 = vpop.xlane.xlu1 %1407 }
 0x36e   : > { %2225 = vst [vmem:[%s4648_s15 + $0xd0] sm:$0xff] %v2015_v40  ;;  %vm1533_vm10 = vcmp.eq.f32.partialorder %v3917_v18, %v1408_v2  ;;  %vm1534_vm11 = vcmp.eq.f32.partialorder %v3919_v42, %v1408_v2  ;;  %v2017_v37 = vpop.f32.mrb[47].mxu1 }
 0x36f   : > { %2998 = vmatprep.mubr.msk.f32.mxu1 %vm1534_vm11, %v3304_v38 }
 0x370   : > { %2999 = vmatmul.mubr.msk.f32.gmra.mrb[118].mxu1 %vm1533_vm10, %v3304_v38 }
 0x371   : > { %v2020_v43 = vpop.f32.mrb[48].mxu1 }
 0x372   : > { %2226 = vst [vmem:[%s4648_s15 + $0xd8] sm:$0xff] %v2020_v43  ;;  %v2022_v1 = vpop.f32.mrb[49].mxu1 }
 0x375   : > { %v2025_v30 = vpop.f32.mrb[50].mxu1 }
 0x376   : > { %2227 = vst [vmem:[%s4648_s15 + $0xe0] sm:$0xff] %v2025_v30  ;;  %v2027_v52 = vpop.f32.mrb[51].mxu1 }
 0x379   : > { %v2030_v7 = vpop.f32.mrb[52].mxu1 }
 0x37a   : > { %2228 = vst [vmem:[%s4648_s15 + $0xe8] sm:$0xff] %v2030_v7  ;;  %v2032_v18 = vpop.f32.mrb[53].mxu1 }
 0x37d   : > { %v2035_v58 = vpop.f32.mrb[54].mxu1 }
 0x37e   : > { %2229 = vst [vmem:[%s4648_s15 + $0xf0] sm:$0xff] %v2035_v58  ;;  %v2037_v42 = vpop.f32.mrb[55].mxu1 }
 0x381   : > { %v2040_v53 = vpop.f32.mrb[56].mxu1 }
 0x382   : > { %2230 = vst [vmem:[%s4648_s15 + $0xf8] sm:$0xff] %v2040_v53  ;;  %v2042_v38 = vpop.f32.mrb[57].mxu1 }
 0x385   : > { %v2045_v45 = vpop.f32.mrb[58].mxu1 }
 0x386   : > { %2231 = vst [vmem:[%s4648_s15 + $0x100] sm:$0xff] %v2045_v45  ;;  %v2047_v6 = vpop.f32.mrb[59].mxu1 }
 0x389   : > { %v2050_v35 = vpop.f32.mrb[60].mxu1 }
 0x38a   : > { %2232 = vst [vmem:[%s4648_s15 + $0x108] sm:$0xff] %v2050_v35  ;;  %v2052_v16 = vpop.f32.mrb[61].mxu1 }
 0x38d   : > { %v2055_v24 = vpop.f32.mrb[62].mxu1 }
 0x38e   : > { %2233 = vst [vmem:[%s4648_s15 + $0x110] sm:$0xff] %v2055_v24  ;;  %v2057_v46 = vpop.f32.mrb[63].mxu1 }
 0x391   : > { %v2060_v0 = vpop.f32.mrb[64].mxu1 }
 0x392   : > { %2234 = vst [vmem:[%s4648_s15 + $0x118] sm:$0xff] %v2060_v0  ;;  %v2062_v56 = vpop.f32.mrb[65].mxu1 }
 0x395   : > { %v2065_v29 = vpop.f32.mrb[66].mxu1 }
 0x396   : > { %2235 = vst [vmem:[%s4648_s15 + $0x120] sm:$0xff] %v2065_v29  ;;  %v2067_v60 = vpop.f32.mrb[67].mxu1 }
 0x399   : > { %v2070_v63 = vpop.f32.mrb[68].mxu1 }
 0x39a   : > { %2236 = vst [vmem:[%s4648_s15 + $0x128] sm:$0xff] %v2070_v63  ;;  %v2072_v17 = vpop.f32.mrb[69].mxu1 }
 0x39d   : > { %v2075_v61 = vpop.f32.mrb[70].mxu1 }
 0x39e   : > { %2237 = vst [vmem:[%s4648_s15 + $0x130] sm:$0xff] %v2075_v61  ;;  %v2077_v26 = vpop.f32.mrb[71].mxu1 }
 0x3a1   : > { %v2080_v11 = vpop.f32.mrb[72].mxu1 }
 0x3a2   : > { %2238 = vst [vmem:[%s4648_s15 + $0x138] sm:$0xff] %v2080_v11  ;;  %v2082_v48 = vpop.f32.mrb[73].mxu1 }
 0x3a5   : > { %v2085_v55 = vpop.f32.mrb[74].mxu1 }
 0x3a6   : > { %2239 = vst [vmem:[%s4648_s15 + $0x140] sm:$0xff] %v2085_v55  ;;  %v2087_v36 = vpop.f32.mrb[75].mxu1 }
 0x3a9   : > { %v2090_v20 = vpop.f32.mrb[76].mxu1 }
 0x3aa   : > { %2240 = vst [vmem:[%s4648_s15 + $0x148] sm:$0xff] %v2090_v20  ;;  %v2092_v8 = vpop.f32.mrb[77].mxu1 }
 0x3ad   : > { %v2095_v41 = vpop.f32.mrb[78].mxu1 }
 0x3ae   : > { %2241 = vst [vmem:[%s4648_s15 + $0x150] sm:$0xff] %v2095_v41  ;;  %v2097_v23 = vpop.f32.mrb[79].mxu1 }
 0x3b1   : > { %v2100_v32 = vpop.f32.mrb[80].mxu1 }
 0x3b2   : > { %2242 = vst [vmem:[%s4648_s15 + $0x158] sm:$0xff] %v2100_v32  ;;  %v2102_v51 = vpop.f32.mrb[81].mxu1 }
 0x3b5   : > { %v2105_v13 = vpop.f32.mrb[82].mxu1 }
 0x3b6   : > { %2243 = vst [vmem:[%s4648_s15 + $0x160] sm:$0xff] %v2105_v13  ;;  %v2107_v12 = vpop.f32.mrb[83].mxu1 }
 0x3b9   : > { %v2110_v10 = vpop.f32.mrb[84].mxu1 }
 0x3ba   : > { %2244 = vst [vmem:[%s4648_s15 + $0x168] sm:$0xff] %v2110_v10  ;;  %v2112_v39 = vpop.f32.mrb[85].mxu1 }
 0x3bd   : > { %v2115_v34 = vpop.f32.mrb[86].mxu1 }
 0x3be   : > { %2245 = vst [vmem:[%s4648_s15 + $0x170] sm:$0xff] %v2115_v34  ;;  %v2117_v22 = vpop.f32.mrb[87].mxu1 }
 0x3c1   : > { %v2120_v59 = vpop.f32.mrb[88].mxu1 }
 0x3c2   : > { %2246 = vst [vmem:[%s4648_s15 + $0x178] sm:$0xff] %v2120_v59  ;;  %v2122_v27 = vpop.f32.mrb[89].mxu1 }
 0x3c5   : > { %v2125_v19 = vpop.f32.mrb[90].mxu1 }
 0x3c6   : > { %2247 = vst [vmem:[%s4648_s15 + $0x180] sm:$0xff] %v2125_v19  ;;  %v2127_v54 = vpop.f32.mrb[91].mxu1 }
 0x3c9   : > { %v2130_v28 = vpop.f32.mrb[92].mxu1 }
 0x3ca   : > { %2248 = vst [vmem:[%s4648_s15 + $0x188] sm:$0xff] %v2130_v28  ;;  %v2132_v15 = vpop.f32.mrb[93].mxu1 }
 0x3cd   : > { %v2135_v57 = vpop.f32.mrb[94].mxu1 }
 0x3ce   : > { %2249 = vst [vmem:[%s4648_s15 + $0x190] sm:$0xff] %v2135_v57  ;;  %v2137_v33 = vpop.f32.mrb[95].mxu1 }
 0x3d1   : > { %v2140_v31 = vpop.f32.mrb[96].mxu1 }
 0x3d2   : > { %2250 = vst [vmem:[%s4648_s15 + $0x198] sm:$0xff] %v2140_v31  ;;  %v2142_v3 = vpop.f32.mrb[97].mxu1 }
 0x3d5   : > { %v2145_v44 = vpop.f32.mrb[98].mxu1 }
 0x3d6   : > { %2251 = vst [vmem:[%s4648_s15 + $0x1a0] sm:$0xff] %v2145_v44  ;;  %v2147_v47 = vpop.f32.mrb[99].mxu1 }
 0x3d9   : > { %v2150_v21 = vpop.f32.mrb[100].mxu1 }
 0x3da   : > { %2252 = vst [vmem:[%s4648_s15 + $0x1a8] sm:$0xff] %v2150_v21  ;;  %v2152_v62 = vpop.f32.mrb[101].mxu1 }
 0x3dd   : > { %v2155_v25 = vpop.f32.mrb[102].mxu1 }
 0x3de   : > { %2253 = vst [vmem:[%s4648_s15 + $0x1b0] sm:$0xff] %v2155_v25  ;;  %v2157_v4 = vpop.f32.mrb[103].mxu1 }
 0x3e1   : > { %v2160_v5 = vpop.f32.mrb[104].mxu1 }
 0x3e2   : > { %2254 = vst [vmem:[%s4648_s15 + $0x1b8] sm:$0xff] %v2160_v5  ;;  %v2162_v14 = vpop.f32.mrb[105].mxu1 }
 0x3e5   : > { %v2165_v9 = vpop.f32.mrb[106].mxu1 }
 0x3e6   : > { %2255 = vst [vmem:[%s4648_s15 + $0x1c0] sm:$0xff] %v2165_v9  ;;  %v2167_v50 = vpop.f32.mrb[107].mxu1 }
 0x3e9   : > { %v2170_v49 = vpop.f32.mrb[108].mxu1 }
 0x3ea   : > { %2256 = vst [vmem:[%s4648_s15 + $0x1c8] sm:$0xff] %v2170_v49  ;;  %v2172_v40 = vpop.f32.mrb[109].mxu1 }
 0x3ed   : > { %v1885_v2 = vpop.f32.mrb[128].mxu0  ;;  %v2175_v37 = vpop.f32.mrb[110].mxu1 }
 0x3ee   : > { %2199 = vst [vmem:[%s4648_s15] sm:$0xff] %v1885_v2  ;;  %2257 = vst [vmem:[%s4648_s15 + $0x1d0] sm:$0xff] %v2175_v37  ;;  %v1887_v43 = vpop.f32.mrb[129].mxu0  ;;  %v2177_v1 = vpop.f32.mrb[111].mxu1 }
 0x3f1   : > { %v2180_v30 = vpop.f32.mrb[112].mxu1 }
 0x3f2   : > { %2258 = vst [vmem:[%s4648_s15 + $0x1d8] sm:$0xff] %v2180_v30  ;;  %v2182_v52 = vpop.f32.mrb[113].mxu1 }
 0x3f5   : > { %v2185_v7 = vpop.f32.mrb[114].mxu1 }
 0x3f6   : > { %2259 = vst [vmem:[%s4648_s15 + $0x1e0] sm:$0xff] %v2185_v7  ;;  %v2187_v18 = vpop.f32.mrb[115].mxu1 }
 0x3f9   : > { %v2190_v58 = vpop.f32.mrb[116].mxu1 }
 0x3fa   : > { %2260 = vst [vmem:[%s4648_s15 + $0x1e8] sm:$0xff] %v2190_v58  ;;  %v2192_v42 = vpop.f32.mrb[117].mxu1 }
 0x43b   : > { %v1890_v53 = vpop.f32.mrb[130].mxu0 }
 0x43c   : > { %2200 = vst [vmem:[%s4648_s15 + $0x8] sm:$0xff] %v1890_v53  ;;  %v1892_v38 = vpop.f32.mrb[131].mxu0 }
 0x43e   : > { %2268 = sbr.rel (!%p3355_p4) target bundleno = 1177 (0x499), region = 40 }
 0x43f   : > { %v1895_v45 = vpop.f32.mrb[132].mxu0 }
 0x440   : > { %2201 = vst [vmem:[%s4648_s15 + $0x10] sm:$0xff] %v1895_v45  ;;  %v1897_v6 = vpop.f32.mrb[133].mxu0 }
 0x443   : > { %v2195_v35 = vpop.f32.mrb[118].mxu1 }
 0x444   : > { %2261 = vst [vmem:[%s4648_s15 + $0x1f0] sm:$0xff] %v2195_v35  ;;  %v2197_v16 = vpop.f32.mrb[119].mxu1 }
 0x445   : > { %s5078_s8 = smov (!%p2271_p8, %s2270_s8), 63 }
 0x446   : > { %s3000_s14 = sshll.u32 %s5078_s8, 7 }
 0x447   : > { %p3003_p9 = scmp.eq.s32.totalorder %s3000_s14, 0 }
 0x448   : > { %3210 = sdivrem.u32 (!%p3003_p9), %s5078_s8, 63 }
 0x449   : > { %2279 = sbr.rel (%p3003_p9) target bundleno = 1177 (0x499), region = 44 }
 0x451   : > { %s4768_s23 = spop.drf %3210 }
 0x452   : > { %p3004_p10 = scmp.le.s32.totalorder %s4768_s23, 0 }
 0x453   : > { %s5069_s18 = smov (!%p3004_p10), %s4762_s13  ;;  %s5070_s12 = smov (!%p3004_p10), %s4648_s15 }
 0x454   : > { %2683 = sbr.rel (%p3004_p10) target bundleno = 1148 (0x47c), region = 120  ;;  %s4777_s17 = smov (!%p3004_p10), 0  }
 0x455   : > { %s4779_s20 = smov (!%p3004_p10), 0  }
 0x45b LB: >> { %v2467_v24 = vld [vmem:[%s3276_s12] sm:$0xff]  ;;  %v2469_v46 = vld [vmem:[%s3276_s12 + $0x8] sm:$0xff]  ;;  %v2471_v0 = vld [vmem:[%s3276_s12 + $0x10] sm:$0xff]  ;;  %s2593_s21 = sadd.s32 1, %s3280_s17  ;;  %s2461_s20 = sadd.s32 1, %s3284_s20   ;;  %s3284_s20 = sphi %s4779_s20, %s2461_s20   ;;  %s3280_s17 = sphi %s4777_s17, %s5073_s17   ;;  %s3276_s12 = sphi %s5070_s12, %s5072_s12   ;;  %s3272_s18 = sphi %s5069_s18, %s5071_s18  }
 0x45c   : >> { %2468 = vst [vmem:[%s3272_s18] sm:$0xff] %v2467_v24  ;;  %2470 = vst [vmem:[%s3272_s18 + $0x8] sm:$0xff] %v2469_v46  ;;  %v2473_v56 = vld [vmem:[%s3276_s12 + $0x18] sm:$0xff]  ;;  %v2475_v29 = vld [vmem:[%s3276_s12 + $0x20] sm:$0xff]  ;;  %p2594_p11 = scmp.ge.s32.totalorder %s2593_s21, %s4768_s23  ;;  %p2460_p12 = scmp.ge.s32.totalorder %s2461_s20, %s4768_s23 }
 0x45d   : >> { %2472 = vst [vmem:[%s3272_s18 + $0x10] sm:$0xff] %v2471_v0  ;;  %v2477_v60 = vld [vmem:[%s3276_s12 + $0x28] sm:$0xff]  ;;  %2474 = vst [vmem:[%s3272_s18 + $0x18] sm:$0xff] %v2473_v56  ;;  %v2479_v63 = vld [vmem:[%s3276_s12 + $0x30] sm:$0xff] }
 0x45e   : >> { %2476 = vst [vmem:[%s3272_s18 + $0x20] sm:$0xff] %v2475_v29  ;;  %2478 = vst [vmem:[%s3272_s18 + $0x28] sm:$0xff] %v2477_v60  ;;  %v2481_v17 = vld [vmem:[%s3276_s12 + $0x38] sm:$0xff]  ;;  %v2483_v61 = vld [vmem:[%s3276_s12 + $0x40] sm:$0xff]  ;;  %s5080_s21 = smov (%p2594_p11, %s2593_s21), 0 }
 0x45f   : >> { %2480 = vst [vmem:[%s3272_s18 + $0x30] sm:$0xff] %v2479_v63  ;;  %2482 = vst [vmem:[%s3272_s18 + $0x38] sm:$0xff] %v2481_v17  ;;  %v2485_v26 = vld [vmem:[%s3276_s12 + $0x48] sm:$0xff]  ;;  %v2487_v11 = vld [vmem:[%s3276_s12 + $0x50] sm:$0xff]  ;;  %s2596_s24 = smul.u32 504, %s5080_s21  ;;  %s5073_s17 = smov %s5080_s21 }
 0x460   : >> { %2484 = vst [vmem:[%s3272_s18 + $0x40] sm:$0xff] %v2483_v61  ;;  %v2489_v48 = vld [vmem:[%s3276_s12 + $0x58] sm:$0xff]  ;;  %2486 = vst [vmem:[%s3272_s18 + $0x48] sm:$0xff] %v2485_v26  ;;  %v2491_v55 = vld [vmem:[%s3276_s12 + $0x60] sm:$0xff] }
 0x461   : >> { %2488 = vst [vmem:[%s3272_s18 + $0x50] sm:$0xff] %v2487_v11  ;;  %2490 = vst [vmem:[%s3272_s18 + $0x58] sm:$0xff] %v2489_v48  ;;  %v2493_v36 = vld [vmem:[%s3276_s12 + $0x68] sm:$0xff]  ;;  %v2495_v20 = vld [vmem:[%s3276_s12 + $0x70] sm:$0xff]  ;;  %s4841_s25 = scalar_lea.vmem %s4648_s15, %s2596_s24 [#allocation2]   ;;  %s4844_s26 = scalar_lea.vmem %s4762_s13, %s2596_s24  }
 0x462   : >> { %2492 = vst [vmem:[%s3272_s18 + $0x60] sm:$0xff] %v2491_v55  ;;  %2494 = vst [vmem:[%s3272_s18 + $0x68] sm:$0xff] %v2493_v36  ;;  %v2497_v8 = vld [vmem:[%s3276_s12 + $0x78] sm:$0xff]  ;;  %v2499_v41 = vld [vmem:[%s3276_s12 + $0x80] sm:$0xff] }
 0x463   : >> { %2496 = vst [vmem:[%s3272_s18 + $0x70] sm:$0xff] %v2495_v20  ;;  %v2501_v23 = vld [vmem:[%s3276_s12 + $0x88] sm:$0xff]  ;;  %2498 = vst [vmem:[%s3272_s18 + $0x78] sm:$0xff] %v2497_v8  ;;  %v2503_v32 = vld [vmem:[%s3276_s12 + $0x90] sm:$0xff] }
 0x464   : >> { %2500 = vst [vmem:[%s3272_s18 + $0x80] sm:$0xff] %v2499_v41  ;;  %2502 = vst [vmem:[%s3272_s18 + $0x88] sm:$0xff] %v2501_v23  ;;  %v2505_v51 = vld [vmem:[%s3276_s12 + $0x98] sm:$0xff]  ;;  %v2507_v13 = vld [vmem:[%s3276_s12 + $0xa0] sm:$0xff] }
 0x465   : >> { %2504 = vst [vmem:[%s3272_s18 + $0x90] sm:$0xff] %v2503_v32  ;;  %2506 = vst [vmem:[%s3272_s18 + $0x98] sm:$0xff] %v2505_v51  ;;  %v2509_v12 = vld [vmem:[%s3276_s12 + $0xa8] sm:$0xff]  ;;  %v2511_v10 = vld [vmem:[%s3276_s12 + $0xb0] sm:$0xff] }
 0x466   : >> { %2508 = vst [vmem:[%s3272_s18 + $0xa0] sm:$0xff] %v2507_v13  ;;  %v2513_v39 = vld [vmem:[%s3276_s12 + $0xb8] sm:$0xff]  ;;  %2510 = vst [vmem:[%s3272_s18 + $0xa8] sm:$0xff] %v2509_v12  ;;  %v2515_v34 = vld [vmem:[%s3276_s12 + $0xc0] sm:$0xff] }
 0x467   : >> { %2512 = vst [vmem:[%s3272_s18 + $0xb0] sm:$0xff] %v2511_v10  ;;  %2514 = vst [vmem:[%s3272_s18 + $0xb8] sm:$0xff] %v2513_v39  ;;  %v2517_v22 = vld [vmem:[%s3276_s12 + $0xc8] sm:$0xff]  ;;  %v2519_v59 = vld [vmem:[%s3276_s12 + $0xd0] sm:$0xff] }
 0x468   : >> { %2516 = vst [vmem:[%s3272_s18 + $0xc0] sm:$0xff] %v2515_v34  ;;  %2518 = vst [vmem:[%s3272_s18 + $0xc8] sm:$0xff] %v2517_v22  ;;  %v2521_v27 = vld [vmem:[%s3276_s12 + $0xd8] sm:$0xff]  ;;  %v2523_v19 = vld [vmem:[%s3276_s12 + $0xe0] sm:$0xff] }
 0x469   : >> { %2520 = vst [vmem:[%s3272_s18 + $0xd0] sm:$0xff] %v2519_v59  ;;  %v2525_v54 = vld [vmem:[%s3276_s12 + $0xe8] sm:$0xff]  ;;  %2522 = vst [vmem:[%s3272_s18 + $0xd8] sm:$0xff] %v2521_v27  ;;  %v2527_v28 = vld [vmem:[%s3276_s12 + $0xf0] sm:$0xff] }
 0x46a   : >> { %2524 = vst [vmem:[%s3272_s18 + $0xe0] sm:$0xff] %v2523_v19  ;;  %2526 = vst [vmem:[%s3272_s18 + $0xe8] sm:$0xff] %v2525_v54  ;;  %v2529_v15 = vld [vmem:[%s3276_s12 + $0xf8] sm:$0xff]  ;;  %v2531_v57 = vld [vmem:[%s3276_s12 + $0x100] sm:$0xff] }
 0x46b   : >> { %2528 = vst [vmem:[%s3272_s18 + $0xf0] sm:$0xff] %v2527_v28  ;;  %2530 = vst [vmem:[%s3272_s18 + $0xf8] sm:$0xff] %v2529_v15  ;;  %v2533_v33 = vld [vmem:[%s3276_s12 + $0x108] sm:$0xff]  ;;  %v2535_v31 = vld [vmem:[%s3276_s12 + $0x110] sm:$0xff] }
 0x46c   : >> { %2532 = vst [vmem:[%s3272_s18 + $0x100] sm:$0xff] %v2531_v57  ;;  %v2537_v3 = vld [vmem:[%s3276_s12 + $0x118] sm:$0xff]  ;;  %2534 = vst [vmem:[%s3272_s18 + $0x108] sm:$0xff] %v2533_v33  ;;  %v2539_v44 = vld [vmem:[%s3276_s12 + $0x120] sm:$0xff] }
 0x46d   : >> { %2536 = vst [vmem:[%s3272_s18 + $0x110] sm:$0xff] %v2535_v31  ;;  %2538 = vst [vmem:[%s3272_s18 + $0x118] sm:$0xff] %v2537_v3  ;;  %v2541_v47 = vld [vmem:[%s3276_s12 + $0x128] sm:$0xff]  ;;  %v2543_v21 = vld [vmem:[%s3276_s12 + $0x130] sm:$0xff] }
 0x46e   : >> { %2540 = vst [vmem:[%s3272_s18 + $0x120] sm:$0xff] %v2539_v44  ;;  %2542 = vst [vmem:[%s3272_s18 + $0x128] sm:$0xff] %v2541_v47  ;;  %v2545_v62 = vld [vmem:[%s3276_s12 + $0x138] sm:$0xff]  ;;  %v2547_v25 = vld [vmem:[%s3276_s12 + $0x140] sm:$0xff] }
 0x46f   : >> { %2544 = vst [vmem:[%s3272_s18 + $0x130] sm:$0xff] %v2543_v21  ;;  %v2549_v4 = vld [vmem:[%s3276_s12 + $0x148] sm:$0xff]  ;;  %2546 = vst [vmem:[%s3272_s18 + $0x138] sm:$0xff] %v2545_v62  ;;  %v2551_v5 = vld [vmem:[%s3276_s12 + $0x150] sm:$0xff] }
 0x470   : >> { %2548 = vst [vmem:[%s3272_s18 + $0x140] sm:$0xff] %v2547_v25  ;;  %2550 = vst [vmem:[%s3272_s18 + $0x148] sm:$0xff] %v2549_v4  ;;  %v2553_v14 = vld [vmem:[%s3276_s12 + $0x158] sm:$0xff]  ;;  %v2555_v9 = vld [vmem:[%s3276_s12 + $0x160] sm:$0xff] }
 0x471   : >> { %2552 = vst [vmem:[%s3272_s18 + $0x150] sm:$0xff] %v2551_v5  ;;  %2554 = vst [vmem:[%s3272_s18 + $0x158] sm:$0xff] %v2553_v14  ;;  %v2557_v50 = vld [vmem:[%s3276_s12 + $0x168] sm:$0xff]  ;;  %v2559_v49 = vld [vmem:[%s3276_s12 + $0x170] sm:$0xff] }
 0x472   : >> { %2556 = vst [vmem:[%s3272_s18 + $0x160] sm:$0xff] %v2555_v9  ;;  %v2561_v40 = vld [vmem:[%s3276_s12 + $0x178] sm:$0xff]  ;;  %2558 = vst [vmem:[%s3272_s18 + $0x168] sm:$0xff] %v2557_v50  ;;  %v2563_v2 = vld [vmem:[%s3276_s12 + $0x180] sm:$0xff] }
 0x473   : >> { %2560 = vst [vmem:[%s3272_s18 + $0x170] sm:$0xff] %v2559_v49  ;;  %2562 = vst [vmem:[%s3272_s18 + $0x178] sm:$0xff] %v2561_v40  ;;  %v2565_v37 = vld [vmem:[%s3276_s12 + $0x188] sm:$0xff]  ;;  %v2567_v43 = vld [vmem:[%s3276_s12 + $0x190] sm:$0xff] }
 0x474   : >> { %2564 = vst [vmem:[%s3272_s18 + $0x180] sm:$0xff] %v2563_v2  ;;  %2566 = vst [vmem:[%s3272_s18 + $0x188] sm:$0xff] %v2565_v37  ;;  %v2569_v1 = vld [vmem:[%s3276_s12 + $0x198] sm:$0xff]  ;;  %v2571_v30 = vld [vmem:[%s3276_s12 + $0x1a0] sm:$0xff] }
 0x475   : >> { %2568 = vst [vmem:[%s3272_s18 + $0x190] sm:$0xff] %v2567_v43  ;;  %v2573_v52 = vld [vmem:[%s3276_s12 + $0x1a8] sm:$0xff]  ;;  %2570 = vst [vmem:[%s3272_s18 + $0x198] sm:$0xff] %v2569_v1  ;;  %v2575_v7 = vld [vmem:[%s3276_s12 + $0x1b0] sm:$0xff]  ;;  %2463 = sbr.rel (!%p2460_p12) target bundleno = 1115 (0x45b), region = 126 }
 0x476   : >> { %2572 = vst [vmem:[%s3272_s18 + $0x1a0] sm:$0xff] %v2571_v30  ;;  %2574 = vst [vmem:[%s3272_s18 + $0x1a8] sm:$0xff] %v2573_v52  ;;  %v2577_v18 = vld [vmem:[%s3276_s12 + $0x1b8] sm:$0xff]  ;;  %v2579_v58 = vld [vmem:[%s3276_s12 + $0x1c0] sm:$0xff] }
 0x477   : >> { %2576 = vst [vmem:[%s3272_s18 + $0x1b0] sm:$0xff] %v2575_v7  ;;  %2578 = vst [vmem:[%s3272_s18 + $0x1b8] sm:$0xff] %v2577_v18  ;;  %v2581_v42 = vld [vmem:[%s3276_s12 + $0x1c8] sm:$0xff]  ;;  %v2583_v53 = vld [vmem:[%s3276_s12 + $0x1d0] sm:$0xff] }
 0x478   : >> { %2580 = vst [vmem:[%s3272_s18 + $0x1c0] sm:$0xff] %v2579_v58  ;;  %v2585_v38 = vld [vmem:[%s3276_s12 + $0x1d8] sm:$0xff]  ;;  %2582 = vst [vmem:[%s3272_s18 + $0x1c8] sm:$0xff] %v2581_v42  ;;  %v2587_v45 = vld [vmem:[%s3276_s12 + $0x1e0] sm:$0xff] }
 0x479   : >> { %2584 = vst [vmem:[%s3272_s18 + $0x1d0] sm:$0xff] %v2583_v53  ;;  %2586 = vst [vmem:[%s3272_s18 + $0x1d8] sm:$0xff] %v2585_v38  ;;  %v2589_v6 = vld [vmem:[%s3276_s12 + $0x1e8] sm:$0xff]  ;;  %v2591_v35 = vld [vmem:[%s3276_s12 + $0x1f0] sm:$0xff]  ;;  %s5072_s12 = smov %s4841_s25 }
 0x47a   : >> { %2588 = vst [vmem:[%s3272_s18 + $0x1e0] sm:$0xff] %v2587_v45  ;;  %2590 = vst [vmem:[%s3272_s18 + $0x1e8] sm:$0xff] %v2589_v6 }
 0x47b   : >> { %2592 = vst [vmem:[%s3272_s18 + $0x1f0] sm:$0xff] %v2591_v35  ;;  %s5071_s18 = smov %s4844_s26 }
 0x47c PF: > { %3212 = sdivrem.u32 %s5078_s8, 63 }
 0x47d   : > { %s3005_s27 = smul.u32 504, %s4768_s23 }
 0x47f   : > { %s2604_s28 = scalar_lea.vmem %s4648_s15, %s3005_s27 [#allocation2]   ;;  %s2606_s29 = scalar_lea.vmem %s4762_s13, %s3005_s27  }
 0x485   : > { %s3213_s30 = spop.drf %3212 }
 0x486   : > { %p3007_p13 = scmp.le.s32.totalorder %s3213_s30, 0 }
 0x487   : > { %s3286_s5 = smov (!%p3007_p13), %s2606_s29   ;;  %s3290_s6 = smov (!%p3007_p13), %s2604_s28  }
 0x488   : > { %2697 = sbr.rel (%p3007_p13) target bundleno = 1177 (0x499), region = 131  ;;  %s3294_s7 = smov (!%p3007_p13), 0  }
 0x489   : > { %s3298_s9 = smov (!%p3007_p13), 0  }
 0x48f LB: >> { %v2616_v16 = vld [vmem:[%s3292_s6] sm:$0xff]  ;;  %s2618_s10 = sadd.s32 1, %s3296_s7  ;;  %s2610_s9 = sadd.s32 1, %s3300_s9   ;;  %s3300_s9 = sphi %s3298_s9, %s2610_s9   ;;  %s3296_s7 = sphi %s3294_s7, %s3295_s7   ;;  %s3292_s6 = sphi %s3290_s6, %s2623_s6   ;;  %s3288_s5 = sphi %s3286_s5, %s2624_s5  }
 0x490   : >> { %2617 = vst [vmem:[%s3288_s5] sm:$0xff] %v2616_v16  ;;  %p2619_p0 = scmp.ge.s32.totalorder %s2618_s10, %s3213_s30  ;;  %p2609_p1 = scmp.ge.s32.totalorder %s2610_s9, %s3213_s30 }
 0x492   : >> { %s5082_s10 = smov (%p2619_p0, %s2618_s10), 0  ;;  %2612 = sbr.rel (!%p2609_p1) target bundleno = 1167 (0x48f), region = 137 }
 0x493   : >> { %s3008_s15 = sshll.u32 %s5082_s10, 3  ;;  %s3295_s7 = smov %s5082_s10  }
 0x494   : >> { %s2623_s6 = scalar_lea.vmem %s2604_s28, %s3008_s15 [#allocation2]   ;;  %s2624_s5 = scalar_lea.vmem %s2606_s29, %s3008_s15  }
 0x499 PF: > { %p11_p2 = scmp.ge.s32.totalorder %s3345_s19, 4   ;;  %s5074_s15 = smov %s3264_s16 }
 0x49a   : > { %s5075_s16 = smov %s3353_s22  ;;  %s5076_s17 = smov %s3345_s19 }
 0x49b   :  { %13 = sbr.rel (!%p11_p2) target bundleno = 2 (0x2), region = 148 }

</bundles_post_ra>
